<compile_context>
chip_gen: v7x
topology: tpu7x:2x2x1
jax: 0.10.0
libtpu: 0.0.40
codegen_flags: <defaults>
</compile_context>

<pallas_src>
import functools
import numpy as np
import jax
import jax.numpy as jnp
from jax.experimental import pallas as pl
from jax.experimental.pallas import tpu as pltpu


# -----------------------------------------------------------------------------
# Host-side constants: bicubic x2 upsample (align_corners=False, matches
# F.interpolate's default) fused with the reflection pad into one matrix per axis.
# -----------------------------------------------------------------------------
def _bicubic_matrix(in_size: int, scale: int = 2, a: float = -0.75) -> np.ndarray:
    """(scale*in_size, in_size) matrix reproducing
    torch.nn.functional.interpolate(mode='bicubic', align_corners=False)."""
    out_size = in_size * scale
    W = np.zeros((out_size, in_size), dtype=np.float64)
    for i in range(out_size):
        src = (i + 0.5) / scale - 0.5
        f = int(np.floor(src))
        t = src - f
        # PyTorch cubic convolution coefficients (A = -0.75)
        w_m1 = ((a * (t + 1.0) - 5.0 * a) * (t + 1.0) + 8.0 * a) * (t + 1.0) - 4.0 * a
        w_0 = ((a + 2.0) * t - (a + 3.0)) * t * t + 1.0
        w_1 = ((a + 2.0) * (1.0 - t) - (a + 3.0)) * (1.0 - t) ** 2 + 1.0
        w_2 = ((a * (2.0 - t) - 5.0 * a) * (2.0 - t) + 8.0 * a) * (2.0 - t) - 4.0 * a
        for off, wgt in zip((-1, 0, 1, 2), (w_m1, w_0, w_1, w_2)):
            idx = min(max(f + off, 0), in_size - 1)  # border clamp, like PyTorch
            W[i, idx] += wgt
    return W.astype(np.float32)


def _upsample_pad_matrix(in_size: int, pad: int, scale: int = 2) -> np.ndarray:
    """(scale*in_size + 2*pad, in_size): reflection-pad(rows) applied after bicubic
    upsample, folded into a single matrix (pad == selection of reflected rows)."""
    up = _bicubic_matrix(in_size, scale=scale)
    out = scale * in_size
    rows = []
    for r in range(out + 2 * pad):
        src = r - pad
        if src < 0:                       # ReflectionPad2d: -1 -> 1, -2 -> 2, ...
            src = -src
        elif src >= out:                  # out -> out-2, out+1 -> out-3, ...
            src = 2 * (out - 1) - src
        rows.append(src)
    return up[np.asarray(rows), :]


# -----------------------------------------------------------------------------
# Fused kernel: upsample + pad + conv + instance norm + ReLU for one sample.
# -----------------------------------------------------------------------------
def deconv_kernel(x_ref, bt_ref, a_ref, w_ref, p_ref, o_ref, *, k, stride, eps):
    # x_ref : (1, Cin, H, W)     raw NCHW input block (one sample)
    # bt_ref: (W, Wp)            fused upsample+pad matrix for the W axis (B^T)
    # a_ref : (Hp, H)            fused upsample+pad matrix for the H axis (A)
    # w_ref : (Cout, Cin*K*K)    conv weight, PyTorch (O, I, Kh, Kw) order flattened
    # p_ref : (Cout, 3)          packed [bias | gamma | beta]
    # o_ref : (1, Cout, Ho*Wo)   lane-dense NCHW output (pixels on the lane axis)
    _, cin, h, w = x_ref.shape
    wp = bt_ref.shape[1]
    hp = a_ref.shape[0]
    ho = (hp - k) // stride + 1
    wo = (wp - k) // stride + 1

    x = x_ref[0]                                          # (Cin, H, W)
    bt = bt_ref[...]
    a = a_ref[...]

    # --- bicubic x2 upsample + reflection pad, W axis (all channels at once) ---
    t = jnp.dot(x.reshape(cin * h, w), bt,
                preferred_element_type=jnp.float32)       # (Cin*H, Wp)
    t = t.reshape(cin, h, wp)

    # --- H axis per channel + K*K im2col tap windows (row order = c, kh, kw) ---
    taps = []
    for c in range(cin):
        u = jnp.dot(a, t[c], preferred_element_type=jnp.float32)   # (Hp, Wp)
        for di in range(k):
            for dj in range(k):
                taps.append(u[di:di + (ho - 1) * stride + 1:stride,
                              dj:dj + (wo - 1) * stride + 1:stride])  # (Ho, Wo)
    slab = jnp.stack(taps, axis=0)                        # (Cin*K*K, Ho, Wo)
    slab = slab.reshape(cin * k * k, ho * wo)             # pixels -> lanes

    # --- conv: single (Cout, Cin*K*K) @ (Cin*K*K, Ho*Wo) MXU contraction -------
    acc = jnp.dot(w_ref[...], slab,
                  preferred_element_type=jnp.float32)     # (Cout, Ho*Wo)
    prm = p_ref[...]                                      # (Cout, 3)
    acc = acc + prm[:, 0:1]                               # conv bias

    # --- InstanceNorm2d (biased var, single-pass stats) + affine + ReLU --------
    inv_n = 1.0 / float(ho * wo)
    mean = jnp.sum(acc, axis=1, keepdims=True) * inv_n                    # (Cout, 1)
    var = jnp.sum(acc * acc, axis=1, keepdims=True) * inv_n - mean * mean
    scale = prm[:, 1:2] * jax.lax.rsqrt(var + eps)
    shift = prm[:, 2:3] - mean * scale
    o_ref[0] = jnp.maximum(acc * scale + shift, 0.0).astype(o_ref.dtype)


# -----------------------------------------------------------------------------
# Wrapper: prepares the fused constant matrices / packed params and calls Pallas.
# -----------------------------------------------------------------------------
def deconv_layer_forward(x_nchw, params, *, kernel_size, stride, eps=1e-5):
    n, cin, h, w = x_nchw.shape
    k = kernel_size
    pad = k // 2

    a_np = _upsample_pad_matrix(h, pad)                   # (Hp, H)
    b_np = _upsample_pad_matrix(w, pad)                   # (Wp, W)
    hp, wp = a_np.shape[0], b_np.shape[0]
    ho = (hp - k) // stride + 1
    wo = (wp - k) // stride + 1

    conv_w = params['conv_w']                             # (Cout, Cin, K, K) PyTorch
    cout = conv_w.shape[0]
    w2 = conv_w.reshape(cout, cin * k * k).astype(jnp.float32)
    prm = jnp.stack([params['conv_b'], params['in_gamma'], params['in_beta']],
                    axis=1).astype(jnp.float32)           # (Cout, 3)

    a_mat = jnp.asarray(a_np)                             # (Hp, H)
    bt_mat = jnp.asarray(b_np.T)                          # (W, Wp)

    kern = functools.partial(deconv_kernel, k=k, stride=stride, eps=eps)

    flops_per_sample = (2 * cin * h * w * wp              # W-axis upsample matmul
                        + 2 * cin * hp * h * wp           # H-axis upsample matmuls
                        + 2 * cout * cin * k * k * ho * wo)   # conv contraction
    bytes_accessed = 4 * (x_nchw.size + n * cout * ho * wo
                          + n * (a_np.size + b_np.size + cout * cin * k * k + 3 * cout))

    out = pl.pallas_call(
        kern,
        out_shape=jax.ShapeDtypeStruct((n, cout, ho * wo), x_nchw.dtype),
        grid_spec=pltpu.PrefetchScalarGridSpec(
            num_scalar_prefetch=0,
            grid=(n,),
            in_specs=[
                pl.BlockSpec((1, cin, h, w), lambda i: (i, 0, 0, 0)),   # x (NCHW)
                pl.BlockSpec((w, wp), lambda i: (0, 0)),                # B^T
                pl.BlockSpec((hp, h), lambda i: (0, 0)),                # A
                pl.BlockSpec((cout, cin * k * k), lambda i: (0, 0)),    # conv weight
                pl.BlockSpec((cout, 3), lambda i: (0, 0)),              # bias|gamma|beta
            ],
            out_specs=pl.BlockSpec((1, cout, ho * wo), lambda i: (i, 0, 0)),
        ),
        compiler_params=pltpu.CompilerParams(dimension_semantics=("parallel",)),
        cost_estimate=pl.CostEstimate(flops=n * flops_per_sample,
                                      transcendentals=n * cout,
                                      bytes_accessed=bytes_accessed),
    )(x_nchw, bt_mat, a_mat, w2, prm)

    # lane-dense (N, Cout, Ho*Wo) -> NCHW; pure reshape, no transpose.
    return out.reshape(n, cout, ho, wo)


# -----------------------------------------------------------------------------
# Pure-JAX reference (for a correctness self-check).
# -----------------------------------------------------------------------------
def _reference_forward(x, params, kernel_size, stride, eps=1e-5):
    n, cin, h, w = x.shape
    wh = jnp.asarray(_bicubic_matrix(h))
    ww = jnp.asarray(_bicubic_matrix(w))
    x_up = jnp.einsum('ph,nchw,qw->ncpq', wh, x, ww)
    p = kernel_size // 2
    x_pad = jnp.pad(x_up, ((0, 0), (0, 0), (p, p), (p, p)), mode='reflect')
    y = jax.lax.conv_general_dilated(
        x_pad, params['conv_w'], (stride, stride), 'VALID',
        dimension_numbers=('NCHW', 'OIHW', 'NCHW'))
    y = y + params['conv_b'][None, :, None, None]
    mean = jnp.mean(y, axis=(2, 3), keepdims=True)
    var = jnp.var(y, axis=(2, 3), keepdims=True)
    y = (y - mean) * jax.lax.rsqrt(var + eps)
    y = y * params['in_gamma'][None, :, None, None] + params['in_beta'][None, :, None, None]
    return jnp.maximum(y, 0.0)


if __name__ == "__main__":
    key = jax.random.PRNGKey(0)
    k1, k2, k3 = jax.random.split(key, 3)

    # DeconvLayer(in_ch=4, out_ch=8, kernel_size=3, stride=1) on x: (2, 4, 16, 16)
    N, Cin, Cout, H, W, K, S = 2, 4, 8, 16, 16, 3, 1
    x = jax.random.normal(k1, (N, Cin, H, W), jnp.float32)

    # Deterministic parameter init (Conv2d-style uniform; InstanceNorm affine = 1/0)
    fan_in = Cin * K * K
    bound = 1.0 / np.sqrt(fan_in)
    params = {
        'conv_w': jax.random.uniform(k2, (Cout, Cin, K, K), jnp.float32, -bound, bound),
        'conv_b': jax.random.uniform(k3, (Cout,), jnp.float32, -bound, bound),
        'in_gamma': jnp.ones((Cout,), jnp.float32),
        'in_beta': jnp.zeros((Cout,), jnp.float32),
    }

    fwd = jax.jit(functools.partial(deconv_layer_forward, kernel_size=K, stride=S))
    out = jax.block_until_ready(fwd(x, params))

    assert out.shape == (N, Cout, 2 * H, 2 * W), out.shape
    assert out.dtype == jnp.float32
    assert bool(jnp.all(out >= 0.0))  # ReLU output is non-negative

    ref = jax.block_until_ready(_reference_forward(x, params, K, S))
    max_err = float(jnp.max(jnp.abs(out - ref)))
    assert max_err < 1e-3, f"max abs error vs reference = {max_err}"

    print("KERNEL_OK")
</pallas_src>

<mosaic_0001>
module attributes {stable_mosaic.version = 11 : i64} {
  func.func @deconv_kernel(%arg0: i32, %arg1: memref<1x4x16x16xf32, #tpu.memory_space<vmem>>, %arg2: memref<16x34xf32, #tpu.memory_space<vmem>>, %arg3: memref<34x16xf32, #tpu.memory_space<vmem>>, %arg4: memref<8x36xf32, #tpu.memory_space<vmem>>, %arg5: memref<8x3xf32, #tpu.memory_space<vmem>>, %arg6: memref<1x8x1024xf32, #tpu.memory_space<vmem>>) attributes {dimension_semantics = [#tpu.dimension_semantics<parallel>], iteration_bounds = array<i64: 2>, scalar_prefetch = 0 : i64, scratch_operands = 0 : i64, tpu.core_type = #tpu.core_type<tc>, window_params = [{transform_indices = @transform_0, window_bounds = array<i64: 1, 4, 16, 16>}, {pipeline_mode = #tpu.pipeline_mode<synchronous>, transform_indices = @transform_1, window_bounds = array<i64: 16, 34>}, {pipeline_mode = #tpu.pipeline_mode<synchronous>, transform_indices = @transform_2, window_bounds = array<i64: 34, 16>}, {pipeline_mode = #tpu.pipeline_mode<synchronous>, transform_indices = @transform_3, window_bounds = array<i64: 8, 36>}, {pipeline_mode = #tpu.pipeline_mode<synchronous>, transform_indices = @transform_4, window_bounds = array<i64: 8, 3>}, {transform_indices = @transform_5, window_bounds = array<i64: 1, 8, 1024>}]} {
    %c0 = arith.constant 0 : index
    %c0_0 = arith.constant 0 : index
    %c0_1 = arith.constant 0 : index
    %c0_2 = arith.constant 0 : index
    %0 = vector.load %arg1[%c0, %c0_0, %c0_1, %c0_2] : memref<1x4x16x16xf32, #tpu.memory_space<vmem>>, vector<1x4x16x16xf32>
    %1 = vector.shape_cast %0 : vector<1x4x16x16xf32> to vector<4x16x16xf32>
    %c0_3 = arith.constant 0 : index
    %c0_4 = arith.constant 0 : index
    %2 = vector.load %arg2[%c0_3, %c0_4] : memref<16x34xf32, #tpu.memory_space<vmem>>, vector<16x34xf32>
    %c0_5 = arith.constant 0 : index
    %c0_6 = arith.constant 0 : index
    %3 = vector.load %arg3[%c0_5, %c0_6] : memref<34x16xf32, #tpu.memory_space<vmem>>, vector<34x16xf32>
    %4 = vector.shape_cast %1 : vector<4x16x16xf32> to vector<64x16xf32>
    %cst = arith.constant dense<0.000000e+00> : vector<64x34xf32>
    %5 = tpu.matmul %4, %2, %cst {dimension_numbers = #tpu.dot_dimension_numbers<[1], [0], [0], [1], [0, 0, 1, 1], [], []>} : vector<64x16xf32>, vector<16x34xf32>, vector<64x34xf32> -> vector<64x34xf32>
    %6 = vector.shape_cast %5 : vector<64x34xf32> to vector<4x16x34xf32>
    %7 = vector.extract_strided_slice %6 {offsets = [0, 0, 0], sizes = [1, 16, 34], strides = [1, 1, 1]} : vector<4x16x34xf32> to vector<1x16x34xf32>
    %8 = vector.shape_cast %7 : vector<1x16x34xf32> to vector<16x34xf32>
    %cst_7 = arith.constant dense<0.000000e+00> : vector<34x34xf32>
    %9 = tpu.matmul %3, %8, %cst_7 {dimension_numbers = #tpu.dot_dimension_numbers<[1], [0], [0], [1], [0, 0, 1, 1], [], []>} : vector<34x16xf32>, vector<16x34xf32>, vector<34x34xf32> -> vector<34x34xf32>
    %10 = vector.extract_strided_slice %9 {offsets = [0, 0], sizes = [32, 32], strides = [1, 1]} : vector<34x34xf32> to vector<32x32xf32>
    %11 = vector.extract_strided_slice %9 {offsets = [0, 1], sizes = [32, 32], strides = [1, 1]} : vector<34x34xf32> to vector<32x32xf32>
    %12 = vector.extract_strided_slice %9 {offsets = [0, 2], sizes = [32, 32], strides = [1, 1]} : vector<34x34xf32> to vector<32x32xf32>
    %13 = vector.extract_strided_slice %9 {offsets = [1, 0], sizes = [32, 32], strides = [1, 1]} : vector<34x34xf32> to vector<32x32xf32>
    %14 = vector.extract_strided_slice %9 {offsets = [1, 1], sizes = [32, 32], strides = [1, 1]} : vector<34x34xf32> to vector<32x32xf32>
    %15 = vector.extract_strided_slice %9 {offsets = [1, 2], sizes = [32, 32], strides = [1, 1]} : vector<34x34xf32> to vector<32x32xf32>
    %16 = vector.extract_strided_slice %9 {offsets = [2, 0], sizes = [32, 32], strides = [1, 1]} : vector<34x34xf32> to vector<32x32xf32>
    %17 = vector.extract_strided_slice %9 {offsets = [2, 1], sizes = [32, 32], strides = [1, 1]} : vector<34x34xf32> to vector<32x32xf32>
    %18 = vector.extract_strided_slice %9 {offsets = [2, 2], sizes = [32, 32], strides = [1, 1]} : vector<34x34xf32> to vector<32x32xf32>
    %19 = vector.extract_strided_slice %6 {offsets = [1, 0, 0], sizes = [1, 16, 34], strides = [1, 1, 1]} : vector<4x16x34xf32> to vector<1x16x34xf32>
    %20 = vector.shape_cast %19 : vector<1x16x34xf32> to vector<16x34xf32>
    %cst_8 = arith.constant dense<0.000000e+00> : vector<34x34xf32>
    %21 = tpu.matmul %3, %20, %cst_8 {dimension_numbers = #tpu.dot_dimension_numbers<[1], [0], [0], [1], [0, 0, 1, 1], [], []>} : vector<34x16xf32>, vector<16x34xf32>, vector<34x34xf32> -> vector<34x34xf32>
    %22 = vector.extract_strided_slice %21 {offsets = [0, 0], sizes = [32, 32], strides = [1, 1]} : vector<34x34xf32> to vector<32x32xf32>
    %23 = vector.extract_strided_slice %21 {offsets = [0, 1], sizes = [32, 32], strides = [1, 1]} : vector<34x34xf32> to vector<32x32xf32>
    %24 = vector.extract_strided_slice %21 {offsets = [0, 2], sizes = [32, 32], strides = [1, 1]} : vector<34x34xf32> to vector<32x32xf32>
    %25 = vector.extract_strided_slice %21 {offsets = [1, 0], sizes = [32, 32], strides = [1, 1]} : vector<34x34xf32> to vector<32x32xf32>
    %26 = vector.extract_strided_slice %21 {offsets = [1, 1], sizes = [32, 32], strides = [1, 1]} : vector<34x34xf32> to vector<32x32xf32>
    %27 = vector.extract_strided_slice %21 {offsets = [1, 2], sizes = [32, 32], strides = [1, 1]} : vector<34x34xf32> to vector<32x32xf32>
    %28 = vector.extract_strided_slice %21 {offsets = [2, 0], sizes = [32, 32], strides = [1, 1]} : vector<34x34xf32> to vector<32x32xf32>
    %29 = vector.extract_strided_slice %21 {offsets = [2, 1], sizes = [32, 32], strides = [1, 1]} : vector<34x34xf32> to vector<32x32xf32>
    %30 = vector.extract_strided_slice %21 {offsets = [2, 2], sizes = [32, 32], strides = [1, 1]} : vector<34x34xf32> to vector<32x32xf32>
    %31 = vector.extract_strided_slice %6 {offsets = [2, 0, 0], sizes = [1, 16, 34], strides = [1, 1, 1]} : vector<4x16x34xf32> to vector<1x16x34xf32>
    %32 = vector.shape_cast %31 : vector<1x16x34xf32> to vector<16x34xf32>
    %cst_9 = arith.constant dense<0.000000e+00> : vector<34x34xf32>
    %33 = tpu.matmul %3, %32, %cst_9 {dimension_numbers = #tpu.dot_dimension_numbers<[1], [0], [0], [1], [0, 0, 1, 1], [], []>} : vector<34x16xf32>, vector<16x34xf32>, vector<34x34xf32> -> vector<34x34xf32>
    %34 = vector.extract_strided_slice %33 {offsets = [0, 0], sizes = [32, 32], strides = [1, 1]} : vector<34x34xf32> to vector<32x32xf32>
    %35 = vector.extract_strided_slice %33 {offsets = [0, 1], sizes = [32, 32], strides = [1, 1]} : vector<34x34xf32> to vector<32x32xf32>
    %36 = vector.extract_strided_slice %33 {offsets = [0, 2], sizes = [32, 32], strides = [1, 1]} : vector<34x34xf32> to vector<32x32xf32>
    %37 = vector.extract_strided_slice %33 {offsets = [1, 0], sizes = [32, 32], strides = [1, 1]} : vector<34x34xf32> to vector<32x32xf32>
    %38 = vector.extract_strided_slice %33 {offsets = [1, 1], sizes = [32, 32], strides = [1, 1]} : vector<34x34xf32> to vector<32x32xf32>
    %39 = vector.extract_strided_slice %33 {offsets = [1, 2], sizes = [32, 32], strides = [1, 1]} : vector<34x34xf32> to vector<32x32xf32>
    %40 = vector.extract_strided_slice %33 {offsets = [2, 0], sizes = [32, 32], strides = [1, 1]} : vector<34x34xf32> to vector<32x32xf32>
    %41 = vector.extract_strided_slice %33 {offsets = [2, 1], sizes = [32, 32], strides = [1, 1]} : vector<34x34xf32> to vector<32x32xf32>
    %42 = vector.extract_strided_slice %33 {offsets = [2, 2], sizes = [32, 32], strides = [1, 1]} : vector<34x34xf32> to vector<32x32xf32>
    %43 = vector.extract_strided_slice %6 {offsets = [3, 0, 0], sizes = [1, 16, 34], strides = [1, 1, 1]} : vector<4x16x34xf32> to vector<1x16x34xf32>
    %44 = vector.shape_cast %43 : vector<1x16x34xf32> to vector<16x34xf32>
    %cst_10 = arith.constant dense<0.000000e+00> : vector<34x34xf32>
    %45 = tpu.matmul %3, %44, %cst_10 {dimension_numbers = #tpu.dot_dimension_numbers<[1], [0], [0], [1], [0, 0, 1, 1], [], []>} : vector<34x16xf32>, vector<16x34xf32>, vector<34x34xf32> -> vector<34x34xf32>
    %46 = vector.extract_strided_slice %45 {offsets = [0, 0], sizes = [32, 32], strides = [1, 1]} : vector<34x34xf32> to vector<32x32xf32>
    %47 = vector.extract_strided_slice %45 {offsets = [0, 1], sizes = [32, 32], strides = [1, 1]} : vector<34x34xf32> to vector<32x32xf32>
    %48 = vector.extract_strided_slice %45 {offsets = [0, 2], sizes = [32, 32], strides = [1, 1]} : vector<34x34xf32> to vector<32x32xf32>
    %49 = vector.extract_strided_slice %45 {offsets = [1, 0], sizes = [32, 32], strides = [1, 1]} : vector<34x34xf32> to vector<32x32xf32>
    %50 = vector.extract_strided_slice %45 {offsets = [1, 1], sizes = [32, 32], strides = [1, 1]} : vector<34x34xf32> to vector<32x32xf32>
    %51 = vector.extract_strided_slice %45 {offsets = [1, 2], sizes = [32, 32], strides = [1, 1]} : vector<34x34xf32> to vector<32x32xf32>
    %52 = vector.extract_strided_slice %45 {offsets = [2, 0], sizes = [32, 32], strides = [1, 1]} : vector<34x34xf32> to vector<32x32xf32>
    %53 = vector.extract_strided_slice %45 {offsets = [2, 1], sizes = [32, 32], strides = [1, 1]} : vector<34x34xf32> to vector<32x32xf32>
    %54 = vector.extract_strided_slice %45 {offsets = [2, 2], sizes = [32, 32], strides = [1, 1]} : vector<34x34xf32> to vector<32x32xf32>
    %55 = vector.shape_cast %10 : vector<32x32xf32> to vector<1x32x32xf32>
    %56 = vector.shape_cast %11 : vector<32x32xf32> to vector<1x32x32xf32>
    %57 = vector.shape_cast %12 : vector<32x32xf32> to vector<1x32x32xf32>
    %58 = vector.shape_cast %13 : vector<32x32xf32> to vector<1x32x32xf32>
    %59 = vector.shape_cast %14 : vector<32x32xf32> to vector<1x32x32xf32>
    %60 = vector.shape_cast %15 : vector<32x32xf32> to vector<1x32x32xf32>
    %61 = vector.shape_cast %16 : vector<32x32xf32> to vector<1x32x32xf32>
    %62 = vector.shape_cast %17 : vector<32x32xf32> to vector<1x32x32xf32>
    %63 = vector.shape_cast %18 : vector<32x32xf32> to vector<1x32x32xf32>
    %64 = vector.shape_cast %22 : vector<32x32xf32> to vector<1x32x32xf32>
    %65 = vector.shape_cast %23 : vector<32x32xf32> to vector<1x32x32xf32>
    %66 = vector.shape_cast %24 : vector<32x32xf32> to vector<1x32x32xf32>
    %67 = vector.shape_cast %25 : vector<32x32xf32> to vector<1x32x32xf32>
    %68 = vector.shape_cast %26 : vector<32x32xf32> to vector<1x32x32xf32>
    %69 = vector.shape_cast %27 : vector<32x32xf32> to vector<1x32x32xf32>
    %70 = vector.shape_cast %28 : vector<32x32xf32> to vector<1x32x32xf32>
    %71 = vector.shape_cast %29 : vector<32x32xf32> to vector<1x32x32xf32>
    %72 = vector.shape_cast %30 : vector<32x32xf32> to vector<1x32x32xf32>
    %73 = vector.shape_cast %34 : vector<32x32xf32> to vector<1x32x32xf32>
    %74 = vector.shape_cast %35 : vector<32x32xf32> to vector<1x32x32xf32>
    %75 = vector.shape_cast %36 : vector<32x32xf32> to vector<1x32x32xf32>
    %76 = vector.shape_cast %37 : vector<32x32xf32> to vector<1x32x32xf32>
    %77 = vector.shape_cast %38 : vector<32x32xf32> to vector<1x32x32xf32>
    %78 = vector.shape_cast %39 : vector<32x32xf32> to vector<1x32x32xf32>
    %79 = vector.shape_cast %40 : vector<32x32xf32> to vector<1x32x32xf32>
    %80 = vector.shape_cast %41 : vector<32x32xf32> to vector<1x32x32xf32>
    %81 = vector.shape_cast %42 : vector<32x32xf32> to vector<1x32x32xf32>
    %82 = vector.shape_cast %46 : vector<32x32xf32> to vector<1x32x32xf32>
    %83 = vector.shape_cast %47 : vector<32x32xf32> to vector<1x32x32xf32>
    %84 = vector.shape_cast %48 : vector<32x32xf32> to vector<1x32x32xf32>
    %85 = vector.shape_cast %49 : vector<32x32xf32> to vector<1x32x32xf32>
    %86 = vector.shape_cast %50 : vector<32x32xf32> to vector<1x32x32xf32>
    %87 = vector.shape_cast %51 : vector<32x32xf32> to vector<1x32x32xf32>
    %88 = vector.shape_cast %52 : vector<32x32xf32> to vector<1x32x32xf32>
    %89 = vector.shape_cast %53 : vector<32x32xf32> to vector<1x32x32xf32>
    %90 = vector.shape_cast %54 : vector<32x32xf32> to vector<1x32x32xf32>
    %91 = tpu.concatenate %55, %56, %57, %58, %59, %60, %61, %62, %63, %64, %65, %66, %67, %68, %69, %70 in 0 : vector<1x32x32xf32>, vector<1x32x32xf32>, vector<1x32x32xf32>, vector<1x32x32xf32>, vector<1x32x32xf32>, vector<1x32x32xf32>, vector<1x32x32xf32>, vector<1x32x32xf32>, vector<1x32x32xf32>, vector<1x32x32xf32>, vector<1x32x32xf32>, vector<1x32x32xf32>, vector<1x32x32xf32>, vector<1x32x32xf32>, vector<1x32x32xf32>, vector<1x32x32xf32> -> vector<16x32x32xf32>
    %92 = tpu.concatenate %71, %72, %73, %74, %75, %76, %77, %78, %79, %80, %81, %82, %83, %84, %85, %86 in 0 : vector<1x32x32xf32>, vector<1x32x32xf32>, vector<1x32x32xf32>, vector<1x32x32xf32>, vector<1x32x32xf32>, vector<1x32x32xf32>, vector<1x32x32xf32>, vector<1x32x32xf32>, vector<1x32x32xf32>, vector<1x32x32xf32>, vector<1x32x32xf32>, vector<1x32x32xf32>, vector<1x32x32xf32>, vector<1x32x32xf32>, vector<1x32x32xf32>, vector<1x32x32xf32> -> vector<16x32x32xf32>
    %93 = tpu.concatenate %87, %88, %89, %90 in 0 : vector<1x32x32xf32>, vector<1x32x32xf32>, vector<1x32x32xf32>, vector<1x32x32xf32> -> vector<4x32x32xf32>
    %94 = tpu.concatenate %91, %92, %93 in 0 : vector<16x32x32xf32>, vector<16x32x32xf32>, vector<4x32x32xf32> -> vector<36x32x32xf32>
    %95 = vector.shape_cast %94 : vector<36x32x32xf32> to vector<36x1024xf32>
    %c0_11 = arith.constant 0 : index
    %c0_12 = arith.constant 0 : index
    %96 = vector.load %arg4[%c0_11, %c0_12] : memref<8x36xf32, #tpu.memory_space<vmem>>, vector<8x36xf32>
    %cst_13 = arith.constant dense<0.000000e+00> : vector<8x1024xf32>
    %97 = tpu.matmul %96, %95, %cst_13 {dimension_numbers = #tpu.dot_dimension_numbers<[1], [0], [0], [1], [0, 0, 1, 1], [], []>} : vector<8x36xf32>, vector<36x1024xf32>, vector<8x1024xf32> -> vector<8x1024xf32>
    %c0_14 = arith.constant 0 : index
    %c0_15 = arith.constant 0 : index
    %98 = vector.load %arg5[%c0_14, %c0_15] : memref<8x3xf32, #tpu.memory_space<vmem>>, vector<8x3xf32>
    %99 = vector.extract_strided_slice %98 {offsets = [0, 0], sizes = [8, 1], strides = [1, 1]} : vector<8x3xf32> to vector<8x1xf32>
    %100 = vector.broadcast %99 : vector<8x1xf32> to vector<8x1024xf32>
    %101 = arith.addf %97, %100 : vector<8x1024xf32>
    %cst_16 = arith.constant dense<0.000000e+00> : vector<8xf32>
    %102 = vector.multi_reduction <add>, %101, %cst_16 [1] : vector<8x1024xf32> to vector<8xf32>
    %103 = vector.shape_cast %102 : vector<8xf32> to vector<8x1xf32>
    %cst_17 = arith.constant 9.765625E-4 : f32
    %104 = vector.broadcast %cst_17 : f32 to vector<8x1xf32>
    %105 = arith.mulf %103, %104 : vector<8x1xf32>
    %106 = arith.mulf %101, %101 : vector<8x1024xf32>
    %cst_18 = arith.constant dense<0.000000e+00> : vector<8xf32>
    %107 = vector.multi_reduction <add>, %106, %cst_18 [1] : vector<8x1024xf32> to vector<8xf32>
    %108 = vector.shape_cast %107 : vector<8xf32> to vector<8x1xf32>
    %cst_19 = arith.constant 9.765625E-4 : f32
    %109 = vector.broadcast %cst_19 : f32 to vector<8x1xf32>
    %110 = arith.mulf %108, %109 : vector<8x1xf32>
    %111 = arith.mulf %105, %105 : vector<8x1xf32>
    %112 = arith.subf %110, %111 : vector<8x1xf32>
    %113 = vector.extract_strided_slice %98 {offsets = [0, 1], sizes = [8, 1], strides = [1, 1]} : vector<8x3xf32> to vector<8x1xf32>
    %cst_20 = arith.constant 9.99999974E-6 : f32
    %114 = vector.broadcast %cst_20 : f32 to vector<8x1xf32>
    %115 = arith.addf %112, %114 : vector<8x1xf32>
    %116 = math.rsqrt %115 : vector<8x1xf32>
    %117 = arith.mulf %113, %116 : vector<8x1xf32>
    %118 = vector.extract_strided_slice %98 {offsets = [0, 2], sizes = [8, 1], strides = [1, 1]} : vector<8x3xf32> to vector<8x1xf32>
    %119 = arith.mulf %105, %117 : vector<8x1xf32>
    %120 = arith.subf %118, %119 : vector<8x1xf32>
    %121 = vector.broadcast %117 : vector<8x1xf32> to vector<8x1024xf32>
    %122 = arith.mulf %101, %121 : vector<8x1024xf32>
    %123 = vector.broadcast %120 : vector<8x1xf32> to vector<8x1024xf32>
    %124 = arith.addf %122, %123 : vector<8x1024xf32>
    %cst_21 = arith.constant 0.000000e+00 : f32
    %125 = vector.broadcast %cst_21 : f32 to vector<8x1024xf32>
    %126 = arith.maximumf %124, %125 : vector<8x1024xf32>
    %c0_22 = arith.constant 0 : index
    %c0_23 = arith.constant 0 : index
    %c0_24 = arith.constant 0 : index
    %127 = vector.load %arg6[%c0_22, %c0_23, %c0_24] : memref<1x8x1024xf32, #tpu.memory_space<vmem>>, vector<1x8x1024xf32>
    %128 = vector.shape_cast %127 : vector<1x8x1024xf32> to vector<8x1024xf32>
    %129 = vector.shape_cast %126 : vector<8x1024xf32> to vector<1x8x1024xf32>
    tpu.vector_store %arg6[%c0_22, %c0_23, %c0_24], %129 {strides = array<i32>} : memref<1x8x1024xf32, #tpu.memory_space<vmem>>, vector<1x8x1024xf32>,
    return
  }
  func.func @transform_0(%arg0: i32) -> (i32, i32, i32, i32) {
    %c0_i32 = arith.constant 0 : i32
    %c0_i32_0 = arith.constant 0 : i32
    %c0_i32_1 = arith.constant 0 : i32
    %c0_i32_2 = arith.constant 0 : i32
    return %arg0, %c0_i32, %c0_i32_0, %c0_i32_1 : i32, i32, i32, i32
  }
  func.func @transform_1(%arg0: i32) -> (i32, i32) {
    %c0_i32 = arith.constant 0 : i32
    %c0_i32_0 = arith.constant 0 : i32
    %c0_i32_1 = arith.constant 0 : i32
    return %c0_i32, %c0_i32_0 : i32, i32
  }
  func.func @transform_2(%arg0: i32) -> (i32, i32) {
    %c0_i32 = arith.constant 0 : i32
    %c0_i32_0 = arith.constant 0 : i32
    %c0_i32_1 = arith.constant 0 : i32
    return %c0_i32, %c0_i32_0 : i32, i32
  }
  func.func @transform_3(%arg0: i32) -> (i32, i32) {
    %c0_i32 = arith.constant 0 : i32
    %c0_i32_0 = arith.constant 0 : i32
    %c0_i32_1 = arith.constant 0 : i32
    return %c0_i32, %c0_i32_0 : i32, i32
  }
  func.func @transform_4(%arg0: i32) -> (i32, i32) {
    %c0_i32 = arith.constant 0 : i32
    %c0_i32_0 = arith.constant 0 : i32
    %c0_i32_1 = arith.constant 0 : i32
    return %c0_i32, %c0_i32_0 : i32, i32
  }
  func.func @transform_5(%arg0: i32) -> (i32, i32, i32) {
    %c0_i32 = arith.constant 0 : i32
    %c0_i32_0 = arith.constant 0 : i32
    %c0_i32_1 = arith.constant 0 : i32
    return %arg0, %c0_i32, %c0_i32_0 : i32, i32, i32
  }
}

</mosaic_0001>

<bundles_post_ra>
// kernel: deconv_layer_forward.1
= control target key start
LH: loop header
LB: loop body
LE: loop exit
PB: predicated region body
PF: predicated region fallthrough
CT: control target
= control target key end

     0   :  { %s5556_s18 = smov 0   ;;  %s8466_s0 = inlined_call_operand.vmem [shape: f32[2,4,16,16], index: 0, kind: input, shape index: {}]   ;;  %s8467_s1 = inlined_call_operand.vmem [shape: f32[16,34], index: 1, kind: input, shape index: {}]   ;;  %s8468_s2 = inlined_call_operand.vmem [shape: f32[34,16], index: 2, kind: input, shape index: {}]   ;;  %s8469_s3 = inlined_call_operand.vmem [shape: f32[8,36], index: 3, kind: input, shape index: {}]   ;;  %s8470_s4 = inlined_call_operand.vmem [shape: f32[8,3], index: 4, kind: input, shape index: {}]   ;;  %s8471_s5 = inlined_call_operand.vmem [shape: f32[2,8,1024], index: 5, kind: output, shape index: {}]  }
   0x1 LB: > { %s5003_s19 = sadd.s32 4294967295, %s5509_s18   ;;  %p5007_p0 = scmp.ge.s32.totalorder %s5509_s18, 1  ;;  %s5509_s18 = sphi %s5556_s18, %s15_s18  }
   0x2   : > { %p187_p1 = scmp.lt.s32.totalorder %s5509_s18, 3 }
   0x4   : > { %p188_p2 = pnand %p5007_p0, %p187_p1 }
   0x6   : > { %191 = sbr.rel (%p188_p2) target bundleno = 1784 (0x6f8), region = 40 }
   0xd   : > { %v233_v0 = vld [vmem:[%s8467_s1] sm:$0xff]  ;;  %v234_v1 = vld [vmem:[%s8467_s1 + $0x8] sm:$0xff]  ;;  %p215_p3 = scmp.lt.s32.totalorder %s5003_s19, 1  ;;  %vm240_vm0 = vcmask 130048   ;;  %v5511_v11 = vmov 0.0|0.0   ;;  %vm5512_vm1 = vmmov 0  }
   0xe   : > { %v5186_v2 = vpack.c.bf16 %v234_v1, %v233_v0  ;;  %5190 = vmatprep.subr.bf16.mxu1 %v5511_v11  ;;  %v8472_v12 = vmov 0.0   ;;  %v235_v17 = vld [vmem:[%s8468_s2] sm:$0xff]  ;;  %v236_v20 = vld [vmem:[%s8468_s2 + $0x8] sm:$0xff]  ;;  %v237_v24 = vld [vmem:[%s8468_s2 + $0x10] sm:$0xff]  ;;  %s5514_s13 = smov 126   ;;  %s5515_s14 = smov 127  }
   0xf   : > { %s8945_s19 = smov (!%p215_p3, %s5003_s19), 1  ;;  %5114 = vmatprep.mubr.msk.f32.mxu1 %vm5512_vm1, %v8472_v12  ;;  %v238_v28 = vld [vmem:[%s8468_s2 + $0x18] sm:$0xff]  ;;  %v239_v29 = vld [vmem:[%s8468_s2 + $0x20] sm:$0x3]  ;;  %vm774_vm2 = vcmask 1046528   ;;  %vm812_vm3 = vcmask 1045504  }
  0x10   : > { %5187 = vmatprep.subr.bf16.mxu0 %v5186_v2  ;;  %s5054_s24 = sshll.u32 %s8945_s19, 6  ;;  %vm935_vm4 = vcmask 1041408   ;;  %vm964_vm5 = vcmask 1040384   ;;  %s5516_s15 = smov 1   ;;  %vm4424_vm6 = vcmask 261120   ;;  %vm4430_vm7 = vcmask 523264  }
  0x11   : > { %5189 = vmatpush3.bf16.msra.mxu0 %v5186_v2  ;;  %s219_s27 = scalar_lea.vmem %s8466_s0, %s5054_s24  ;;  %s5519_s16 = smov 2   ;;  %vm4436_vm8 = vcmask 785408   ;;  %vm4558_vm9 = vcmask 1043456   ;;  %vm4554_vm10 = vcmask 293888  }
  0x12   : > { %v225_v3 = vld [vmem:[%s219_s27] sm:$0xff]  ;;  %v226_v4 = vld [vmem:[%s219_s27 + $0x8] sm:$0xff]  ;;  %v227_v5 = vld [vmem:[%s219_s27 + $0x10] sm:$0xff]  ;;  %5193 = vmatprep.subr.bf16.mxu0 %v5511_v11  ;;  %s5520_s17 = smov 32   ;;  %s5521_s20 = smov 64  }
  0x13   : > { %5098 = vmatprep.mubr.msk.f32.mxu0 %vm240_vm0, %v225_v3  ;;  %v228_v6 = vld [vmem:[%s219_s27 + $0x18] sm:$0xff]  ;;  %v229_v7 = vld [vmem:[%s219_s27 + $0x20] sm:$0xff]  ;;  %v230_v8 = vld [vmem:[%s219_s27 + $0x28] sm:$0xff]  ;;  %s5522_s21 = smov 96   ;;  %s224_s29 = scalar_lea.vmem %s8471_s5, %s5054_s24 }
  0x14   : > { %5099 = vmatmul.mubr.msk.f32.vlgmr.msra.gmra.mrb[0].mxu0 %vm240_vm0, %v226_v4  ;;  %v231_v9 = vld [vmem:[%s219_s27 + $0x30] sm:$0xff]  ;;  %v232_v10 = vld [vmem:[%s219_s27 + $0x38] sm:$0xff] }
  0x15   : > { %5101 = vmatprep.mubr.msk.f32.mxu0 %vm240_vm0, %v227_v5 }
  0x18   : > { %5102 = vmatmul.mubr.msk.f32.gmra.mrb[2].mxu0 %vm240_vm0, %v228_v6 }
  0x19   : > { %5104 = vmatprep.mubr.msk.f32.mxu0 %vm240_vm0, %v229_v7 }
  0x1c   : > { %5105 = vmatmul.mubr.msk.f32.gmra.mrb[4].mxu0 %vm240_vm0, %v230_v8 }
  0x1d   : > { %5107 = vmatprep.mubr.msk.f32.mxu0 %vm240_vm0, %v231_v9 }
  0x20   : > { %5108 = vmatmul.mubr.msk.f32.gmra.mrb[6].mxu0 %vm240_vm0, %v232_v10 }
  0x21   : > { %5133 = vmatprep.mubr.msk.f32.mxu0 %vm5512_vm1, %v8472_v12 }
  0xe7   : > { %v5100_v13 = vpop.f32.mrb[0].mxu0 }
  0xe8   : > { %v331_v14 = vpop.f32.mrb[1].mxu0 }
  0xe9   : > { %v5191_v15 = vpack.c.bf16 %v5100_v13, %v331_v14 }
  0xeb   : > { %v5103_v16 = vpop.f32.mrb[2].mxu0  ;;  %5192 = vmatpush3.bf16.msra.mxu1 %v5191_v15 }
  0xec   : > { %v341_v18 = vpop.f32.mrb[3].mxu0  ;;  %5196 = vmatprep.subr.bf16.mxu1 %v5511_v11 }
  0xed   : > { %v5194_v19 = vpack.c.bf16 %v5103_v16, %v341_v18 }
  0xee   : > { %5115 = vmatmul.mubr.msk.f32.vlgmr.msra.gmra.mrb[0].mxu1 %vm240_vm0, %v235_v17 }
  0xef   : > { %5195 = vmatpush3.bf16.msra.mxu0 %v5194_v19  ;;  %5117 = vmatprep.mubr.msk.f32.mxu1 %vm5512_vm1, %v8472_v12  ;;  %v5106_v21 = vpop.f32.mrb[4].mxu0 }
  0xf0   : > { %v351_v22 = vpop.f32.mrb[5].mxu0  ;;  %5199 = vmatprep.subr.bf16.mxu0 %v5511_v11 }
  0xf1   : > { %v5197_v23 = vpack.c.bf16 %v5106_v21, %v351_v22 }
  0xf2   : > { %5118 = vmatmul.mubr.msk.f32.gmra.mrb[2].mxu1 %vm240_vm0, %v236_v20  ;;  %5134 = vmatmul.mubr.msk.f32.vlgmr.msra.gmra.mrb[8].mxu0 %vm240_vm0, %v235_v17 }
  0xf3   : > { %5120 = vmatprep.mubr.msk.f32.mxu1 %vm5512_vm1, %v8472_v12  ;;  %5136 = vmatprep.mubr.msk.f32.mxu0 %vm5512_vm1, %v8472_v12  ;;  %v5109_v25 = vpop.f32.mrb[6].mxu0 }
  0xf4   : > { %5198 = vmatpush3.bf16.msra.mxu1 %v5197_v23  ;;  %v361_v26 = vpop.f32.mrb[7].mxu0 }
  0xf5   : > { %v5200_v27 = vpack.c.bf16 %v5109_v25, %v361_v26 }
  0xf6   : > { %5121 = vmatmul.mubr.msk.f32.gmra.mrb[4].mxu1 %vm240_vm0, %v237_v24  ;;  %5137 = vmatmul.mubr.msk.f32.gmra.mrb[10].mxu0 %vm240_vm0, %v236_v20 }
  0xf7   : > { %5139 = vmatprep.mubr.msk.f32.mxu0 %vm5512_vm1, %v8472_v12  ;;  %5123 = vmatprep.mubr.msk.f32.mxu1 %vm5512_vm1, %v8472_v12 }
  0xf8   : > { %5201 = vmatpush3.bf16.msra.mxu0 %v5200_v27 }
  0xfa   : > { %5140 = vmatmul.mubr.msk.f32.gmra.mrb[12].mxu0 %vm240_vm0, %v237_v24  ;;  %5124 = vmatmul.mubr.msk.f32.gmra.mrb[6].mxu1 %vm240_vm0, %v238_v28 }
  0xfb   : > { %5126 = vmatprep.mubr.msk.f32.mxu1 %vm5512_vm1, %v8472_v12  ;;  %5142 = vmatprep.mubr.msk.f32.mxu0 %vm5512_vm1, %v8472_v12 }
  0xfe   : > { %5127 = vmatmul.mubr.msk.f32.gmra.mrb[8].mxu1 %vm240_vm0, %v239_v29  ;;  %5143 = vmatmul.mubr.msk.f32.gmra.mrb[14].mxu0 %vm240_vm0, %v238_v28 }
  0xff   : > { %5145 = vmatprep.mubr.msk.f32.mxu0 %vm5512_vm1, %v8472_v12  ;;  %5152 = vmatprep.mubr.msk.f32.mxu1 %vm5512_vm1, %v8472_v12 }
 0x102   : > { %5146 = vmatmul.mubr.msk.f32.gmra.mrb[16].mxu0 %vm240_vm0, %v239_v29  ;;  %5153 = vmatmul.mubr.msk.f32.vlgmr.msra.gmra.mrb[10].mxu1 %vm240_vm0, %v235_v17 }
 0x103   : > { %5155 = vmatprep.mubr.msk.f32.mxu1 %vm5512_vm1, %v8472_v12  ;;  %5171 = vmatprep.mubr.msk.f32.mxu0 %vm5512_vm1, %v8472_v12 }
 0x106   : > { %5156 = vmatmul.mubr.msk.f32.gmra.mrb[12].mxu1 %vm240_vm0, %v236_v20  ;;  %5172 = vmatmul.mubr.msk.f32.vlgmr.msra.gmra.mrb[18].mxu0 %vm240_vm0, %v235_v17 }
 0x107   : > { %5158 = vmatprep.mubr.msk.f32.mxu1 %vm5512_vm1, %v8472_v12  ;;  %5174 = vmatprep.mubr.msk.f32.mxu0 %vm5512_vm1, %v8472_v12 }
 0x10a   : > { %5159 = vmatmul.mubr.msk.f32.gmra.mrb[14].mxu1 %vm240_vm0, %v237_v24  ;;  %5175 = vmatmul.mubr.msk.f32.gmra.mrb[20].mxu0 %vm240_vm0, %v236_v20 }
 0x10b   : > { %5161 = vmatprep.mubr.msk.f32.mxu1 %vm5512_vm1, %v8472_v12  ;;  %5177 = vmatprep.mubr.msk.f32.mxu0 %vm5512_vm1, %v8472_v12 }
 0x10e   : > { %5162 = vmatmul.mubr.msk.f32.gmra.mrb[16].mxu1 %vm240_vm0, %v238_v28  ;;  %5178 = vmatmul.mubr.msk.f32.gmra.mrb[22].mxu0 %vm240_vm0, %v237_v24 }
 0x10f   : > { %5164 = vmatprep.mubr.msk.f32.mxu1 %vm5512_vm1, %v8472_v12  ;;  %5180 = vmatprep.mubr.msk.f32.mxu0 %vm5512_vm1, %v8472_v12 }
 0x112   : > { %5165 = vmatmul.mubr.msk.f32.gmra.mrb[18].mxu1 %vm240_vm0, %v239_v29  ;;  %5181 = vmatmul.mubr.msk.f32.gmra.mrb[24].mxu0 %vm240_vm0, %v238_v28 }
 0x113   : > { %5183 = vmatprep.mubr.msk.f32.mxu0 %vm5512_vm1, %v8472_v12  ;;  %4647 = vmatprep.mubr.f32.mxu1 %v8472_v12 }
 0x116   : > { %5184 = vmatmul.mubr.msk.f32.gmra.mrb[26].mxu0 %vm240_vm0, %v239_v29 }
 0x117   : > { %4789 = vmatprep.mubr.f32.mxu0 %v8472_v12 }
 0x1c1   : > { %v5663_v30 = vpop.f32.mrb[0].mxu1 }
 0x1c2   : > { %761 = vrot.lane.b32.xlu1 %v5663_v30, %s5514_s13  ;;  %749 = vrot.lane.b32.xlu0 %v5663_v30, %s5515_s14  ;;  %v5116_v31 = vpop.f32.mrb[1].mxu1  ;;  %v775_v35 = vrot.slane %v5663_v30, 1  ;;  %v813_v37 = vrot.slane %v5663_v30, 2 }
 0x1c5   : > { %v5669_v32 = vpop.f32.mrb[2].mxu1  ;;  %v5671_v33 = vpop.f32.mrb[8].mxu0 }
 0x1c6   : > { %8620 = vst [vmem:[#allocation2_spill] sm:$0xff] %v5669_v32  ;;  %8621 = vst [vmem:[#allocation3_spill] sm:$0xff] %v5671_v33  ;;  %751 = vrot.lane.b32.xlu1 %v5669_v32, %s5515_s14  ;;  %854 = vrot.lane.b32.xlu0 %v5671_v33, %s5515_s14  ;;  %v5119_v34 = vpop.f32.mrb[3].mxu1  ;;  %v776_v36 = vrot.slane %v5669_v32, 1  ;;  %v814_v38 = vrot.slane %v5669_v32, 2  ;;  %v5135_v39 = vpop.f32.mrb[9].mxu0 }
 0x1c7   : > { %v879_v42 = vrot.slane %v5671_v33, 1  ;;  %v916_v43 = vrot.slane %v5671_v33, 2 }
 0x1c8   : > { %v5682_v40 = vsel %vm774_vm2, %v775_v35, %v776_v36  ;;  %v5685_v41 = vsel %vm812_vm3, %v813_v37, %v814_v38 }
 0x1c9   : > { %8622 = vst [vmem:[#allocation4_spill] sm:$0xff] %v5685_v41  ;;  %v5689_v44 = vpop.f32.mrb[4].mxu1  ;;  %v5691_v45 = vpop.f32.mrb[10].mxu0 }
 0x1ca   : > { %8623 = vst [vmem:[#allocation5_spill] sm:$0xff] %v5689_v44  ;;  %8624 = vst [vmem:[#allocation6_spill] sm:$0xff] %v5691_v45  ;;  %800 = vrot.lane.b32.xlu1 %v5682_v40, %s5514_s13  ;;  %866 = vrot.lane.b32.xlu0 %v5671_v33, %s5514_s13  ;;  %v5138_v46 = vpop.f32.mrb[11].mxu0  ;;  %v5122_v47 = vpop.f32.mrb[5].mxu1  ;;  %v880_v48 = vrot.slane %v5691_v45, 1  ;;  %v917_v49 = vrot.slane %v5691_v45, 2 }
 0x1cb   : > { %v778_v50 = vrot.slane %v5689_v44, 1  ;;  %v816_v51 = vrot.slane %v5689_v44, 2 }
 0x1cc   : > { %v5702_v52 = vsel %vm774_vm2, %v879_v42, %v880_v48  ;;  %v5705_v53 = vsel %vm812_vm3, %v916_v43, %v917_v49 }
 0x1cd   : > { %8625 = vst [vmem:[#allocation7_spill] sm:$0xff] %v5702_v52  ;;  %8626 = vst [vmem:[#allocation8_spill] sm:$0xff] %v5705_v53  ;;  %v5708_v54 = vsel %vm774_vm2, %v776_v36, %v778_v50  ;;  %v5711_v55 = vsel %vm812_vm3, %v814_v38, %v816_v51  ;;  %v5713_v56 = vpop.f32.mrb[12].mxu0  ;;  %v5715_v57 = vpop.f32.mrb[6].mxu1 }
 0x1ce   : > { %8627 = vst [vmem:[#allocation9_spill] sm:$0xff] %v5708_v54  ;;  %838 = vrot.lane.b32.xlu1 %v5685_v41, %s5514_s13  ;;  %763 = vrot.lane.b32.xlu0 %v5669_v32, %s5514_s13  ;;  %v5125_v58 = vpop.f32.mrb[7].mxu1  ;;  %v5141_v59 = vpop.f32.mrb[13].mxu0  ;;  %v882_v60 = vrot.slane %v5713_v56, 1  ;;  %v780_v61 = vrot.slane %v5715_v57, 1  ;;  %v818_v62 = vrot.slane %v5715_v57, 2 }
 0x1cf   : > { %v919_v63 = vrot.slane %v5713_v56, 2 }
 0x1d0   : > { %v5726_v0 = vsel %vm774_vm2, %v880_v48, %v882_v60  ;;  %v5729_v1 = vsel %vm774_vm2, %v778_v50, %v780_v61  ;;  %v5732_v2 = vsel %vm812_vm3, %v816_v51, %v818_v62 }
 0x1d1   : > { %v5735_v3 = vsel %vm812_vm3, %v917_v49, %v919_v63  ;;  %v471_v4 = vpop.f32.mrb[8].mxu1  ;;  %v5737_v5 = vpop.f32.mrb[14].mxu0 }
 0x1d2   : > { %8628 = vst [vmem:[#allocation10_spill] sm:$0xff] %v5737_v5  ;;  %788 = vrot.lane.b32.xlu0 %v5682_v40, %s5515_s14  ;;  %868 = vrot.lane.b32.xlu1 %v5691_v45, %s5514_s13  ;;  %v782_v6 = vrot.slane %v471_v4, 1  ;;  %v820_v7 = vrot.slane %v471_v4, 2  ;;  %v5144_v8 = vpop.f32.mrb[15].mxu0  ;;  %v884_v9 = vrot.slane %v5737_v5, 1  ;;  %v5128_v10 = vpop.f32.mrb[9].mxu1 }
 0x1d3   : > { %v921_v11 = vrot.slane %v5737_v5, 2 }
 0x1d4   : > { %v5746_v13 = vsel %vm774_vm2, %v882_v60, %v884_v9  ;;  %v5749_v14 = vsel %vm774_vm2, %v780_v61, %v782_v6  ;;  %v5752_v15 = vsel %vm812_vm3, %v818_v62, %v820_v7 }
 0x1d5   : > { %8629 = vst [vmem:[#allocation11_spill] sm:$0xff] %v5746_v13  ;;  %8630 = vst [vmem:[#allocation12_spill] sm:$0xff] %v5752_v15  ;;  %v5755_v16 = vsel %vm812_vm3, %v919_v63, %v921_v11  ;;  %v5757_v17 = vpop.f32.mrb[16].mxu0  ;;  %v5759_v18 = vpop.f32.mrb[10].mxu1 }
 0x1d6   : > { %8631 = vst [vmem:[#allocation13_spill] sm:$0xff] %v5755_v16  ;;  %826 = vrot.lane.b32.xlu0 %v5685_v41, %s5515_s14  ;;  %765 = vrot.lane.b32.xlu1 %v5689_v44, %s5514_s13  ;;  %v886_v19 = vrot.slane %v5757_v17, 1  ;;  %v923_v20 = vrot.slane %v5757_v17, 2  ;;  %v5154_v21 = vpop.f32.mrb[11].mxu1  ;;  %v5147_v22 = vpop.f32.mrb[17].mxu0  ;;  %v5768_v23 = vrot.slane %v5759_v18, 7 }
 0x1d7   : > { %v5771_v24 = vrot.slane %v5759_v18, 6  ;;  %v1166_v29 = vrot.slane %v5759_v18, 2 }
 0x1d8   : > { %v5774_v25 = vsel %vm774_vm2, %v884_v9, %v886_v19  ;;  %v5777_v26 = vsel %vm812_vm3, %v921_v11, %v923_v20  ;;  %v1139_v39 = vrot.slane %v5768_v23, 2 }
 0x1d9   : > { %8632 = vst [vmem:[#allocation14_spill] sm:$0xff] %v5774_v25  ;;  %8633 = vst [vmem:[#allocation15_spill] sm:$0xff] %v5777_v26  ;;  %v5779_v27 = vpop.f32.mrb[12].mxu1  ;;  %v721_v28 = vpop.f32.mrb[18].mxu0 }
 0x1da   : > { %856 = vrot.lane.b32.xlu0 %v5691_v45, %s5515_s14  ;;  %892 = vrot.lane.b32.xlu1 %v5702_v52, %s5515_s14  ;;  %v5157_v31 = vpop.f32.mrb[13].mxu1  ;;  %v937_v34 = vrot.slane %v5779_v27, 6  ;;  %v966_v35 = vrot.slane %v5779_v27, 7  ;;  %v5788_v36 = vrot.slane %v721_v28, 6  ;;  %v5790_v37 = vrot.slane %v721_v28, 7  ;;  %v5173_v38 = vpop.f32.mrb[19].mxu0 }
 0x1db   : > { %v1167_v42 = vrot.slane %v5779_v27, 2  ;;  %v1065_v47 = vrot.slane %v721_v28, 1 }
 0x1dc   : > { %v5796_v43 = vsel %vm935_vm4, %v5771_v24, %v937_v34  ;;  %v5800_v46 = vsel %vm964_vm5, %v5768_v23, %v966_v35  ;;  %v1193_v58 = vrot.slane %v5788_v36, 2  ;;  %v1220_v59 = vrot.slane %v5790_v37, 2 }
 0x1dd   : > { %v5802_v48 = vpop.f32.mrb[14].mxu1  ;;  %v8474_v49 = vrot.slane %v5800_v46, 2  ;;  %v726_v50 = vpop.f32.mrb[20].mxu0  ;;  %v5806_v51 = vsel %vm812_vm3, %v1166_v29, %v1167_v42 }
 0x1de   : > { %8634 = vst [vmem:[#allocation16_spill] sm:$0xff] %v5806_v51  ;;  %753 = vrot.lane.b32.xlu0 %v5689_v44, %s5515_s14  ;;  %1229 = vrot.lane.b32.xlu1 %v5705_v53, %s5515_s14  ;;  %v5160_v60 = vpop.f32.mrb[15].mxu1  ;;  %v1019_v61 = vrot.slane %v726_v50, 6  ;;  %v1047_v62 = vrot.slane %v726_v50, 7  ;;  %v1066_v63 = vrot.slane %v726_v50, 1  ;;  %v5176_v4 = vpop.f32.mrb[21].mxu0 }
 0x1df   : > { %v939_v6 = vrot.slane %v5802_v48, 6  ;;  %v5819_v8 = vsel %vm812_vm3, %v1139_v39, %v8474_v49  ;;  %v968_v9 = vrot.slane %v5802_v48, 7  ;;  %v1169_v10 = vrot.slane %v5802_v48, 2 }
 0x1e0   : > { %v5825_v11 = vsel %vm935_vm4, %v5788_v36, %v1019_v61  ;;  %v5829_v19 = vsel %vm964_vm5, %v5790_v37, %v1047_v62  ;;  %v5835_v21 = vsel %vm774_vm2, %v1065_v47, %v1066_v63  ;;  %v8645_v51 = vrot.slane %v5800_v46, 2 }
 0x1e1   : > { %v5832_v20 = vsel %vm935_vm4, %v937_v34, %v939_v6  ;;  %v5837_v22 = vpop.f32.mrb[16].mxu1  ;;  %v5839_v28 = vpop.f32.mrb[22].mxu0  ;;  %v1194_v29 = vrot.slane %v5825_v11, 2  ;;  %v1221_v31 = vrot.slane %v5829_v19, 2  ;;  %v5845_v39 = vsel %vm964_vm5, %v966_v35, %v968_v9 }
 0x1e2   : > { %v1115_v38 = vrot.slane %v5832_v20, 2  ;;  %904 = vrot.lane.b32.xlu0 %v5702_v52, %s5514_s13  ;;  %790 = vrot.lane.b32.xlu1 %v5708_v54, %s5515_s14  ;;  %v5163_v34 = vpop.f32.mrb[17].mxu1  ;;  %v1021_v47 = vrot.slane %v5839_v28, 6  ;;  %v1049_v50 = vrot.slane %v5839_v28, 7  ;;  %v1068_v60 = vrot.slane %v5839_v28, 1  ;;  %v5179_v4 = vpop.f32.mrb[23].mxu0 }
 0x1e3   : > { %v1142_v12 = vrot.slane %v5845_v39, 2  ;;  %v5856_v49 = vsel %vm812_vm3, %v1167_v42, %v1169_v10  ;;  %v5859_v35 = vrot.slane %v5837_v22, 6  ;;  %v5862_v7 = vsel %vm812_vm3, %v1193_v58, %v1194_v29 }
 0x1e4   : > { %8635 = vst [vmem:[#allocation17_spill] sm:$0xff] %v5862_v7  ;;  %v8636_v34 = vrot.slane %v5796_v43, 2  ;;  %v5870_v45 = vsel %vm774_vm2, %v1066_v63, %v1068_v60  ;;  %v5873_v28 = vsel %vm935_vm4, %v1019_v61, %v1021_v47  ;;  %v5876_v42 = vsel %vm964_vm5, %v1047_v62, %v1049_v50 }
 0x1e5   : > { %8638 = vst [vmem:[#allocation19_spill] sm:$0xff] %v5870_v45  ;;  %8639 = vst [vmem:[#allocation20_spill] sm:$0xff] %v5873_v28  ;;  %v970_v4 = vrot.slane %v5837_v22, 7  ;;  %v5879_v52 = vpop.f32.mrb[18].mxu1  ;;  %v736_v58 = vpop.f32.mrb[24].mxu0  ;;  %v1196_v53 = vrot.slane %v5873_v28, 2  ;;  %v5888_v63 = vsel %vm812_vm3, %v1220_v59, %v1221_v31  ;;  %v5907_v41 = vsel %vm812_vm3, %v8645_v51, %v1142_v12 }
 0x1e6   : > { %v5867_v44 = vsel %vm812_vm3, %v8636_v34, %v1115_v38  ;;  %8640 = vst [vmem:[#allocation21_spill] sm:$0xff] %v5876_v42  ;;  %8641 = vst [vmem:[#allocation22_spill] sm:$0xff] %v5879_v52  ;;  %v1223_v7 = vrot.slane %v5876_v42, 2  ;;  %v5885_v34 = vsel %vm935_vm4, %v939_v6, %v5859_v35  ;;  %802 = vrot.lane.b32.xlu0 %v5708_v54, %s5514_s13  ;;  %828 = vrot.lane.b32.xlu1 %v5711_v55, %s5515_s14  ;;  %v5166_v32 = vpop.f32.mrb[19].mxu1 }
 0x1e7   : > { %8637 = vst [vmem:[#allocation18_spill] sm:$0xff] %v5867_v44  ;;  %8642 = vst [vmem:[#allocation23_spill] sm:$0xff] %v5885_v34  ;;  %v972_v61 = vrot.slane %v5879_v52, 7  ;;  %v1173_v62 = vrot.slane %v5879_v52, 2  ;;  %v5896_v28 = vrot.slane %v736_v58, 6  ;;  %v1051_v42 = vrot.slane %v736_v58, 7 }
 0x1e8   : > { %8643 = vst [vmem:[#allocation24_spill] sm:$0xff] %v5888_v63  ;;  %v5182_v44 = vpop.f32.mrb[25].mxu0  ;;  %v1070_v6 = vrot.slane %v736_v58, 1  ;;  %v1117_v33 = vrot.slane %v5885_v34, 2  ;;  %v5900_v59 = vsel %vm964_vm5, %v968_v9, %v970_v4  ;;  %v1171_v63 = vrot.slane %v5837_v22, 2  ;;  %8646 = vst [vmem:[#allocation26_spill] sm:$0xff] %v5907_v41 }
 0x1e9   : > { %8644 = vst [vmem:[#allocation25_spill] sm:$0xff] %v5900_v59  ;;  %v1144_v54 = vrot.slane %v5900_v59, 2  ;;  %v1439_v52 = vrot.slane %v5835_v21, 1  ;;  %v1440_v44 = vrot.slane %v5870_v45, 1  ;;  %v741_v32 = vpop.f32.mrb[26].mxu0  ;;  %v5915_v9 = vsel %vm812_vm3, %v1221_v31, %v1223_v7 }
 0x1ea   : > { %v5912_v58 = vsel %vm812_vm3, %v1169_v10, %v1171_v63  ;;  %8648 = vst [vmem:[#allocation28_spill] sm:$0xff] %v5915_v9  ;;  %v5918_v34 = vsel %vm812_vm3, %v1115_v38, %v1117_v33  ;;  %v1119_v59 = vrot.slane %v5859_v35, 2  ;;  %840 = vrot.lane.b32.xlu0 %v5711_v55, %s5514_s13  ;;  %755 = vrot.lane.b32.xlu1 %v5715_v57, %s5515_s14  ;;  %v1053_v51 = vrot.slane %v741_v32, 7  ;;  %v5185_v38 = vpop.f32.mrb[27].mxu0 }
 0x1eb   : > { %8647 = vst [vmem:[#allocation27_spill] sm:$0xff] %v5912_v58  ;;  %8649 = vst [vmem:[#allocation29_spill] sm:$0xff] %v5918_v34  ;;  %v5925_v41 = vrot.slane %v741_v32, 1  ;;  %v5928_v10 = vsel %vm774_vm2, %v1439_v52, %v1440_v44  ;;  %v5932_v31 = vsel %vm935_vm4, %v1021_v47, %v5896_v28  ;;  %v5939_v58 = vsel %vm812_vm3, %v1194_v29, %v1196_v53 }
 0x1ec   : > { %8651 = vst [vmem:[#allocation31_spill] sm:$0xff] %v5928_v10  ;;  %8652 = vst [vmem:[#allocation32_spill] sm:$0xff] %v5932_v31  ;;  %v5935_v34 = vsel %vm812_vm3, %v1117_v33, %v1119_v59  ;;  %v1198_v9 = vrot.slane %v5932_v31, 2  ;;  %v5942_v45 = vsel %vm964_vm5, %v1049_v50, %v1051_v42  ;;  %v5946_v52 = vsel %vm812_vm3, %v1142_v12, %v1144_v54 }
 0x1ed   : > { %8650 = vst [vmem:[#allocation30_spill] sm:$0xff] %v5925_v41  ;;  %8653 = vst [vmem:[#allocation33_spill] sm:$0xff] %v5935_v34  ;;  %v1225_v32 = vrot.slane %v5942_v45, 2  ;;  %v5949_v47 = vsel %vm774_vm2, %v1068_v60, %v1070_v6  ;;  %v5952_v38 = vsel %vm964_vm5, %v970_v4, %v972_v61  ;;  %v5957_v29 = vsel %vm812_vm3, %v1171_v63, %v1173_v62 }
 0x1ee   : > { %8654 = vst [vmem:[#allocation34_spill] sm:$0xff] %v5939_v58  ;;  %8655 = vst [vmem:[#allocation35_spill] sm:$0xff] %v5942_v45  ;;  %v1442_v33 = vrot.slane %v5949_v47, 1  ;;  %v1146_v59 = vrot.slane %v5952_v38, 2  ;;  %v5960_v50 = vsel %vm812_vm3, %v1196_v53, %v1198_v9  ;;  %858 = vrot.lane.b32.xlu0 %v5713_v56, %s5515_s14  ;;  %906 = vrot.lane.b32.xlu1 %v5726_v0, %s5514_s13  ;;  %v1200_v63 = vrot.slane %v5896_v28, 2 }
 0x1ef   : > { %8656 = vst [vmem:[#allocation36_spill] sm:$0xff] %v5946_v52  ;;  %8657 = vst [vmem:[#allocation37_spill] sm:$0xff] %v5949_v47  ;;  %v5967_v12 = vsel %vm812_vm3, %v1223_v7, %v1225_v32  ;;  %v5970_v60 = vsel %vm964_vm5, %v1051_v42, %v1053_v51  ;;  %v5974_v4 = vsel %vm774_vm2, %v1070_v6, %v5925_v41  ;;  %v1501_v51 = vlaneseq }
 0x1f0   : > { %8658 = vst [vmem:[#allocation38_spill] sm:$0xff] %v5952_v38  ;;  %8659 = vst [vmem:[#allocation39_spill] sm:$0xff] %v5957_v29  ;;  %v5978_v53 = vsel %vm774_vm2, %v1440_v44, %v1442_v33  ;;  %v1227_v61 = vrot.slane %v5970_v60, 2  ;;  %v5982_v62 = vsel %vm812_vm3, %v1144_v54, %v1146_v59  ;;  %v1444_v7 = vrot.slane %v5974_v4, 1 }
 0x1f1   : > { %8660 = vst [vmem:[#allocation40_spill] sm:$0xff] %v5960_v50  ;;  %8661 = vst [vmem:[#allocation41_spill] sm:$0xff] %v5967_v12  ;;  %v5986_v50 = vsel %vm812_vm3, %v1198_v9, %v1200_v63  ;;  %v1446_v54 = vrot.slane %v5925_v41, 1  ;;  %v5517_v9 = vmov 1983009808   ;;  %v1502_v59 = vshrl.u32 %v1501_v51, 7 }
 0x1f2   : > { %8662 = vst [vmem:[#allocation42_spill] sm:$0xff] %v5970_v60  ;;  %8663 = vst [vmem:[#allocation43_spill] sm:$0xff] %v5974_v4  ;;  %v5989_v42 = vsel %vm812_vm3, %v1225_v32, %v1227_v61  ;;  %v5992_v6 = vsel %vm774_vm2, %v1442_v33, %v1444_v7  ;;  %870 = vrot.lane.b32.xlu0 %v5713_v56, %s5514_s13  ;;  %804 = vrot.lane.b32.xlu1 %v5729_v1, %s5514_s13  ;;  %v8682_v12 = vld [vmem:[#allocation2_spill] sm:$0xff] }
 0x1f3   : > { %8664 = vst [vmem:[#allocation44_spill] sm:$0xff] %v5978_v53  ;;  %8665 = vst [vmem:[#allocation45_spill] sm:$0xff] %v5982_v62  ;;  %v6012_v44 = vsel %vm774_vm2, %v1444_v7, %v1446_v54  ;;  %v5518_v7 = vmov 1934713408   ;;  %v8677_v62 = vld [vmem:[#allocation3_spill] sm:$0xff] }
 0x1f4   : > { %8666 = vst [vmem:[#allocation46_spill] sm:$0xff] %v5986_v50  ;;  %8667 = vst [vmem:[#allocation47_spill] sm:$0xff] %v5989_v42  ;;  %v1563_v54 = vunpack.c.l.s4 %v5518_v7 }
 0x1f5   : > { %8668 = vst [vmem:[#allocation48_spill] sm:$0xff] %v5992_v6  ;;  %8669 = vst [vmem:[#allocation49_spill] sm:$0xff] %v6012_v44 }
 0x1f6   : > { %767 = vrot.lane.b32.xlu0 %v5715_v57, %s5514_s13  ;;  %842 = vrot.lane.b32.xlu1 %v5732_v2, %s5514_s13 }
 0x1fa   : > { %894 = vrot.lane.b32.xlu0 %v5726_v0, %s5515_s14  ;;  %872 = vrot.lane.b32.xlu1 %v5737_v5, %s5514_s13 }
 0x1fe   : > { %1231 = vrot.lane.b32.xlu0 %v5735_v3, %s5515_s14  ;;  %896 = vrot.lane.b32.xlu1 %v5746_v13, %s5515_s14 }
 0x202   : > { %792 = vrot.lane.b32.xlu0 %v5729_v1, %s5515_s14  ;;  %794 = vrot.lane.b32.xlu1 %v5749_v14, %s5515_s14 }
 0x206   : > { %830 = vrot.lane.b32.xlu0 %v5732_v2, %s5515_s14  ;;  %832 = vrot.lane.b32.xlu1 %v5752_v15, %s5515_s14 }
 0x20a   : > { %860 = vrot.lane.b32.xlu0 %v5737_v5, %s5515_s14  ;;  %943 = vrot.lane.b32.xlu1 %v5771_v24, %s5516_s15  ;;  %v8683_v5 = vrot.slane %v5796_v43, 2 }
 0x20e   : > { %908 = vrot.lane.b32.xlu0 %v5746_v13, %s5514_s13  ;;  %910 = vrot.lane.b32.xlu1 %v5774_v25, %s5514_s13 }
 0x212   : > { %806 = vrot.lane.b32.xlu0 %v5749_v14, %s5514_s13  ;;  %996 = vrot.lane.b32.xlu1 %v5779_v27, %s5516_s15 }
 0x216   : > { %844 = vrot.lane.b32.xlu0 %v5752_v15, %s5514_s13  ;;  %1006 = vrot.lane.b32.xlu1 %v5779_v27, %s5515_s14 }
 0x21a   : > { %1233 = vrot.lane.b32.xlu0 %v5755_v16, %s5515_s14  ;;  %945 = vrot.lane.b32.xlu1 %v5796_v43, %s5516_s15 }
 0x21e   : > { %994 = vrot.lane.b32.xlu0 %v5759_v18, %s5516_s15  ;;  %955 = vrot.lane.b32.xlu1 %v5796_v43, %s5515_s14 }
 0x222   : > { %1004 = vrot.lane.b32.xlu0 %v5759_v18, %s5515_s14  ;;  %976 = vrot.lane.b32.xlu1 %v5800_v46, %s5516_s15 }
 0x226   : > { %929 = vrot.lane.b32.xlu0 %v5757_v17, %s5515_s14  ;;  %986 = vrot.lane.b32.xlu1 %v5800_v46, %s5515_s14 }
 0x22a   : > { %953 = vrot.lane.b32.xlu0 %v5771_v24, %s5515_s14  ;;  %998 = vrot.lane.b32.xlu1 %v5802_v48, %s5516_s15 }
 0x22e   : > { %974 = vrot.lane.b32.xlu0 %v5768_v23, %s5516_s15  ;;  %1277 = vrot.lane.b32.xlu1 %v5819_v8, %s5515_s14  ;;  %v1499_v8 = vunpack.c.l.s4 %v5517_v9 }
 0x230   : > { %v1500_v33 = vunpack.c.0.s8 %v1499_v8 }
 0x232   : > { %984 = vrot.lane.b32.xlu0 %v5768_v23, %s5515_s14  ;;  %1027 = vrot.lane.b32.xlu1 %v5825_v11, %s5516_s15  ;;  %v6086_v61 = vsub.s32 %v1500_v33, %v1502_v59  ;;  %v1564_v33 = vunpack.c.0.s8 %v1563_v54 }
 0x234   : > { %v762_v17 = vpop.permute.xlu1 %761  ;;  %v750_v18 = vpop.permute.xlu0 %749  ;;  %8671 = vst [vmem:[#allocation51_spill] sm:$0xff] %v6086_v61 }
 0x235   : > { %v1497_v9 = vcombine.high %v5663_v30, %v762_v17  ;;  %v1512_v8 = vcombine.low %v750_v18, %v5682_v40  ;;  %v1513_v51 = vcombine.high %v750_v18, %v5682_v40  ;;  %v8672_v18 = vld [vmem:[#allocation4_spill] sm:$0xff] }
 0x236   : > { %898 = vrot.lane.b32.xlu0 %v5774_v25, %s5515_s14  ;;  %1037 = vrot.lane.b32.xlu1 %v5825_v11, %s5515_s14 }
 0x237   : > { %v6104_v7 = vrot.slane %v1497_v9, %v6086_v61  ;;  %v6107_v42 = vrot.slane %v1512_v8, %v6086_v61  ;;  %v8673_v9 = vld [vmem:[#allocation16_spill] sm:$0xff]  ;;  %v6120_v8 = vsub.s32 %v1564_v33, %v1502_v59 }
 0x238   : > { %v6070_v27 = vpop.permute.xlu1 %751  ;;  %v6072_v46 = vpop.permute.xlu0 %854 }
 0x239   : > { %8670 = vst [vmem:[#allocation50_spill] sm:$0xff] %v6072_v46  ;;  %8674 = vst [vmem:[#allocation4_spill] sm:$0xff] %v6120_v8 }
 0x23a   : > { %1235 = vrot.lane.b32.xlu0 %v5777_v26, %s5515_s14  ;;  %1057 = vrot.lane.b32.xlu1 %v5829_v19, %s5516_s15  ;;  %v1496_v19 = vcombine.low %v5663_v30, %v762_v17  ;;  %v6110_v30 = vrot.slane %v1513_v51, %v6086_v61 }
 0x23c   : > { %v801_v23 = vpop.permute.xlu1 %800  ;;  %v6078_v32 = vpop.permute.xlu0 %866 }
 0x23d   : > { %v1648_v60 = vcombine.low %v8677_v62, %v6078_v32 }
 0x23e   : > { %1025 = vrot.lane.b32.xlu0 %v5788_v36, %s5516_s15  ;;  %947 = vrot.lane.b32.xlu1 %v5832_v20, %s5516_s15 }
 0x240   : > { %v839_v11 = vpop.permute.xlu1 %838  ;;  %v6084_v63 = vpop.permute.xlu0 %763 }
 0x241   : > { %v2108_v25 = vcombine.low %v8682_v12, %v6084_v63  ;;  %v2109_v41 = vcombine.high %v8682_v12, %v6084_v63  ;;  %v8685_v63 = vld [vmem:[#allocation8_spill] sm:$0xff] }
 0x242   : > { %1035 = vrot.lane.b32.xlu0 %v5788_v36, %s5515_s14  ;;  %978 = vrot.lane.b32.xlu1 %v5845_v39, %s5516_s15  ;;  %v6101_v36 = vrot.slane %v1496_v19, %v6086_v61 }
 0x243   : > { %v6216_v29 = vrot.slane %v2109_v41, %v6086_v61  ;;  %v8687_v41 = vld [vmem:[#allocation18_spill] sm:$0xff] }
 0x244   : > { %v789_v44 = vpop.permute.xlu0 %788  ;;  %v6096_v6 = vpop.permute.xlu1 %868  ;;  %v1560_v51 = vcombine.low %v6101_v36, %v6107_v42 }
 0x245   : > { %v1529_v54 = vcombine.high %v789_v44, %v8672_v18 }
 0x246   : > { %1055 = vrot.lane.b32.xlu0 %v5790_v37, %s5516_s15  ;;  %1303 = vrot.lane.b32.xlu1 %v5856_v49, %s5515_s14  ;;  %v1528_v37 = vcombine.low %v789_v44, %v8672_v18  ;;  %v1576_v49 = vcombine.low %v6104_v7, %v6110_v30  ;;  %v1112_v18 = vrot.slane %v5771_v24, 2 }
 0x247   : > { %v6132_v44 = vrot.slane %v1529_v54, %v6086_v61 }
 0x248   : > { %v827_v40 = vpop.permute.xlu0 %826  ;;  %v6114_v17 = vpop.permute.xlu1 %765  ;;  %v6129_v4 = vrot.slane %v1528_v37, %v6086_v61  ;;  %v6157_v24 = vrot.slane %v1576_v49, %v6120_v8  ;;  %v1649_v49 = vcombine.high %v8677_v62, %v6078_v32  ;;  %v6200_v32 = vrot.slane %v1648_v60, %v6086_v61 }
 0x249   : > { %v1544_v19 = vcombine.low %v801_v23, %v827_v40  ;;  %v1545_v50 = vcombine.high %v801_v23, %v827_v40 }
 0x24a   : > { %1301 = vrot.lane.b32.xlu0 %v8673_v9, %s5515_s14  ;;  %1000 = vrot.lane.b32.xlu1 %v5837_v22, %s5516_s15  ;;  %v1632_v9 = vcombine.low %v839_v11, %v6072_v46  ;;  %8676 = vst [vmem:[#allocation52_spill] sm:$0xff] %v6157_v24 }
 0x24b   : > { %v6135_v23 = vrot.slane %v1544_v19, %v6086_v61  ;;  %v6138_v59 = vrot.slane %v1545_v50, %v6086_v61  ;;  %v6151_v19 = vrot.slane %v1560_v51, %v6120_v8  ;;  %v1633_v50 = vcombine.high %v839_v11, %v6072_v46  ;;  %v8681_v11 = vld [vmem:[#allocation9_spill] sm:$0xff] }
 0x24c   : > { %v6140_v33 = vpop.permute.xlu0 %856  ;;  %v893_v40 = vpop.permute.xlu1 %892  ;;  %v2124_v46 = vcombine.low %v6070_v27, %v8681_v11  ;;  %v2125_v62 = vcombine.high %v6070_v27, %v8681_v11  ;;  %v1577_v27 = vcombine.high %v6104_v7, %v6110_v30  ;;  %v1663_v11 = vrot.slane %v1649_v49, %v6086_v61 }
 0x24d   : > { %v1592_v37 = vcombine.low %v6129_v4, %v6135_v23  ;;  %v1608_v54 = vcombine.low %v6132_v44, %v6138_v59  ;;  %8675 = vst [vmem:[#allocation16_spill] sm:$0xff] %v6151_v19  ;;  %v6193_v43 = vrot.slane %v1633_v50, %v6086_v61  ;;  %v1609_v58 = vcombine.high %v6132_v44, %v6138_v59 }
 0x24e   : > { %1008 = vrot.lane.b32.xlu0 %v5802_v48, %s5515_s14  ;;  %951 = vrot.lane.b32.xlu1 %v5859_v35, %s5516_s15  ;;  %v6207_v50 = vrot.slane %v2124_v46, %v6086_v61  ;;  %v6223_v46 = vrot.slane %v2125_v62, %v6086_v61 }
 0x24f   : > { %v6162_v53 = vrot.slane %v1592_v37, %v6120_v8  ;;  %v6165_v26 = vrot.slane %v1608_v54, %v6120_v8  ;;  %v1114_v37 = vsel %vm812_vm3, %v1112_v18, %v8683_v5  ;;  %v6181_v54 = vrot.slane %v1632_v9, %v6086_v61  ;;  %v8684_v5 = vld [vmem:[#allocation17_spill] sm:$0xff] }
 0x250   : > { %v6167_v48 = vpop.permute.xlu0 %753  ;;  %v6169_v51 = vpop.permute.xlu1 %1229  ;;  %v1680_v18 = vcombine.low %v893_v40, %v8685_v63  ;;  %v1681_v9 = vcombine.high %v893_v40, %v8685_v63  ;;  %v8686_v40 = vld [vmem:[#allocation7_spill] sm:$0xff] }
 0x251   : > { %8678 = vst [vmem:[#allocation3_spill] sm:$0xff] %v6162_v53  ;;  %8679 = vst [vmem:[#allocation53_spill] sm:$0xff] %v6165_v26  ;;  %v1696_v60 = vcombine.low %v6181_v54, %v6200_v32  ;;  %v1697_v52 = vcombine.high %v6181_v54, %v6200_v32  ;;  %v2737_v16 = vcombine.high %v6167_v48, %v5729_v1 }
 0x252   : > { %8680 = vst [vmem:[#allocation54_spill] sm:$0xff] %v6169_v51  ;;  %1253 = vrot.lane.b32.xlu0 %v1114_v37, %s5515_s14  ;;  %1325 = vrot.lane.b32.xlu1 %v8684_v5, %s5515_s14  ;;  %v6211_v5 = vrot.slane %v2108_v25, %v6086_v61  ;;  %v1712_v25 = vcombine.low %v6193_v43, %v1663_v11 }
 0x253   : > { %v1688_v49 = vrot.slane %v1680_v18, %v6086_v61  ;;  %v2188_v18 = vcombine.low %v6216_v29, %v6223_v46 }
 0x254   : > { %v905_v37 = vpop.permute.xlu0 %904  ;;  %v791_v51 = vpop.permute.xlu1 %790  ;;  %v2172_v45 = vcombine.low %v6211_v5, %v6207_v50 }
 0x255   : > { %v1664_v63 = vcombine.low %v8686_v40, %v905_v37  ;;  %v1665_v12 = vcombine.high %v8686_v40, %v905_v37  ;;  %v2140_v7 = vcombine.low %v791_v51, %v5711_v55  ;;  %v2141_v30 = vcombine.high %v791_v51, %v5711_v55 }
 0x256   : > { %1074 = vrot.lane.b32.xlu0 %v5835_v21, %s5519_s16  ;;  %1255 = vrot.lane.b32.xlu1 %v8687_v41, %s5515_s14  ;;  %v1695_v37 = vrot.slane %v1681_v9, %v6086_v61  ;;  %v6239_v41 = vrot.slane %v1696_v60, %v6120_v8  ;;  %v8689_v60 = vld [vmem:[#allocation19_spill] sm:$0xff]  ;;  %v6276_v34 = vrot.slane %v2172_v45, %v6120_v8 }
 0x257   : > { %v1672_v40 = vrot.slane %v1664_v63, %v6086_v61  ;;  %v1679_v38 = vrot.slane %v1665_v12, %v6086_v61  ;;  %v6246_v12 = vrot.slane %v2140_v7, %v6086_v61  ;;  %v6249_v54 = vrot.slane %v2141_v30, %v6086_v61 }
 0x258   : > { %v803_v47 = vpop.permute.xlu0 %802  ;;  %v829_v62 = vpop.permute.xlu1 %828  ;;  %8688 = vst [vmem:[#allocation9_spill] sm:$0xff] %v6239_v41  ;;  %8693 = vst [vmem:[#allocation7_spill] sm:$0xff] %v6276_v34  ;;  %v6283_v59 = vrot.slane %v2188_v18, %v6120_v8  ;;  %v1593_v45 = vcombine.high %v6129_v4, %v6135_v23  ;;  %v1591_v23 = vrot.slane %v1577_v27, %v6120_v8 }
 0x259   : > { %v2156_v55 = vcombine.low %v803_v47, %v829_v62  ;;  %v2157_v51 = vcombine.high %v803_v47, %v829_v62  ;;  %v1728_v9 = vcombine.low %v1672_v40, %v1688_v49  ;;  %v1744_v63 = vcombine.low %v1679_v38, %v1695_v37 }
 0x25a   : > { %1084 = vrot.lane.b32.xlu0 %v5835_v21, %s5516_s15  ;;  %1076 = vrot.lane.b32.xlu1 %v8689_v60, %s5519_s16  ;;  %v6260_v62 = vrot.slane %v1712_v25, %v6120_v8  ;;  %8694 = vst [vmem:[#allocation18_spill] sm:$0xff] %v6283_v59  ;;  %v1607_v27 = vrot.slane %v1593_v45, %v6120_v8 }
 0x25b   : > { %v6252_v32 = vrot.slane %v2156_v55, %v6086_v61  ;;  %v6255_v47 = vrot.slane %v2157_v51, %v6086_v61  ;;  %v6265_v7 = vrot.slane %v1728_v9, %v6120_v8  ;;  %v6268_v30 = vrot.slane %v1744_v63, %v6120_v8 }
 0x25c   : > { %8690 = vst [vmem:[#allocation2_spill] sm:$0xff] %v6260_v62  ;;  %v6270_v55 = vpop.permute.xlu0 %840  ;;  %v6272_v31 = vpop.permute.xlu1 %755  ;;  %v1713_v51 = vcombine.high %v6193_v43, %v1663_v11  ;;  %v1745_v9 = vcombine.high %v1679_v38, %v1695_v37  ;;  %v1729_v43 = vcombine.high %v1672_v40, %v1688_v49  ;;  %v1623_v38 = vrot.slane %v1609_v58, %v6120_v8 }
 0x25d   : > { %8691 = vst [vmem:[#allocation17_spill] sm:$0xff] %v6265_v7  ;;  %8692 = vst [vmem:[#allocation8_spill] sm:$0xff] %v6268_v30  ;;  %v2204_v25 = vcombine.low %v6246_v12, %v6252_v32  ;;  %v2220_v44 = vcombine.low %v6249_v54, %v6255_v47  ;;  %v1629_v45 = vcombine.high %v6157_v24, %v6165_v26 }
 0x25e   : > { %957 = vrot.lane.b32.xlu0 %v5832_v20, %s5515_s14  ;;  %1086 = vrot.lane.b32.xlu1 %v8689_v60, %s5516_s15  ;;  %v8697_v20 = vcombine.high %v6101_v36, %v6107_v42  ;;  %v1727_v58 = vrot.slane %v1713_v51, %v6120_v8  ;;  %v1759_v15 = vrot.slane %v1745_v9, %v6120_v8  ;;  %v8698_v42 = vld [vmem:[#allocation6_spill] sm:$0xff]  ;;  %v8699_v51 = vld [vmem:[#allocation20_spill] sm:$0xff] }
 0x25f   : > { %v6294_v11 = vrot.slane %v2204_v25, %v6120_v8  ;;  %v6297_v18 = vrot.slane %v2220_v44, %v6120_v8  ;;  %v1711_v25 = vrot.slane %v1697_v52, %v6120_v8  ;;  %v2173_v44 = vcombine.high %v6211_v5, %v6207_v50  ;;  %v8700_v5 = vld [vmem:[#allocation5_spill] sm:$0xff] }
 0x260   : > { %v6302_v37 = vpop.permute.xlu0 %858  ;;  %v6304_v63 = vpop.permute.xlu1 %906  ;;  %v1575_v4 = vrot.slane %v8697_v20, %v6120_v8  ;;  %v2260_v36 = vcombine.low %v8698_v42, %v6096_v6  ;;  %v2736_v20 = vcombine.low %v6167_v48, %v5729_v1  ;;  %v1743_v52 = vrot.slane %v1729_v43, %v6120_v8 }
 0x261   : > { %8695 = vst [vmem:[#allocation55_spill] sm:$0xff] %v6294_v11  ;;  %8696 = vst [vmem:[#allocation56_spill] sm:$0xff] %v6297_v18  ;;  %v2261_v50 = vcombine.high %v8698_v42, %v6096_v6  ;;  %v2720_v9 = vcombine.low %v8700_v5, %v6114_v17  ;;  %v1630_v40 = vcombine.low %v1591_v23, %v1623_v38 }
 0x262   : > { %988 = vrot.lane.b32.xlu0 %v5845_v39, %s5515_s14  ;;  %1029 = vrot.lane.b32.xlu1 %v8699_v51, %s5516_s15  ;;  %v2244_v43 = vcombine.low %v6270_v55, %v6140_v33  ;;  %v2245_v60 = vcombine.high %v6270_v55, %v6140_v33  ;;  %v1625_v6 = vcombine.high %v6151_v19, %v6162_v53  ;;  %v8701_v53 = vld [vmem:[#allocation21_spill] sm:$0xff] }
 0x263   : > { %v1631_v42 = vcombine.high %v1591_v23, %v1623_v38  ;;  %v1765_v13 = vcombine.high %v6260_v62, %v6268_v30  ;;  %v1766_v10 = vcombine.low %v1727_v58, %v1759_v15  ;;  %v1761_v26 = vcombine.high %v6239_v41, %v6265_v7 }
 0x264   : > { %v6334_v39 = vpop.permute.xlu0 %870  ;;  %v6336_v49 = vpop.permute.xlu1 %804  ;;  %v1767_v24 = vcombine.high %v1727_v58, %v1759_v15  ;;  %v6355_v55 = vrot.slane %v2736_v20, %v6086_v61  ;;  %v1626_v38 = vcombine.low %v1575_v4, %v1607_v27  ;;  %v1762_v23 = vcombine.low %v1711_v25, %v1743_v52 }
 0x265   : > { %v6363_v30 = vpack.i.bf16 %v1765_v13, %v1629_v45  ;;  %v6365_v62 = vpack.i.bf16 %v1766_v10, %v1630_v40  ;;  %v6367_v15 = vpack.i.bf16 %v1761_v26, %v1625_v6  ;;  %v2189_v1 = vcombine.high %v6216_v29, %v6223_v46  ;;  %v8703_v6 = vld [vmem:[#allocation25_spill] sm:$0xff] }
 0x266   : > { %1448 = vrot.lane.b32.xlu0 %v5835_v21, %s5514_s13  ;;  %1059 = vrot.lane.b32.xlu1 %v8701_v53, %s5516_s15  ;;  %v6369_v58 = vpack.i.bf16 %v1767_v24, %v1631_v42  ;;  %v2721_v53 = vcombine.high %v8700_v5, %v6114_v17  ;;  %v6376_v48 = vrot.slane %v2720_v9, %v6086_v61  ;;  %v8702_v5 = vld [vmem:[#allocation23_spill] sm:$0xff] }
 0x267   : > { %v2252_v20 = vrot.slane %v2244_v43, %v6086_v61  ;;  %v2259_v13 = vrot.slane %v2245_v60, %v6086_v61  ;;  %v6382_v26 = vpack.i.bf16 %v1762_v23, %v1626_v38  ;;  %v1627_v10 = vcombine.high %v1575_v4, %v1607_v27 }
 0x268   : > { %v6359_v21 = vpop.permute.xlu0 %767  ;;  %v6361_v19 = vpop.permute.xlu1 %842  ;;  %v1763_v24 = vcombine.high %v1711_v25, %v1743_v52  ;;  %v2268_v40 = vrot.slane %v2260_v36, %v6086_v61  ;;  %v2275_v29 = vrot.slane %v2261_v50, %v6086_v61  ;;  %v6387_v17 = vrot.slane %v2737_v16, %v6086_v61 }
 0x269   : > { %v2784_v46 = vcombine.low %v6376_v48, %v6355_v55  ;;  %v2221_v60 = vcombine.high %v6249_v54, %v6255_v47  ;;  %v2276_v4 = vcombine.low %v5726_v0, %v6304_v63  ;;  %v6404_v27 = vrot.slane %v2721_v53, %v6086_v61 }
 0x26a   : > { %1010 = vrot.lane.b32.xlu0 %v5837_v22, %s5515_s14  ;;  %949 = vrot.lane.b32.xlu1 %v8702_v5, %s5516_s15  ;;  %v2205_v22 = vcombine.high %v6246_v12, %v6252_v32  ;;  %v6401_v16 = vpack.i.bf16 %v1763_v24, %v1627_v10  ;;  %v2308_v52 = vcombine.low %v2252_v20, %v2268_v40 }
 0x26b   : > { %v2309_v50 = vcombine.high %v2252_v20, %v2268_v40  ;;  %v2324_v9 = vcombine.low %v2259_v13, %v2275_v29  ;;  %v2325_v45 = vcombine.high %v2259_v13, %v2275_v29  ;;  %v2277_v12 = vcombine.high %v5726_v0, %v6304_v63  ;;  %v8708_v29 = vld [vmem:[#allocation24_spill] sm:$0xff] }
 0x26c   : > { %v895_v25 = vpop.permute.xlu0 %894  ;;  %v6399_v36 = vpop.permute.xlu1 %872  ;;  %v6411_v54 = vrot.slane %v2173_v44, %v6120_v8  ;;  %v6414_v32 = vrot.slane %v2189_v1, %v6120_v8  ;;  %v6423_v0 = vrot.slane %v2784_v46, %v6120_v8  ;;  %v6429_v63 = vrot.slane %v2221_v60, %v6120_v8  ;;  %v8709_v60 = vld [vmem:[#allocation27_spill] sm:$0xff]  ;;  %v8710_v46 = vld [vmem:[#allocation26_spill] sm:$0xff] }
 0x26d   : > { %v2284_v44 = vrot.slane %v2276_v4, %v6086_v61  ;;  %v6437_v23 = vrot.slane %v2308_v52, %v6120_v8  ;;  %v6440_v1 = vrot.slane %v2309_v50, %v6120_v8  ;;  %v2292_v53 = vcombine.low %v895_v25, %v5735_v3 }
 0x26e   : > { %961 = vrot.lane.b32.xlu0 %v5859_v35, %s5515_s14  ;;  %980 = vrot.lane.b32.xlu1 %v8703_v6, %s5516_s15  ;;  %8704 = vst [vmem:[#allocation6_spill] sm:$0xff] %v6423_v0  ;;  %v6426_v35 = vrot.slane %v2205_v22, %v6120_v8  ;;  %v2293_v20 = vcombine.high %v895_v25, %v5735_v3 }
 0x26f   : > { %8706 = vst [vmem:[#allocation5_spill] sm:$0xff] %v6437_v23  ;;  %v6445_v13 = vrot.slane %v2324_v9, %v6120_v8  ;;  %v6448_v10 = vrot.slane %v2325_v45, %v6120_v8  ;;  %v2291_v24 = vrot.slane %v2277_v12, %v6086_v61  ;;  %v2300_v22 = vrot.slane %v2292_v53, %v6086_v61 }
 0x270   : > { %v6432_v42 = vpop.permute.xlu0 %1231  ;;  %v6434_v38 = vpop.permute.xlu1 %896  ;;  %v2307_v3 = vrot.slane %v2293_v20, %v6086_v61  ;;  %v2237_v4 = vcombine.high %v6276_v34, %v6294_v11  ;;  %v2856_v52 = vcombine.low %v6361_v19, %v6302_v37  ;;  %v2857_v50 = vcombine.high %v6361_v19, %v6302_v37 }
 0x271   : > { %8705 = vst [vmem:[#allocation20_spill] sm:$0xff] %v6432_v42  ;;  %8707 = vst [vmem:[#allocation21_spill] sm:$0xff] %v6445_v13  ;;  %v2238_v12 = vcombine.low %v6411_v54, %v6426_v35  ;;  %v2340_v53 = vcombine.low %v2284_v44, %v2300_v22  ;;  %v2341_v20 = vcombine.high %v2284_v44, %v2300_v22 }
 0x272   : > { %1349 = vrot.lane.b32.xlu0 %v8708_v29, %s5515_s14  ;;  %1305 = vrot.lane.b32.xlu1 %v8709_v60, %s5515_s14  ;;  %v2356_v29 = vcombine.low %v2291_v24, %v2307_v3  ;;  %v2357_v60 = vcombine.high %v2291_v24, %v2307_v3  ;;  %v2241_v19 = vcombine.high %v6283_v59, %v6297_v18 }
 0x273   : > { %v2242_v40 = vcombine.low %v6414_v32, %v6429_v63  ;;  %v6482_v47 = vrot.slane %v2340_v53, %v6120_v8  ;;  %v2355_v44 = vrot.slane %v2341_v20, %v6120_v8  ;;  %v2243_v53 = vcombine.high %v6414_v32, %v6429_v63 }
 0x274   : > { %v793_v9 = vpop.permute.xlu0 %792  ;;  %v6469_v45 = vpop.permute.xlu1 %794  ;;  %v6486_v24 = vrot.slane %v2356_v29, %v6120_v8  ;;  %v2371_v22 = vrot.slane %v2357_v60, %v6120_v8  ;;  %v2239_v20 = vcombine.high %v6411_v54, %v6426_v35 }
 0x275   : > { %v2752_v43 = vcombine.low %v793_v9, %v5732_v2  ;;  %v2753_v25 = vcombine.high %v793_v9, %v5732_v2  ;;  %8711 = vst [vmem:[#allocation23_spill] sm:$0xff] %v6482_v47  ;;  %v8713_v2 = vld [vmem:[#allocation22_spill] sm:$0xff]  ;;  %v2373_v11 = vcombine.high %v6437_v23, %v6482_v47  ;;  %v2374_v32 = vcombine.low %v6440_v1, %v2355_v44 }
 0x276   : > { %1279 = vrot.lane.b32.xlu0 %v8710_v46, %s5515_s14  ;;  %8712 = vst [vmem:[#allocation25_spill] sm:$0xff] %v6486_v24  ;;  %1002 = vrot.lane.b32.xlu1 %v8713_v2, %s5516_s15  ;;  %v2377_v54 = vcombine.high %v6445_v13, %v6486_v24  ;;  %v2378_v35 = vcombine.low %v6448_v10, %v2371_v22 }
 0x277   : > { %v6492_v46 = vrot.slane %v2752_v43, %v6086_v61  ;;  %v6495_v3 = vrot.slane %v2753_v25, %v6086_v61  ;;  %v6531_v34 = vpack.i.bf16 %v2373_v11, %v2237_v4  ;;  %v6533_v47 = vpack.i.bf16 %v2374_v32, %v2238_v12 }
 0x278   : > { %v831_v9 = vpop.permute.xlu0 %830  ;;  %v6497_v42 = vpop.permute.xlu1 %832  ;;  %v6537_v23 = vpack.i.bf16 %v2378_v35, %v2242_v40  ;;  %v6552_v4 = vrot.slane %v2856_v52, %v6086_v61  ;;  %v2871_v40 = vrot.slane %v2857_v50, %v6086_v61  ;;  %v8720_v50 = vld [vmem:[#allocation31_spill] sm:$0xff]  ;;  %v3332_v35 = vcombine.low %v5715_v57, %v6359_v21 }
 0x279   : > { %v2768_v43 = vcombine.low %v6336_v49, %v831_v9  ;;  %v2769_v25 = vcombine.high %v6336_v49, %v831_v9  ;;  %v2379_v49 = vcombine.high %v6448_v10, %v2371_v22 }
 0x27a   : > { %1039 = vrot.lane.b32.xlu0 %v8699_v51, %s5515_s14  ;;  %1033 = vrot.lane.b32.xlu1 %v5896_v28, %s5516_s15  ;;  %v2375_v51 = vcombine.high %v6440_v1, %v2355_v44  ;;  %v3349_v1 = vcombine.high %v6272_v31, %v5749_v14  ;;  %v8717_v44 = vld [vmem:[#allocation13_spill] sm:$0xff] }
 0x27b   : > { %v6518_v63 = vrot.slane %v2768_v43, %v6086_v61  ;;  %v6521_v29 = vrot.slane %v2769_v25, %v6086_v61  ;;  %v6535_v43 = vpack.i.bf16 %v2377_v54, %v2241_v19  ;;  %v8715_v25 = vcombine.low %v6404_v27, %v6387_v17 }
 0x27c   : > { %v6527_v9 = vpop.permute.xlu0 %860  ;;  %v6529_v60 = vpop.permute.xlu1 %943  ;;  %v6557_v12 = vpack.i.bf16 %v2379_v49, %v2243_v53  ;;  %v6559_v19 = vpack.i.bf16 %v2375_v51, %v2239_v20  ;;  %v2904_v22 = vcombine.low %v6434_v38, %v8717_v44  ;;  %v2905_v32 = vcombine.high %v6434_v38, %v8717_v44 }
 0x27d   : > { %8714 = vst [vmem:[#allocation24_spill] sm:$0xff] %v6529_v60  ;;  %v6543_v18 = vrot.slane %v8715_v25, %v6120_v8  ;;  %v2816_v10 = vcombine.low %v6492_v46, %v6518_v63  ;;  %v2832_v11 = vcombine.low %v6495_v3, %v6521_v29  ;;  %v8722_v20 = vcombine.high %v5713_v56, %v6334_v39  ;;  %v8728_v60 = vld [vmem:[#allocation19_spill] sm:$0xff] }
 0x27e   : > { %959 = vrot.lane.b32.xlu0 %v8702_v5, %s5515_s14  ;;  %1472 = vrot.lane.b32.xlu1 %v8720_v50, %s5514_s13  ;;  %v8721_v5 = vcombine.low %v5713_v56, %v6334_v39  ;;  %v8723_v49 = vcombine.high %v5715_v57, %v6359_v21  ;;  %v8724_v56 = vld [vmem:[#allocation11_spill] sm:$0xff]  ;;  %v6602_v57 = vrot.slane %v3349_v1, %v6086_v61 }
 0x27f   : > { %8716 = vst [vmem:[#allocation27_spill] sm:$0xff] %v6543_v18  ;;  %v6566_v54 = vrot.slane %v2816_v10, %v6120_v8  ;;  %v6569_v52 = vrot.slane %v2832_v11, %v6120_v8  ;;  %v2887_v38 = vrot.slane %v8722_v20, %v6086_v61  ;;  %v2919_v11 = vrot.slane %v2905_v32, %v6086_v61 }
 0x280   : > { %v6577_v53 = vrot.slane %v8721_v5, %v6086_v61  ;;  %v6589_v51 = vrot.slane %v8723_v49, %v6086_v61  ;;  %v909_v25 = vpop.permute.xlu0 %908  ;;  %v6591_v10 = vpop.permute.xlu1 %910  ;;  %v3348_v5 = vcombine.low %v6272_v31, %v5749_v14  ;;  %v2912_v49 = vrot.slane %v2904_v22, %v6086_v61  ;;  %v8725_v14 = vld [vmem:[#allocation28_spill] sm:$0xff] }
 0x281   : > { %8718 = vst [vmem:[#allocation26_spill] sm:$0xff] %v6566_v54  ;;  %8719 = vst [vmem:[#allocation22_spill] sm:$0xff] %v6569_v52  ;;  %v2888_v39 = vcombine.low %v8724_v56, %v909_v25  ;;  %v2889_v50 = vcombine.high %v8724_v56, %v909_v25  ;;  %v2936_v20 = vcombine.low %v2871_v40, %v2887_v38  ;;  %v8726_v56 = vld [vmem:[#allocation12_spill] sm:$0xff] }
 0x282   : > { %v2920_v21 = vcombine.low %v6552_v4, %v6577_v53  ;;  %990 = vrot.lane.b32.xlu0 %v8703_v6, %s5515_s14  ;;  %1351 = vrot.lane.b32.xlu1 %v8725_v14, %s5515_s14  ;;  %v6615_v31 = vrot.slane %v3332_v35, %v6086_v61  ;;  %v3412_v1 = vcombine.low %v6589_v51, %v6602_v57 }
 0x283   : > { %v2896_v44 = vrot.slane %v2888_v39, %v6086_v61  ;;  %v2903_v25 = vrot.slane %v2889_v50, %v6086_v61  ;;  %v3365_v6 = vcombine.high %v6469_v45, %v8726_v56  ;;  %v2833_v22 = vcombine.high %v6495_v3, %v6521_v29 }
 0x284   : > { %v807_v32 = vpop.permute.xlu0 %806  ;;  %v6623_v59 = vpop.permute.xlu1 %996  ;;  %v2937_v39 = vcombine.high %v2871_v40, %v2887_v38  ;;  %v6626_v14 = vrot.slane %v2920_v21, %v6120_v8  ;;  %v3364_v35 = vcombine.low %v6469_v45, %v8726_v56  ;;  %v6635_v3 = vrot.slane %v2936_v20, %v6120_v8  ;;  %v8732_v45 = vld [vmem:[#allocation29_spill] sm:$0xff] }
 0x285   : > { %v2952_v50 = vcombine.low %v2896_v44, %v2912_v49  ;;  %v2968_v24 = vcombine.low %v2903_v25, %v2919_v11  ;;  %v2969_v13 = vcombine.high %v2903_v25, %v2919_v11  ;;  %v3380_v7 = vcombine.low %v807_v32, %v6497_v42 }
 0x286   : > { %8727 = vst [vmem:[#allocation13_spill] sm:$0xff] %v6626_v14  ;;  %v3381_v41 = vcombine.high %v807_v32, %v6497_v42  ;;  %1450 = vrot.lane.b32.xlu0 %v8728_v60, %s5514_s13  ;;  %8729 = vst [vmem:[#allocation31_spill] sm:$0xff] %v6635_v3  ;;  %1257 = vrot.lane.b32.xlu1 %v8732_v45, %s5515_s14  ;;  %v6647_v11 = vrot.slane %v3365_v6, %v6086_v61  ;;  %v8738_v6 = vld [vmem:[#allocation32_spill] sm:$0xff] }
 0x287   : > { %v6638_v29 = vrot.slane %v2952_v50, %v6120_v8  ;;  %v6641_v40 = vrot.slane %v2968_v24, %v6120_v8  ;;  %v2983_v38 = vrot.slane %v2969_v13, %v6120_v8  ;;  %v2847_v42 = vrot.slane %v2833_v22, %v6120_v8 }
 0x288   : > { %v6651_v60 = vrot.slane %v3380_v7, %v6086_v61  ;;  %v6654_v21 = vrot.slane %v3381_v41, %v6086_v61  ;;  %v6656_v20 = vpop.permute.xlu0 %844  ;;  %v6658_v24 = vpop.permute.xlu1 %1006  ;;  %v2951_v13 = vrot.slane %v2937_v39, %v6120_v8  ;;  %v2817_v25 = vcombine.high %v6492_v46, %v6518_v63 }
 0x289   : > { %8730 = vst [vmem:[#allocation11_spill] sm:$0xff] %v6638_v29  ;;  %8731 = vst [vmem:[#allocation28_spill] sm:$0xff] %v6641_v40  ;;  %v8733_v41 = vcombine.high %v6404_v27, %v6387_v17  ;;  %v6672_v22 = vrot.slane %v3364_v35, %v6086_v61  ;;  %v2953_v32 = vcombine.high %v2896_v44, %v2912_v49  ;;  %v8734_v27 = vld [vmem:[#allocation33_spill] sm:$0xff] }
 0x28a   : > { %v3444_v39 = vcombine.low %v6647_v11, %v6654_v21  ;;  %1012 = vrot.lane.b32.xlu0 %v8713_v2, %s5515_s14  ;;  %v2785_v46 = vcombine.high %v6376_v48, %v6355_v55  ;;  %v6681_v63 = vrot.slane %v3348_v5, %v6086_v61  ;;  %v2921_v17 = vcombine.high %v6552_v4, %v6577_v53 }
 0x28b   : > { %v2815_v7 = vrot.slane %v8733_v41, %v6120_v8  ;;  %1259 = vrot.lane.b32.xlu1 %v8734_v27, %s5515_s14  ;;  %v2990_v50 = vcombine.low %v2951_v13, %v2983_v38  ;;  %v6688_v44 = vrot.slane %v3412_v1, %v6120_v8  ;;  %v3428_v49 = vcombine.low %v6672_v22, %v6651_v60 }
 0x28c   : > { %v6693_v2 = vrot.slane %v3444_v39, %v6120_v8  ;;  %v6695_v55 = vpop.permute.xlu0 %1233  ;;  %v6697_v48 = vpop.permute.xlu1 %945  ;;  %v3396_v4 = vcombine.low %v6615_v31, %v6681_v63  ;;  %v2831_v53 = vrot.slane %v2817_v25, %v6120_v8  ;;  %v2967_v1 = vrot.slane %v2953_v32, %v6120_v8 }
 0x28d   : > { %8735 = vst [vmem:[#allocation12_spill] sm:$0xff] %v6688_v44  ;;  %8737 = vst [vmem:[#allocation29_spill] sm:$0xff] %v6695_v55  ;;  %v2854_v5 = vcombine.low %v2815_v7, %v2847_v42  ;;  %v2855_v35 = vcombine.high %v2815_v7, %v2847_v42  ;;  %v2991_v39 = vcombine.high %v2951_v13, %v2983_v38  ;;  %v8743_v55 = vld [vmem:[#allocation35_spill] sm:$0xff] }
 0x28e   : > { %8736 = vst [vmem:[#allocation19_spill] sm:$0xff] %v6693_v2  ;;  %1043 = vrot.lane.b32.xlu0 %v5896_v28, %s5515_s14  ;;  %v2799_v27 = vrot.slane %v2785_v46, %v6120_v8  ;;  %v2935_v56 = vrot.slane %v2921_v17, %v6120_v8  ;;  %v6714_v42 = vrot.slane %v3428_v49, %v6120_v8  ;;  %v8742_v49 = vld [vmem:[#allocation34_spill] sm:$0xff] }
 0x28f   : > { %v6707_v41 = vpack.i.bf16 %v2990_v50, %v2854_v5  ;;  %1031 = vrot.lane.b32.xlu1 %v8738_v6, %s5516_s15  ;;  %v6720_v32 = vpack.i.bf16 %v2991_v39, %v2855_v35  ;;  %v2853_v28 = vcombine.high %v6543_v18, %v6569_v52  ;;  %v2989_v38 = vcombine.high %v6635_v3, %v6641_v40  ;;  %v8753_v18 = vld [vmem:[#allocation14_spill] sm:$0xff] }
 0x290   : > { %8739 = vst [vmem:[#allocation33_spill] sm:$0xff] %v6714_v42  ;;  %v6716_v25 = vpop.permute.xlu0 %994  ;;  %v6718_v7 = vpop.permute.xlu1 %955  ;;  %v6727_v13 = vrot.slane %v3396_v4, %v6120_v8  ;;  %v2849_v46 = vcombine.high %v6423_v0, %v6566_v54  ;;  %v2985_v17 = vcombine.high %v6626_v14, %v6638_v29  ;;  %v2850_v50 = vcombine.low %v2799_v27, %v2831_v53 }
 0x291   : > { %8740 = vst [vmem:[#allocation32_spill] sm:$0xff] %v6718_v7  ;;  %v6735_v5 = vpack.i.bf16 %v2989_v38, %v2853_v28  ;;  %v2986_v35 = vcombine.low %v2935_v56, %v2967_v1  ;;  %v2851_v39 = vcombine.high %v2799_v27, %v2831_v53  ;;  %v2987_v45 = vcombine.high %v2935_v56, %v2967_v1  ;;  %v8745_v38 = vld [vmem:[#allocation36_spill] sm:$0xff]  ;;  %v8746_v56 = vld [vmem:[#allocation37_spill] sm:$0xff]  ;;  %v8747_v1 = vld [vmem:[#allocation38_spill] sm:$0xff] }
 0x292   : > { %8741 = vst [vmem:[#allocation57_spill] sm:$0xff] %v6727_v13  ;;  %1327 = vrot.lane.b32.xlu0 %v8742_v49, %s5515_s14  ;;  %v6739_v4 = vpack.i.bf16 %v2985_v17, %v2849_v46  ;;  %v8749_v46 = vld [vmem:[#allocation39_spill] sm:$0xff]  ;;  %v3469_v49 = vcombine.high %v6656_v20, %v6527_v9  ;;  %v3500_v40 = vcombine.low %v8753_v18, %v6591_v10 }
 0x293   : > { %1061 = vrot.lane.b32.xlu1 %v8743_v55, %s5516_s15  ;;  %v6745_v0 = vpack.i.bf16 %v2986_v35, %v2850_v50  ;;  %v6747_v29 = vpack.i.bf16 %v2987_v45, %v2851_v39  ;;  %v8751_v35 = vld [vmem:[#allocation30_spill] sm:$0xff]  ;;  %v8755_v7 = vld [vmem:[#allocation15_spill] sm:$0xff] }
 0x294   : > { %v6741_v52 = vpop.permute.xlu0 %1004  ;;  %v6743_v54 = vpop.permute.xlu1 %976  ;;  %v8752_v39 = vld [vmem:[#allocation10_spill] sm:$0xff] }
 0x295   : > { %8744 = vst [vmem:[#allocation34_spill] sm:$0xff] %v6747_v29 }
 0x296   : > { %1281 = vrot.lane.b32.xlu0 %v8745_v38, %s5515_s14  ;;  %v3484_v38 = vcombine.low %v8752_v39, %v6399_v36 }
 0x297   : > { %1088 = vrot.lane.b32.xlu1 %v8746_v56, %s5516_s15 }
 0x298   : > { %v6755_v55 = vpop.permute.xlu0 %929  ;;  %v6757_v53 = vpop.permute.xlu1 %986  ;;  %v3492_v3 = vrot.slane %v3484_v38, %v6086_v61 }
 0x29a   : > { %1041 = vrot.lane.b32.xlu0 %v8738_v6, %s5515_s14  ;;  %v3468_v6 = vcombine.low %v6656_v20, %v6527_v9  ;;  %v3483_v20 = vrot.slane %v3469_v49, %v6086_v61  ;;  %v3429_v49 = vcombine.high %v6672_v22, %v6651_v60  ;;  %v3508_v60 = vrot.slane %v3500_v40, %v6086_v61 }
 0x29b   : > { %982 = vrot.lane.b32.xlu1 %v8747_v1, %s5516_s15 }
 0x29c   : > { %v6763_v45 = vpop.permute.xlu0 %953  ;;  %v6765_v27 = vpop.permute.xlu1 %998  ;;  %v3476_v14 = vrot.slane %v3468_v6, %v6086_v61 }
 0x29d   : > { %8748 = vst [vmem:[#allocation35_spill] sm:$0xff] %v6763_v45 }
 0x29e   : > { %1078 = vrot.lane.b32.xlu0 %v8746_v56, %s5519_s16  ;;  %v3533_v38 = vcombine.high %v3476_v14, %v3492_v3 }
 0x29f   : > { %1307 = vrot.lane.b32.xlu1 %v8749_v46, %s5515_s14  ;;  %v3485_v46 = vcombine.high %v8752_v39, %v6399_v36  ;;  %v3501_v36 = vcombine.high %v8753_v18, %v6591_v10  ;;  %v8754_v39 = vld [vmem:[#allocation41_spill] sm:$0xff]  ;;  %v3413_v10 = vcombine.high %v6589_v51, %v6602_v57  ;;  %v3443_v51 = vrot.slane %v3429_v49, %v6120_v8 }
 0x2a0   : > { %v6771_v17 = vpop.permute.xlu0 %974  ;;  %v6773_v50 = vpop.permute.xlu1 %1277 }
 0x2a1   : > { %8750 = vst [vmem:[#allocation36_spill] sm:$0xff] %v6773_v50  ;;  %v3499_v6 = vrot.slane %v3485_v46, %v6086_v61  ;;  %v8756_v46 = vld [vmem:[#allocation44_spill] sm:$0xff] }
 0x2a2   : > { %992 = vrot.lane.b32.xlu0 %v8747_v1, %s5515_s14  ;;  %v3397_v1 = vcombine.high %v6615_v31, %v6681_v63 }
 0x2a3   : > { %1092 = vrot.lane.b32.xlu1 %v8751_v35, %s5516_s15  ;;  %v3548_v29 = vcombine.low %v3483_v20, %v3499_v6 }
 0x2a4   : > { %v6787_v28 = vpop.permute.xlu0 %984  ;;  %v6789_v50 = vpop.permute.xlu1 %1027 }
 0x2a5   : > { %v6836_v49 = vrot.slane %v3548_v29, %v6120_v8 }
 0x2a6   : > { %1452 = vrot.lane.b32.xlu0 %v8746_v56, %s5514_s13  ;;  %v3445_v56 = vcombine.high %v6647_v11, %v6654_v21  ;;  %v3515_v11 = vrot.slane %v3501_v36, %v6086_v61 }
 0x2a7   : > { %1353 = vrot.lane.b32.xlu1 %v8754_v39, %s5515_s14  ;;  %v3532_v39 = vcombine.low %v3476_v14, %v3492_v3  ;;  %v3549_v14 = vcombine.high %v3483_v20, %v3499_v6  ;;  %v8758_v20 = vld [vmem:[#allocation40_spill] sm:$0xff] }
 0x2a8   : > { %v899_v31 = vpop.permute.xlu0 %898  ;;  %v6809_v63 = vpop.permute.xlu1 %1037  ;;  %v3459_v57 = vrot.slane %v3445_v56, %v6120_v8 }
 0x2a9   : > { %v3516_v45 = vcombine.low %v899_v31, %v8755_v7  ;;  %v3517_v18 = vcombine.high %v899_v31, %v8755_v7  ;;  %v3411_v7 = vrot.slane %v3397_v1, %v6120_v8  ;;  %v3547_v1 = vrot.slane %v3533_v38, %v6120_v8 }
 0x2aa   : > { %1082 = vrot.lane.b32.xlu0 %v8751_v35, %s5519_s16  ;;  %v3563_v38 = vrot.slane %v3549_v14, %v6120_v8  ;;  %v8761_v14 = vld [vmem:[#allocation45_spill] sm:$0xff] }
 0x2ab   : > { %v3524_v21 = vrot.slane %v3516_v45, %v6086_v61  ;;  %v3531_v22 = vrot.slane %v3517_v18, %v6086_v61  ;;  %1474 = vrot.lane.b32.xlu1 %v8756_v46, %s5514_s13  ;;  %v3427_v18 = vrot.slane %v3413_v10, %v6120_v8  ;;  %v6832_v61 = vrot.slane %v3532_v39, %v6120_v8  ;;  %v8760_v39 = vld [vmem:[#allocation42_spill] sm:$0xff] }
 0x2ac   : > { %v6826_v3 = vpop.permute.xlu0 %1235  ;;  %v6828_v35 = vpop.permute.xlu1 %1057 }
 0x2ad   : > { %8757 = vst [vmem:[#allocation37_spill] sm:$0xff] %v6826_v3  ;;  %v3564_v40 = vcombine.low %v3508_v60, %v3524_v21  ;;  %v3565_v36 = vcombine.high %v3508_v60, %v3524_v21  ;;  %v3580_v31 = vcombine.low %v3515_v11, %v3531_v22  ;;  %v3581_v45 = vcombine.high %v3515_v11, %v3531_v22 }
 0x2ae   : > { %1329 = vrot.lane.b32.xlu0 %v8758_v20, %s5515_s14  ;;  %v3465_v21 = vcombine.high %v6688_v44, %v6693_v2  ;;  %v3466_v22 = vcombine.low %v3427_v18, %v3459_v57  ;;  %v3467_v46 = vcombine.high %v3427_v18, %v3459_v57  ;;  %v8762_v57 = vld [vmem:[#allocation43_spill] sm:$0xff] }
 0x2af   : > { %v6841_v6 = vrot.slane %v3564_v40, %v6120_v8  ;;  %v3579_v56 = vrot.slane %v3565_v36, %v6120_v8  ;;  %v6845_v60 = vrot.slane %v3580_v31, %v6120_v8  ;;  %v3595_v10 = vrot.slane %v3581_v45, %v6120_v8  ;;  %1063 = vrot.lane.b32.xlu1 %v8760_v39, %s5516_s15 }
 0x2b0   : > { %v6851_v29 = vpop.permute.xlu0 %1025  ;;  %v6853_v11 = vpop.permute.xlu1 %947  ;;  %v3461_v31 = vcombine.high %v6727_v13, %v6714_v42  ;;  %v3462_v45 = vcombine.low %v3411_v7, %v3443_v51  ;;  %v3463_v40 = vcombine.high %v3411_v7, %v3443_v51  ;;  %v8763_v7 = vld [vmem:[#allocation46_spill] sm:$0xff]  ;;  %v8764_v51 = vld [vmem:[#allocation47_spill] sm:$0xff] }
 0x2b1   : > { %8759 = vst [vmem:[#allocation38_spill] sm:$0xff] %v6845_v60  ;;  %v3601_v36 = vcombine.high %v6836_v49, %v6845_v60  ;;  %v3602_v20 = vcombine.low %v3563_v38, %v3595_v10  ;;  %v3603_v39 = vcombine.high %v3563_v38, %v3595_v10  ;;  %v3597_v3 = vcombine.high %v6832_v61, %v6841_v6 }
 0x2b2   : > { %1283 = vrot.lane.b32.xlu0 %v8761_v14, %s5515_s14  ;;  %v3598_v8 = vcombine.low %v3547_v1, %v3579_v56  ;;  %v3599_v2 = vcombine.high %v3547_v1, %v3579_v56 }
 0x2b3   : > { %1090 = vrot.lane.b32.xlu1 %v8762_v57, %s5516_s15  ;;  %v6869_v18 = vpack.i.bf16 %v3601_v36, %v3465_v21  ;;  %v6875_v13 = vpack.i.bf16 %v3602_v20, %v3466_v22  ;;  %v6877_v14 = vpack.i.bf16 %v3603_v39, %v3467_v46  ;;  %v6879_v10 = vpack.i.bf16 %v3597_v3, %v3461_v31  ;;  %v8767_v31 = vld [vmem:[#allocation49_spill] sm:$0xff] }
 0x2b4   : > { %v6871_v44 = vpop.permute.xlu0 %1035  ;;  %v6873_v42 = vpop.permute.xlu1 %978  ;;  %v6881_v38 = vpack.i.bf16 %v3598_v8, %v3462_v45  ;;  %v6883_v60 = vpack.i.bf16 %v3599_v2, %v3463_v40  ;;  %v8765_v8 = vld [vmem:[#allocation48_spill] sm:$0xff]  ;;  %v1095_v3 = vrot.slane %v6140_v33, 2  ;;  %v1097_v46 = vrot.slane %v6302_v37, 2  ;;  %v8766_v40 = vld [vmem:[#allocation50_spill] sm:$0xff] }
 0x2b5   : > { %v1094_v36 = vrot.slane %v8766_v40, 2  ;;  %v1099_v33 = vrot.slane %v6527_v9, 2 }
 0x2b6   : > { %1331 = vrot.lane.b32.xlu0 %v8763_v7, %s5515_s14  ;;  %v1098_v37 = vsel %vm812_vm3, %v1095_v3, %v1097_v46 }
 0x2b7   : > { %1355 = vrot.lane.b32.xlu1 %v8764_v51, %s5515_s14  ;;  %v1096_v39 = vsel %vm812_vm3, %v1094_v36, %v1095_v3  ;;  %v1100_v51 = vsel %vm812_vm3, %v1097_v46, %v1099_v33 }
 0x2b8   : > { %v6891_v1 = vpop.permute.xlu0 %1055  ;;  %v6893_v56 = vpop.permute.xlu1 %1303 }
 0x2ba   : > { %1080 = vrot.lane.b32.xlu0 %v8762_v57, %s5519_s16 }
 0x2bb   : > { %1476 = vrot.lane.b32.xlu1 %v8765_v8, %s5514_s13 }
 0x2bc   : > { %v6899_v2 = vpop.permute.xlu0 %1301  ;;  %v6902_v22 = vpop.permute.xlu1 %1000 }
 0x2be   : > { %1454 = vrot.lane.b32.xlu0 %v8762_v57, %s5514_s13 }
 0x2bf   : > { %1478 = vrot.lane.b32.xlu1 %v8767_v31, %s5514_s13 }
 0x2c0   : > { %v6910_v45 = vpop.permute.xlu0 %1008  ;;  %v6912_v20 = vpop.permute.xlu1 %951 }
 0x2c2   : > { %1237 = vrot.lane.b32.xlu0 %v1096_v39, %s5515_s14 }
 0x2c3   : > { %1239 = vrot.lane.b32.xlu1 %v1098_v37, %s5515_s14 }
 0x2c4   : > { %v6919_v57 = vpop.permute.xlu0 %1253  ;;  %v6921_v7 = vpop.permute.xlu1 %1325 }
 0x2c6   : > { %5258 = vrot.lane.b32.xlu0 %v6363_v30, %s5520_s17 }
 0x2c7   : > { %1241 = vrot.lane.b32.xlu1 %v1100_v51, %s5515_s14  ;;  %v1157_v51 = vrot.slane %v6716_v25, 2 }
 0x2c8   : > { %v6927_v8 = vpop.permute.xlu0 %1074  ;;  %v6929_v9 = vpop.permute.xlu1 %1255 }
 0x2ca   : > { %5268 = vrot.lane.b32.xlu0 %v6365_v62, %s5521_s20  ;;  %v1101_v62 = vrot.slane %v6755_v55, 2 }
 0x2cb   : > { %5263 = vrot.lane.b32.xlu1 %v6367_v15, %s5520_s17 }
 0x2cc   : > { %v6935_v3 = vpop.permute.xlu0 %1084  ;;  %v6937_v40 = vpop.permute.xlu1 %1076 }
 0x2ce   : > { %5278 = vrot.lane.b32.xlu0 %v6369_v58, %s5522_s21  ;;  %v1102_v58 = vsel %vm812_vm3, %v1099_v33, %v1101_v62  ;;  %v1158_v62 = vrot.slane %v6623_v59, 2  ;;  %v1176_v59 = vrot.slane %v6658_v24, 2 }
 0x2cf   : > { %5273 = vrot.lane.b32.xlu1 %v6382_v26, %s5521_s20 }
 0x2d0   : > { %v6943_v30 = vpop.permute.xlu0 %957  ;;  %v6945_v46 = vpop.permute.xlu1 %1086  ;;  %v1159_v25 = vsel %vm812_vm3, %v1157_v51, %v1158_v62 }
 0x2d2   : > { %5293 = vrot.lane.b32.xlu0 %v6531_v34, %s5520_s17 }
 0x2d3   : > { %5283 = vrot.lane.b32.xlu1 %v6401_v16, %s5522_s21  ;;  %v1130_v16 = vrot.slane %v6771_v17, 2  ;;  %v8566_v17 = vrot.slane %v6757_v53, 2 }
 0x2d4   : > { %v6952_v15 = vpop.permute.xlu0 %988  ;;  %v6954_v36 = vpop.permute.xlu1 %1029 }
 0x2d6   : > { %5303 = vrot.lane.b32.xlu0 %v6533_v47, %s5521_s20  ;;  %v8567_v47 = vrot.slane %v6743_v54, 2 }
 0x2d7   : > { %1243 = vrot.lane.b32.xlu1 %v1102_v58, %s5515_s14  ;;  %v8568_v58 = vrot.slane %v6910_v45, 2 }
 0x2d8   : > { %v6960_v26 = vpop.permute.xlu0 %1448  ;;  %v6962_v55 = vpop.permute.xlu1 %1059 }
 0x2d9   : > { %v1179_v21 = vsel %vm812_vm3, %v1176_v59, %v8568_v58 }
 0x2da   : > { %5328 = vrot.lane.b32.xlu0 %v6707_v41, %s5521_s20  ;;  %v1148_v41 = vrot.slane %v6787_v28, 2 }
 0x2db   : > { %5288 = vrot.lane.b32.xlu1 %v6535_v43, %s5520_s17  ;;  %v1132_v43 = vsel %vm812_vm3, %v1130_v16, %v8567_v47 }
 0x2dc   : > { %v6968_v34 = vpop.permute.xlu0 %1010  ;;  %v6971_v31 = vpop.permute.xlu1 %949  ;;  %v1150_v28 = vsel %vm812_vm3, %v1148_v41, %v8566_v17  ;;  %v1175_v41 = vrot.slane %v6741_v52, 2 }
 0x2de   : > { %5338 = vrot.lane.b32.xlu0 %v6720_v32, %s5522_s21  ;;  %v1177_v52 = vsel %vm812_vm3, %v1175_v41, %v1176_v59  ;;  %v1184_v41 = vrot.slane %v6851_v29, 2  ;;  %v1104_v29 = vrot.slane %v6697_v48, 2  ;;  %v8772_v48 = vld [vmem:[#allocation35_spill] sm:$0xff] }
 0x2df   : > { %5298 = vrot.lane.b32.xlu1 %v6537_v23, %s5521_s20  ;;  %v8570_v23 = vrot.slane %v6765_v27, 2 }
 0x2e0   : > { %v6978_v39 = vpop.permute.xlu0 %961  ;;  %v6981_v33 = vpop.permute.xlu1 %980 }
 0x2e2   : > { %1269 = vrot.lane.b32.xlu0 %v1132_v43, %s5515_s14  ;;  %v1161_v43 = vsel %vm812_vm3, %v1158_v62, %v8570_v23 }
 0x2e3   : > { %5308 = vrot.lane.b32.xlu1 %v6557_v12, %s5522_s21 }
 0x2e4   : > { %v6990_v32 = vpop.permute.xlu0 %1349  ;;  %v6993_v37 = vpop.permute.xlu1 %1305 }
 0x2e5   : > { %8768 = vst [vmem:[#allocation39_spill] sm:$0xff] %v6993_v37 }
 0x2e6   : > { %1285 = vrot.lane.b32.xlu0 %v1150_v28, %s5515_s14 }
 0x2e7   : > { %5313 = vrot.lane.b32.xlu1 %v6559_v19, %s5522_s21 }
 0x2e8   : > { %v7003_v12 = vpop.permute.xlu0 %1279  ;;  %v7006_v16 = vpop.permute.xlu1 %1002 }
 0x2ea   : > { %1295 = vrot.lane.b32.xlu0 %v1161_v43, %s5515_s14 }
 0x2eb   : > { %1293 = vrot.lane.b32.xlu1 %v1159_v25, %s5515_s14 }
 0x2ec   : > { %v7016_v19 = vpop.permute.xlu0 %1039  ;;  %v7018_v28 = vpop.permute.xlu1 %1033 }
 0x2ee   : > { %1311 = vrot.lane.b32.xlu0 %v1179_v21, %s5515_s14 }
 0x2ef   : > { %1309 = vrot.lane.b32.xlu1 %v1177_v52, %s5515_s14  ;;  %v8770_v52 = vld [vmem:[#allocation34_spill] sm:$0xff] }
 0x2f0   : > { %v7026_v43 = vpop.permute.xlu0 %959  ;;  %v7028_v51 = vpop.permute.xlu1 %1472 }
 0x2f2   : > { %5348 = vrot.lane.b32.xlu0 %v6869_v18, %s5520_s17 }
 0x2f3   : > { %5318 = vrot.lane.b32.xlu1 %v6735_v5, %s5520_s17  ;;  %v8569_v5 = vrot.slane %v6789_v50, 2 }
 0x2f4   : > { %v7034_v24 = vpop.permute.xlu0 %990  ;;  %v7036_v62 = vpop.permute.xlu1 %1351 }
 0x2f6   : > { %5358 = vrot.lane.b32.xlu0 %v6875_v13, %s5521_s20  ;;  %v1202_v13 = vrot.slane %v6871_v44, 2  ;;  %v1106_v44 = vrot.slane %v6853_v11, 2  ;;  %v1124_v11 = vrot.slane %v6943_v30, 2 }
 0x2f7   : > { %5323 = vrot.lane.b32.xlu1 %v6739_v4, %s5520_s17  ;;  %v1186_v4 = vsel %vm812_vm3, %v1184_v41, %v8569_v5  ;;  %v1121_v5 = vrot.slane %v8772_v48, 2 }
 0x2f8   : > { %v7042_v21 = vpop.permute.xlu0 %1450  ;;  %v7045_v25 = vpop.permute.xlu1 %1257  ;;  %v1107_v37 = vsel %vm812_vm3, %v1104_v29, %v1106_v44 }
 0x2f9   : > { %8769 = vst [vmem:[#allocation30_spill] sm:$0xff] %v7042_v21 }
 0x2fa   : > { %5368 = vrot.lane.b32.xlu0 %v6877_v14, %s5522_s21  ;;  %v8573_v14 = vrot.slane %v6809_v63, 2 }
 0x2fb   : > { %5333 = vrot.lane.b32.xlu1 %v6745_v0, %s5521_s20  ;;  %v8771_v0 = vld [vmem:[#allocation24_spill] sm:$0xff] }
 0x2fc   : > { %v7052_v18 = vpop.permute.xlu0 %1012  ;;  %v1103_v17 = vrot.slane %v8771_v0, 2  ;;  %v1204_v41 = vsel %vm812_vm3, %v1202_v13, %v8573_v14 }
 0x2fd   : > { %v7055_v59 = vpop.permute.xlu1 %1259 }
 0x2fe   : > { %1317 = vrot.lane.b32.xlu0 %v1186_v4, %s5515_s14  ;;  %v1105_v4 = vsel %vm812_vm3, %v1103_v17, %v1104_v29  ;;  %v8574_v17 = vrot.slane %v6902_v22, 2  ;;  %v8774_v29 = vrot.slane %v6765_v27, 2  ;;  %v1211_v27 = vrot.slane %v6891_v1, 2 }
 0x2ff   : > { %5343 = vrot.lane.b32.xlu1 %v8770_v52, %s5522_s21  ;;  %v8773_v52 = vld [vmem:[#allocation32_spill] sm:$0xff]  ;;  %v1133_v1 = vrot.slane %v6873_v42, 2  ;;  %v8779_v42 = vrot.slane %v6743_v54, 2 }
 0x300   : > { %v7066_v47 = vpop.permute.xlu0 %1043  ;;  %v1122_v0 = vrot.slane %v8773_v52, 2  ;;  %v1163_v52 = vsel %vm812_vm3, %v8774_v29, %v8574_v17  ;;  %v1430_v29 = vrot.slane %v6935_v3, 1  ;;  %v1214_v17 = vrot.slane %v6962_v55, 2 }
 0x301   : > { %v7069_v58 = vpop.permute.xlu1 %1031 }
 0x302   : > { %1333 = vrot.lane.b32.xlu0 %v1204_v41, %s5515_s14  ;;  %v1123_v13 = vsel %vm812_vm3, %v1121_v5, %v1122_v0 }
 0x303   : > { %1245 = vrot.lane.b32.xlu1 %v1105_v4, %s5515_s14  ;;  %v1125_v4 = vsel %vm812_vm3, %v1122_v0, %v1124_v11 }
 0x304   : > { %v7079_v23 = vpop.permute.xlu0 %1327 }
 0x305   : > { %v7082_v21 = vpop.permute.xlu1 %1061 }
 0x306   : > { %1247 = vrot.lane.b32.xlu0 %v1107_v37, %s5515_s14  ;;  %v8575_v37 = vrot.slane %v6968_v34, 2 }
 0x307   : > { %1261 = vrot.lane.b32.xlu1 %v1123_v13, %s5515_s14 }
 0x308   : > { %v7088_v41 = vpop.permute.xlu0 %1281 }
 0x309   : > { %v7091_v48 = vpop.permute.xlu1 %1088 }
 0x30a   : > { %1263 = vrot.lane.b32.xlu0 %v1125_v4, %s5515_s14  ;;  %v8776_v4 = vrot.slane %v6910_v45, 2  ;;  %v8777_v45 = vrot.slane %v6945_v46, 1 }
 0x30b   : > { %5353 = vrot.lane.b32.xlu1 %v6879_v10, %s5520_s17 }
 0x30c   : > { %v7097_v30 = vpop.permute.xlu0 %1041  ;;  %v1181_v14 = vsel %vm812_vm3, %v8776_v4, %v8575_v37  ;;  %v1432_v4 = vsel %vm774_vm2, %v1430_v29, %v8777_v45  ;;  %v1151_v29 = vrot.slane %v6952_v15, 2  ;;  %v8780_v15 = vrot.slane %v6757_v53, 2 }
 0x30d   : > { %v7100_v5 = vpop.permute.xlu1 %982 }
 0x30e   : > { %1297 = vrot.lane.b32.xlu0 %v1163_v52, %s5515_s14  ;;  %v1152_v54 = vsel %vm812_vm3, %v8780_v15, %v1151_v29 }
 0x30f   : > { %5363 = vrot.lane.b32.xlu1 %v6881_v38, %s5521_s20  ;;  %v1212_v38 = vrot.slane %v6828_v35, 2  ;;  %v1108_v35 = vrot.slane %v6971_v31, 2  ;;  %v1126_v31 = vrot.slane %v7026_v43, 2 }
 0x310   : > { %v7110_v0 = vpop.permute.xlu0 %1078 }
 0x311   : > { %v7113_v13 = vpop.permute.xlu1 %1307  ;;  %v1213_v3 = vsel %vm812_vm3, %v1211_v27, %v1212_v38  ;;  %v1215_v37 = vsel %vm812_vm3, %v1212_v38, %v1214_v17  ;;  %v1134_v27 = vsel %vm812_vm3, %v8779_v42, %v1133_v1  ;;  %v8576_v38 = vrot.slane %v6937_v40, 1 }
 0x312   : > { %8775 = vst [vmem:[#allocation10_spill] sm:$0xff] %v7113_v13  ;;  %1313 = vrot.lane.b32.xlu0 %v1181_v14, %s5515_s14  ;;  %v1127_v43 = vsel %vm812_vm3, %v1124_v11, %v1126_v31  ;;  %v1205_v11 = vrot.slane %v7016_v19, 2  ;;  %v1135_v19 = vrot.slane %v6981_v33, 2  ;;  %v8580_v33 = vrot.slane %v7034_v24, 2 }
 0x313   : > { %5373 = vrot.lane.b32.xlu1 %v6883_v60, %s5522_s21 }
 0x314   : > { %v7126_v52 = vpop.permute.xlu0 %992 }
 0x315   : > { %v7129_v10 = vpop.permute.xlu1 %1092 }
 0x316   : > { %1464 = vrot.lane.b32.xlu0 %v1432_v4, %s5514_s13 }
 0x317   : > { %1341 = vrot.lane.b32.xlu1 %v1213_v3, %s5515_s14  ;;  %v1109_v3 = vsel %vm812_vm3, %v1106_v44, %v1108_v35  ;;  %v1187_v44 = vrot.slane %v6954_v36, 2  ;;  %v8781_v36 = vrot.slane %v6789_v50, 2  ;;  %v8784_v50 = vrot.slane %v6809_v63, 2 }
 0x318   : > { %v7138_v60 = vpop.permute.xlu0 %1452  ;;  %v1136_v63 = vsel %vm812_vm3, %v1133_v1, %v1135_v19  ;;  %v1154_v1 = vsel %vm812_vm3, %v1151_v29, %v8580_v33 }
 0x319   : > { %8778 = vst [vmem:[#allocation14_spill] sm:$0xff] %v7138_v60  ;;  %v7141_v14 = vpop.permute.xlu1 %1353 }
 0x31a   : > { %1343 = vrot.lane.b32.xlu0 %v1215_v37, %s5515_s14  ;;  %v1421_v37 = vrot.slane %v6927_v8, 1 }
 0x31b   : > { %1271 = vrot.lane.b32.xlu1 %v1134_v27, %s5515_s14 }
 0x31c   : > { %v7152_v45 = vpop.permute.xlu0 %1082  ;;  %v1423_v53 = vsel %vm774_vm2, %v1421_v37, %v8576_v38  ;;  %v1128_v37 = vrot.slane %v6978_v39, 2 }
 0x31d   : > { %v7155_v4 = vpop.permute.xlu1 %1474 }
 0x31e   : > { %1249 = vrot.lane.b32.xlu0 %v1109_v3, %s5515_s14  ;;  %v1110_v3 = vrot.slane %v6912_v20, 2 }
 0x31f   : > { %1287 = vrot.lane.b32.xlu1 %v1152_v54, %s5515_s14 }
 0x320   : > { %v7165_v42 = vpop.permute.xlu0 %1329  ;;  %v1111_v54 = vsel %vm812_vm3, %v1108_v35, %v1110_v3  ;;  %v1129_v35 = vsel %vm812_vm3, %v1126_v31, %v1128_v37  ;;  %v1206_v3 = vsel %vm812_vm3, %v8784_v50, %v1205_v11  ;;  %v1216_v37 = vrot.slane %v7082_v21, 2 }
 0x321   : > { %v7167_v27 = vpop.permute.xlu1 %1063  ;;  %v1433_v21 = vrot.slane %v7091_v48, 1 }
 0x322   : > { %1265 = vrot.lane.b32.xlu0 %v1127_v43, %s5515_s14  ;;  %v1188_v43 = vsel %vm812_vm3, %v8781_v36, %v1187_v44 }
 0x323   : > { %1456 = vrot.lane.b32.xlu1 %v1423_v53, %s5514_s13  ;;  %v1164_v53 = vrot.slane %v7006_v16, 2  ;;  %v8786_v16 = vrot.slane %v6902_v22, 2 }
 0x324   : > { %v7177_v15 = vpop.permute.xlu0 %1283 }
 0x325   : > { %v7179_v8 = vpop.permute.xlu1 %1090  ;;  %v1165_v31 = vsel %vm812_vm3, %v8786_v16, %v1164_v53  ;;  %v8577_v53 = vrot.slane %v7069_v58, 2 }
 0x326   : > { %1251 = vrot.lane.b32.xlu0 %v1111_v54, %s5515_s14  ;;  %v1182_v54 = vrot.slane %v7052_v18, 2  ;;  %v8789_v18 = vrot.slane %v6968_v34, 2  ;;  %v1217_v34 = vsel %vm812_vm3, %v1214_v17, %v1216_v37  ;;  %v8579_v17 = vrot.slane %v7110_v0, 1 }
 0x327   : > { %1319 = vrot.lane.b32.xlu1 %v1188_v43, %s5515_s14  ;;  %v1190_v29 = vsel %vm812_vm3, %v1187_v44, %v8577_v53  ;;  %v1137_v44 = vrot.slane %v7100_v5, 2  ;;  %v1155_v5 = vrot.slane %v7126_v52, 2 }
 0x328   : > { %v7189_v20 = vpop.permute.xlu0 %1331  ;;  %v1183_v22 = vsel %vm812_vm3, %v8789_v18, %v1182_v54  ;;  %v8578_v54 = vrot.slane %v7097_v30, 2 }
 0x329   : > { %8782 = vst [vmem:[#allocation41_spill] sm:$0xff] %v7189_v20  ;;  %v7192_v38 = vpop.permute.xlu1 %1355 }
 0x32a   : > { %8783 = vst [vmem:[#allocation15_spill] sm:$0xff] %v7192_v38  ;;  %1267 = vrot.lane.b32.xlu0 %v1129_v35, %s5515_s14  ;;  %v1208_v18 = vsel %vm812_vm3, %v1205_v11, %v8578_v54  ;;  %v8791_v11 = vrot.slane %v6937_v40, 1  ;;  %v8795_v54 = vld [vmem:[#allocation52_spill] sm:$0xff] }
 0x32b   : > { %1335 = vrot.lane.b32.xlu1 %v1206_v3, %s5515_s14 }
 0x32c   : > { %v7201_v39 = vpop.permute.xlu0 %1080 }
 0x32d   : > { %v7204_v36 = vpop.permute.xlu1 %1476 }
 0x32e   : > { %8785 = vst [vmem:[#allocation44_spill] sm:$0xff] %v7204_v36  ;;  %1299 = vrot.lane.b32.xlu0 %v1165_v31, %s5515_s14  ;;  %v1218_v31 = vrot.slane %v7167_v27, 2  ;;  %v1435_v27 = vrot.slane %v7179_v8, 1  ;;  %v1437_v8 = vrot.slane %v7129_v10, 1 }
 0x32f   : > { %1273 = vrot.lane.b32.xlu1 %v1136_v63, %s5515_s14  ;;  %v8790_v63 = vrot.slane %v6945_v46, 1 }
 0x330   : > { %v7213_v43 = vpop.permute.xlu0 %1454 }
 0x331   : > { %8787 = vst [vmem:[#allocation40_spill] sm:$0xff] %v7213_v43  ;;  %v7216_v35 = vpop.permute.xlu1 %1478  ;;  %v1434_v55 = vsel %vm774_vm2, %v8790_v63, %v1433_v21 }
 0x332   : > { %8788 = vst [vmem:[#allocation42_spill] sm:$0xff] %v7216_v35  ;;  %1315 = vrot.lane.b32.xlu0 %v1183_v22, %s5515_s14 }
 0x333   : > { %1289 = vrot.lane.b32.xlu1 %v1154_v1, %s5515_s14 }
 0x334   : > { %v7227_v50 = vpop.permute.xlu0 %1237 }
 0x335   : > { %v7230_v3 = vpop.permute.xlu1 %1239 }
 0x336   : > { %1345 = vrot.lane.b32.xlu0 %v1217_v34, %s5515_s14 }
 0x337   : > { %1321 = vrot.lane.b32.xlu1 %v1190_v29, %s5515_s14  ;;  %v1219_v29 = vsel %vm812_vm3, %v1216_v37, %v1218_v31  ;;  %v1138_v31 = vsel %vm812_vm3, %v1135_v19, %v1137_v44 }
 0x338   : > { %v5259_v16 = vpop.permute.xlu0 %5258 }
 0x339   : > { %v7242_v48 = vpop.permute.xlu1 %1241  ;;  %v5261_v1 = vunpack.i.h.bf16 %v5259_v16  ;;  %v5260_v34 = vunpack.i.l.bf16 %v5259_v16  ;;  %v1436_v16 = vsel %vm774_vm2, %v1433_v21, %v1435_v27 }
 0x33a   : > { %1466 = vrot.lane.b32.xlu0 %v1434_v55, %s5514_s13  ;;  %v1425_v55 = vsel %vm774_vm2, %v8791_v11, %v8579_v17  ;;  %v8796_v11 = vld [vmem:[#allocation53_spill] sm:$0xff] }
 0x33b   : > { %1337 = vrot.lane.b32.xlu1 %v1208_v18, %s5515_s14  ;;  %v8792_v18 = vld [vmem:[#allocation2_spill] sm:$0xff]  ;;  %v8797_v17 = vcombine.low %v8795_v54, %v8796_v11  ;;  %v8802_v11 = vld [vmem:[#allocation16_spill] sm:$0xff] }
 0x33c   : > { %v5269_v22 = vpop.permute.xlu0 %5268 }
 0x33d   : > { %v5264_v46 = vpop.permute.xlu1 %5263  ;;  %v5271_v63 = vunpack.i.h.bf16 %v5269_v22  ;;  %v5270_v53 = vunpack.i.l.bf16 %v5269_v22  ;;  %v8793_v22 = vld [vmem:[#allocation8_spill] sm:$0xff] }
 0x33e   : > { %1347 = vrot.lane.b32.xlu0 %v1219_v29, %s5515_s14  ;;  %v8794_v29 = vcombine.low %v8792_v18, %v8793_v22  ;;  %v5266_v35 = vunpack.i.h.bf16 %v5264_v46  ;;  %v5265_v10 = vunpack.i.l.bf16 %v5264_v46  ;;  %v1438_v22 = vsel %vm774_vm2, %v1435_v27, %v1437_v8 }
 0x33f   : > { %1458 = vrot.lane.b32.xlu1 %v1425_v55, %s5514_s13  ;;  %v4442_v55 = vsel %vm4424_vm6, %v8797_v17, %v5260_v34  ;;  %v8798_v46 = vrot.slane %v7034_v24, 2 }
 0x340   : > { %v5279_v37 = vpop.permute.xlu0 %5278  ;;  %v4443_v40 = vsel %vm4424_vm6, %v8794_v29, %v5261_v1  ;;  %v4447_v21 = vsel %vm4430_vm7, %v4442_v55, %v5270_v53  ;;  %v8799_v53 = vld [vmem:[#allocation9_spill] sm:$0xff] }
 0x341   : > { %v5281_v33 = vunpack.i.h.bf16 %v5279_v37  ;;  %v5280_v43 = vunpack.i.l.bf16 %v5279_v37  ;;  %v5274_v52 = vpop.permute.xlu1 %5273  ;;  %v4448_v19 = vsel %vm4430_vm7, %v4443_v40, %v5271_v63  ;;  %v8800_v29 = vld [vmem:[#allocation17_spill] sm:$0xff] }
 0x342   : > { %1468 = vrot.lane.b32.xlu0 %v1436_v16, %s5514_s13  ;;  %v5276_v44 = vunpack.i.h.bf16 %v5274_v52  ;;  %v5275_v18 = vunpack.i.l.bf16 %v5274_v52  ;;  %v1156_v16 = vsel %vm812_vm3, %v8798_v46, %v1155_v5  ;;  %v8801_v63 = vcombine.low %v8799_v53, %v8800_v29 }
 0x343   : > { %1275 = vrot.lane.b32.xlu1 %v1138_v31, %s5515_s14  ;;  %v4452_v1 = vsel %vm4436_vm8, %v4447_v21, %v5280_v43  ;;  %v4453_v54 = vsel %vm4436_vm8, %v4448_v19, %v5281_v33  ;;  %v8803_v31 = vld [vmem:[#allocation3_spill] sm:$0xff]  ;;  %v1191_v5 = vrot.slane %v7018_v28, 2  ;;  %v8807_v29 = vrot.slane %v7110_v0, 1 }
 0x344   : > { %v5294_v17 = vpop.permute.xlu0 %5293  ;;  %v5202_v34 = vpack.c.bf16 %v4453_v54, %v4452_v1  ;;  %v4426_v40 = vsel %vm4424_vm6, %v8801_v63, %v5266_v35  ;;  %v8804_v55 = vcombine.low %v8802_v11, %v8803_v31  ;;  %v8805_v1 = vrot.slane %v7069_v58, 2 }
 0x345   : > { %v5284_v37 = vpop.permute.xlu1 %5283  ;;  %v4432_v24 = vsel %vm4430_vm7, %v4426_v40, %v5276_v44  ;;  %v1209_v44 = vrot.slane %v7066_v47, 2  ;;  %v1428_v47 = vrot.slane %v7152_v45, 1  ;;  %v5295_v31 = vunpack.i.l.bf16 %v5294_v17 }
 0x346   : > { %v4425_v43 = vsel %vm4424_vm6, %v8804_v55, %v5265_v10  ;;  %v5286_v33 = vunpack.i.h.bf16 %v5284_v37  ;;  %v5285_v52 = vunpack.i.l.bf16 %v5284_v37  ;;  %5203 = vmatprep.subr.bf16.mxu1 %v5202_v34  ;;  %1470 = vrot.lane.b32.xlu0 %v1438_v22, %s5514_s13  ;;  %v1192_v54 = vsel %vm812_vm3, %v8805_v1, %v1191_v5  ;;  %v8812_v5 = vld [vmem:[#allocation56_spill] sm:$0xff] }
 0x347   : > { %v4431_v27 = vsel %vm4430_vm7, %v4425_v43, %v5275_v18  ;;  %1291 = vrot.lane.b32.xlu1 %v1156_v16, %s5515_s14  ;;  %v1426_v34 = vrot.slane %v7201_v39, 1  ;;  %v8806_v37 = vrot.slane %v7097_v30, 2  ;;  %v5296_v30 = vunpack.i.h.bf16 %v5294_v17 }
 0x348   : > { %v4437_v35 = vsel %vm4436_vm8, %v4431_v27, %v5285_v52  ;;  %v4438_v8 = vsel %vm4436_vm8, %v4432_v24, %v5286_v33  ;;  %v5304_v21 = vpop.permute.xlu0 %5303  ;;  %v8808_v33 = vld [vmem:[#allocation21_spill] sm:$0xff]  ;;  %v8811_v24 = vld [vmem:[#allocation18_spill] sm:$0xff] }
 0x349   : > { %v7300_v19 = vpop.permute.xlu1 %1243  ;;  %v5204_v10 = vpack.c.bf16 %v4438_v8, %v4437_v35  ;;  %v1210_v22 = vsel %vm812_vm3, %v8806_v37, %v1209_v44  ;;  %v1427_v63 = vsel %vm774_vm2, %v8807_v29, %v1426_v34  ;;  %v1429_v43 = vsel %vm774_vm2, %v1426_v34, %v1428_v47  ;;  %v8809_v52 = vld [vmem:[#allocation25_spill] sm:$0xff]  ;;  %v8820_v47 = vld [vmem:[#allocation55_spill] sm:$0xff] }
 0x34a   : > { %v8810_v27 = vcombine.low %v8808_v33, %v8809_v52  ;;  %v8813_v35 = vcombine.low %v8811_v24, %v8812_v5  ;;  %v5306_v1 = vunpack.i.h.bf16 %v5304_v21 }
 0x34b   : > { %1323 = vrot.lane.b32.xlu1 %v1192_v54, %s5515_s14  ;;  %5205 = vmatpush1.bf16.msra.mxu1 %v5204_v10  ;;  %v5305_v54 = vunpack.i.l.bf16 %v5304_v21  ;;  %v8817_v21 = vld [vmem:[#allocation23_spill] sm:$0xff] }
 0x34c   : > { %v7307_v18 = vpop.permute.xlu0 %5328 }
 0x34d   : > { %v5289_v28 = vpop.permute.xlu1 %5288 }
 0x34e   : > { %v5291_v16 = vunpack.i.h.bf16 %v5289_v28  ;;  %v5290_v53 = vunpack.i.l.bf16 %v5289_v28 }
 0x34f   : > { %1339 = vrot.lane.b32.xlu1 %v1210_v22, %s5515_s14 }
 0x350   : > { %v5339_v46 = vpop.permute.xlu0 %5338  ;;  %v4473_v0 = vsel %vm4424_vm6, %v8810_v27, %v5291_v16  ;;  %v4472_v45 = vsel %vm4424_vm6, %v8813_v35, %v5290_v53  ;;  %v8816_v16 = vld [vmem:[#allocation5_spill] sm:$0xff] }
 0x351   : > { %v5299_v58 = vpop.permute.xlu1 %5298  ;;  %v8818_v53 = vcombine.low %v8816_v16, %v8817_v21  ;;  %v8824_v16 = vld [vmem:[#allocation31_spill] sm:$0xff]  ;;  %v8825_v21 = vld [vmem:[#allocation28_spill] sm:$0xff] }
 0x352   : > { %v5301_v40 = vunpack.i.h.bf16 %v5299_v58  ;;  %v5300_v11 = vunpack.i.l.bf16 %v5299_v58 }
 0x353   : > { %1460 = vrot.lane.b32.xlu1 %v1427_v63, %s5514_s13  ;;  %v4458_v29 = vsel %vm4424_vm6, %v8818_v53, %v5296_v30  ;;  %v8819_v63 = vld [vmem:[#allocation7_spill] sm:$0xff]  ;;  %v8826_v53 = vcombine.low %v8824_v16, %v8825_v21 }
 0x354   : > { %v7319_v39 = vpop.permute.xlu0 %1269  ;;  %v4477_v17 = vsel %vm4430_vm7, %v4472_v45, %v5300_v11  ;;  %v4478_v44 = vsel %vm4430_vm7, %v4473_v0, %v5301_v40  ;;  %v8821_v40 = vcombine.low %v8819_v63, %v8820_v47  ;;  %v4463_v52 = vsel %vm4430_vm7, %v4458_v29, %v5306_v1  ;;  %v8827_v63 = vld [vmem:[#allocation27_spill] sm:$0xff]  ;;  %v8828_v47 = vld [vmem:[#allocation22_spill] sm:$0xff] }
 0x355   : > { %v5309_v55 = vpop.permute.xlu1 %5308 }
 0x356   : > { %v5311_v8 = vunpack.i.h.bf16 %v5309_v55  ;;  %v5310_v10 = vunpack.i.l.bf16 %v5309_v55  ;;  %v4457_v11 = vsel %vm4424_vm6, %v8821_v40, %v5295_v31  ;;  %v8829_v40 = vcombine.low %v8827_v63, %v8828_v47  ;;  %v8832_v47 = vld [vmem:[#allocation12_spill] sm:$0xff] }
 0x357   : > { %1462 = vrot.lane.b32.xlu1 %v1429_v43, %s5514_s13  ;;  %v4462_v33 = vsel %vm4430_vm7, %v4457_v11, %v5305_v54  ;;  %v5331_v54 = vunpack.i.h.bf16 %v7307_v18 }
 0x358   : > { %v7333_v28 = vpop.permute.xlu0 %1285  ;;  %v7336_v34 = vsel %vm4436_vm8, %v4477_v17, %v5310_v10  ;;  %v7339_v37 = vsel %vm4436_vm8, %v4478_v44, %v5311_v8  ;;  %v5330_v17 = vunpack.i.l.bf16 %v7307_v18  ;;  %v5341_v44 = vunpack.i.h.bf16 %v5339_v46 }
 0x359   : > { %8814 = vst [vmem:[#allocation45_spill] sm:$0xff] %v7336_v34  ;;  %8815 = vst [vmem:[#allocation43_spill] sm:$0xff] %v7339_v37  ;;  %v5314_v22 = vpop.permute.xlu1 %5313 }
 0x35a   : > { %v5316_v55 = vunpack.i.h.bf16 %v5314_v22  ;;  %v5315_v43 = vunpack.i.l.bf16 %v5314_v22  ;;  %v5340_v22 = vunpack.i.l.bf16 %v5339_v46 }
 0x35c   : > { %v7354_v27 = vsel %vm4436_vm8, %v4463_v52, %v5316_v55  ;;  %v7357_v0 = vsel %vm4436_vm8, %v4462_v33, %v5315_v43  ;;  %v7359_v24 = vpop.permute.xlu0 %1295 }
 0x35d   : > { %8822 = vst [vmem:[#allocation46_spill] sm:$0xff] %v7354_v27  ;;  %8823 = vst [vmem:[#allocation47_spill] sm:$0xff] %v7357_v0  ;;  %v7361_v30 = vpop.permute.xlu1 %1293  ;;  %v8852_v27 = vld [vmem:[#allocation57_spill] sm:$0xff] }
 0x360   : > { %v7365_v31 = vpop.permute.xlu0 %1311 }
 0x361   : > { %v7367_v35 = vpop.permute.xlu1 %1309 }
 0x364   : > { %v5349_v45 = vpop.permute.xlu0 %5348 }
 0x365   : > { %v5319_v8 = vpop.permute.xlu1 %5318  ;;  %v5351_v43 = vunpack.i.h.bf16 %v5349_v45  ;;  %v5350_v33 = vunpack.i.l.bf16 %v5349_v45  ;;  %v8833_v45 = vld [vmem:[#allocation19_spill] sm:$0xff] }
 0x366   : > { %v5321_v10 = vunpack.i.h.bf16 %v5319_v8  ;;  %v5320_v1 = vunpack.i.l.bf16 %v5319_v8 }
 0x368   : > { %v4503_v29 = vsel %vm4424_vm6, %v8826_v53, %v5321_v10  ;;  %v4502_v11 = vsel %vm4424_vm6, %v8829_v40, %v5320_v1  ;;  %v5359_v55 = vpop.permute.xlu0 %5358  ;;  %v8830_v53 = vld [vmem:[#allocation38_spill] sm:$0xff]  ;;  %v8834_v40 = vcombine.low %v8832_v47, %v8833_v45 }
 0x369   : > { %v5324_v52 = vpop.permute.xlu1 %5323  ;;  %v4507_v8 = vsel %vm4430_vm7, %v4502_v11, %v5330_v17  ;;  %v4508_v18 = vsel %vm4430_vm7, %v4503_v29, %v5331_v54  ;;  %v5361_v5 = vunpack.i.h.bf16 %v5359_v55  ;;  %v5360_v46 = vunpack.i.l.bf16 %v5359_v55 }
 0x36a   : > { %v4512_v58 = vsel %vm4436_vm8, %v4507_v8, %v5340_v22  ;;  %v4513_v16 = vsel %vm4436_vm8, %v4508_v18, %v5341_v44  ;;  %v8831_v63 = vcombine.low %v6836_v49, %v8830_v53  ;;  %v4532_v17 = vsel %vm4424_vm6, %v8834_v40, %v5350_v33 }
 0x36b   : > { %v5218_v10 = vpack.c.bf16 %v4513_v16, %v4512_v58  ;;  %v5326_v55 = vunpack.i.h.bf16 %v5324_v52  ;;  %v5325_v22 = vunpack.i.l.bf16 %v5324_v52  ;;  %v4537_v44 = vsel %vm4430_vm7, %v4532_v17, %v5360_v46  ;;  %v8838_v52 = vld [vmem:[#allocation11_spill] sm:$0xff] }
 0x36c   : > { %v5369_v21 = vpop.permute.xlu0 %5368  ;;  %v4533_v1 = vsel %vm4424_vm6, %v8831_v63, %v5351_v43  ;;  %v8841_v63 = vld [vmem:[#allocation26_spill] sm:$0xff] }
 0x36d   : > { %v5371_v11 = vunpack.i.h.bf16 %v5369_v21  ;;  %v5370_v54 = vunpack.i.l.bf16 %v5369_v21  ;;  %v5334_v29 = vpop.permute.xlu1 %5333  ;;  %5219 = vmatprep.subr.bf16.mxu0 %v5218_v10  ;;  %v4538_v58 = vsel %vm4430_vm7, %v4533_v1, %v5361_v5  ;;  %v8837_v21 = vld [vmem:[#allocation13_spill] sm:$0xff]  ;;  %v8840_v5 = vld [vmem:[#allocation6_spill] sm:$0xff] }
 0x36e   : > { %v5336_v8 = vunpack.i.h.bf16 %v5334_v29  ;;  %v5335_v18 = vunpack.i.l.bf16 %v5334_v29  ;;  %v8839_v53 = vcombine.low %v8837_v21, %v8838_v52  ;;  %v8842_v1 = vcombine.low %v8840_v5, %v8841_v63  ;;  %v8844_v63 = vld [vmem:[#allocation51_spill] sm:$0xff] }
 0x36f   : > { %v7394_v49 = vsel %vm4436_vm8, %v4537_v44, %v5370_v54  ;;  %v7397_v43 = vsel %vm4436_vm8, %v4538_v58, %v5371_v11 }
 0x370   : > { %8835 = vst [vmem:[#allocation48_spill] sm:$0xff] %v7394_v49  ;;  %8836 = vst [vmem:[#allocation50_spill] sm:$0xff] %v7397_v43  ;;  %v7399_v16 = vpop.permute.xlu0 %1317  ;;  %v4488_v46 = vsel %vm4424_vm6, %v8839_v53, %v5326_v55  ;;  %v4487_v47 = vsel %vm4424_vm6, %v8842_v1, %v5325_v22  ;;  %v8843_v55 = vld [vmem:[#allocation54_spill] sm:$0xff]  ;;  %v1784_v53 = vcombine.low %v7227_v50, %v6919_v57 }
 0x371   : > { %v5344_v10 = vpop.permute.xlu1 %5343  ;;  %v4492_v17 = vsel %vm4430_vm7, %v4487_v47, %v5335_v18  ;;  %v4493_v11 = vsel %vm4430_vm7, %v4488_v46, %v5336_v8  ;;  %v1785_v22 = vcombine.high %v7227_v50, %v6919_v57  ;;  %v1817_v46 = vcombine.high %v7319_v39, %v7333_v28 }
 0x372   : > { %v5346_v45 = vunpack.i.h.bf16 %v5344_v10  ;;  %v5345_v40 = vunpack.i.l.bf16 %v5344_v10  ;;  %v1816_v10 = vcombine.low %v7319_v39, %v7333_v28  ;;  %v2396_v50 = vcombine.low %v7230_v3, %v6929_v9 }
 0x373   : > { %v2397_v39 = vcombine.high %v7230_v3, %v6929_v9 }
 0x374   : > { %v4497_v54 = vsel %vm4436_vm8, %v4492_v17, %v5345_v40  ;;  %v4498_v29 = vsel %vm4436_vm8, %v4493_v11, %v5346_v45  ;;  %v7415_v44 = vpop.permute.xlu0 %1333  ;;  %v8845_v45 = vld [vmem:[#allocation36_spill] sm:$0xff]  ;;  %v7440_v17 = vrot.slane %v1784_v53, %v8844_v63  ;;  %v7443_v11 = vrot.slane %v1785_v22, %v8844_v63 }
 0x375   : > { %v1246_v58 = vpop.permute.xlu1 %1245  ;;  %v5220_v21 = vpack.c.bf16 %v4498_v29, %v4497_v54  ;;  %v7450_v54 = vrot.slane %v1816_v10, %v8844_v63  ;;  %v7453_v29 = vrot.slane %v1817_v46, %v8844_v63  ;;  %v7466_v3 = vrot.slane %v2396_v50, %v8844_v63 }
 0x376   : > { %v1768_v52 = vcombine.low %v8843_v55, %v1246_v58  ;;  %v1769_v18 = vcombine.high %v8843_v55, %v1246_v58  ;;  %v7469_v53 = vrot.slane %v2397_v39, %v8844_v63  ;;  %v3008_v22 = vcombine.low %v7242_v48, %v7045_v25  ;;  %v8846_v39 = vld [vmem:[#allocation4_spill] sm:$0xff] }
 0x377   : > { %5221 = vmatpush1.bf16.msra.mxu0 %v5220_v21 }
 0x378   : > { %v7423_v8 = vpop.permute.xlu0 %1247  ;;  %v7430_v1 = vrot.slane %v1768_v52, %v8844_v63  ;;  %v7433_v47 = vrot.slane %v1769_v18, %v8844_v63 }
 0x379   : > { %v1262_v5 = vpop.permute.xlu1 %1261 }
 0x37a   : > { %v1800_v57 = vcombine.low %v1262_v5, %v8845_v45  ;;  %v1801_v40 = vcombine.high %v1262_v5, %v8845_v45  ;;  %v1832_v21 = vcombine.low %v7430_v1, %v7440_v17  ;;  %v1848_v55 = vcombine.low %v7433_v47, %v7443_v11 }
 0x37b   : > { %v3009_v5 = vcombine.high %v7242_v48, %v7045_v25  ;;  %v1904_v45 = vcombine.low %v7361_v30, %v7367_v35  ;;  %v1920_v25 = vcombine.low %v6899_v2, %v7399_v16  ;;  %v1921_v48 = vcombine.high %v6899_v2, %v7399_v16 }
 0x37c   : > { %v7447_v28 = vpop.permute.xlu0 %1263  ;;  %v7460_v52 = vrot.slane %v1800_v57, %v8844_v63  ;;  %v7463_v9 = vrot.slane %v1801_v40, %v8844_v63  ;;  %v7484_v33 = vrot.slane %v1832_v21, %v8846_v39  ;;  %v7487_v49 = vrot.slane %v1848_v55, %v8846_v39  ;;  %v8853_v55 = vld [vmem:[#allocation33_spill] sm:$0xff] }
 0x37d   : > { %v5354_v58 = vpop.permute.xlu1 %5353  ;;  %v8854_v34 = vcombine.low %v8852_v27, %v8853_v55  ;;  %v7514_v2 = vrot.slane %v3008_v22, %v8844_v63  ;;  %v3621_v22 = vcombine.high %v7300_v19, %v7055_v59  ;;  %v1935_v55 = vrot.slane %v1921_v48, %v8844_v63 }
 0x37e   : > { %v1864_v18 = vcombine.low %v7460_v52, %v7450_v54  ;;  %v1880_v10 = vcombine.low %v7463_v9, %v7453_v29  ;;  %v5356_v57 = vunpack.i.h.bf16 %v5354_v58  ;;  %v5355_v50 = vunpack.i.l.bf16 %v5354_v58  ;;  %8847 = vst [vmem:[#allocation49_spill] sm:$0xff] %v7484_v33  ;;  %8848 = vst [vmem:[#allocation34_spill] sm:$0xff] %v7487_v49 }
 0x37f   : > { %v8851_v58 = vcombine.low %v6832_v61, %v6841_v6  ;;  %v7517_v61 = vrot.slane %v3009_v5, %v8844_v63  ;;  %v3620_v6 = vcombine.low %v7300_v19, %v7055_v59  ;;  %v1928_v5 = vrot.slane %v1920_v25, %v8844_v63  ;;  %v8857_v19 = vld [vmem:[#allocation20_spill] sm:$0xff] }
 0x380   : > { %v7477_v46 = vpop.permute.xlu0 %1297  ;;  %v7490_v43 = vrot.slane %v1864_v18, %v8846_v39  ;;  %v7493_v0 = vrot.slane %v1880_v10, %v8846_v39  ;;  %v4517_v18 = vsel %vm4424_vm6, %v8854_v34, %v5355_v50  ;;  %v1905_v34 = vcombine.high %v7361_v30, %v7367_v35 }
 0x381   : > { %v5364_v40 = vpop.permute.xlu1 %5363  ;;  %v4518_v21 = vsel %vm4424_vm6, %v8851_v58, %v5356_v57  ;;  %v1912_v58 = vrot.slane %v1904_v45, %v8844_v63  ;;  %v1952_v10 = vcombine.low %v7415_v44, %v6990_v32  ;;  %v1953_v30 = vcombine.high %v7415_v44, %v6990_v32 }
 0x382   : > { %8849 = vst [vmem:[#allocation24_spill] sm:$0xff] %v7490_v43  ;;  %8850 = vst [vmem:[#allocation35_spill] sm:$0xff] %v7493_v0  ;;  %v5366_v60 = vunpack.i.h.bf16 %v5364_v40  ;;  %v5365_v36 = vunpack.i.l.bf16 %v5364_v40  ;;  %v1919_v59 = vrot.slane %v1905_v34, %v8844_v63  ;;  %v2380_v45 = vcombine.low %v8857_v19, %v7423_v8 }
 0x383   : > { %v2381_v25 = vcombine.high %v8857_v19, %v7423_v8  ;;  %v7550_v44 = vrot.slane %v3620_v6, %v8844_v63 }
 0x384   : > { %v7511_v38 = vpop.permute.xlu0 %1313  ;;  %v4522_v16 = vsel %vm4430_vm7, %v4517_v18, %v5365_v36  ;;  %v4523_v57 = vsel %vm4430_vm7, %v4518_v21, %v5366_v60  ;;  %v2516_v21 = vcombine.low %v7359_v24, %v7365_v31  ;;  %v1984_v8 = vcombine.low %v1919_v59, %v1935_v55 }
 0x385   : > { %v5374_v27 = vpop.permute.xlu1 %5373  ;;  %8858 = vst [vmem:[#allocation8_spill] sm:$0xff] %v7550_v44  ;;  %v1985_v37 = vcombine.high %v1919_v59, %v1935_v55  ;;  %v2413_v59 = vcombine.high %v7447_v28, %v7003_v12 }
 0x386   : > { %v5376_v50 = vunpack.i.h.bf16 %v5374_v27  ;;  %v5375_v40 = vunpack.i.l.bf16 %v5374_v27  ;;  %v2517_v27 = vcombine.high %v7359_v24, %v7365_v31  ;;  %v7568_v24 = vrot.slane %v2381_v25, %v8844_v63 }
 0x387   : > { %v7621_v13 = vrot.slane %v2413_v59, %v8844_v63 }
 0x388   : > { %v7535_v36 = vsel %vm4436_vm8, %v4522_v16, %v5375_v40  ;;  %v7538_v60 = vsel %vm4436_vm8, %v4523_v57, %v5376_v50  ;;  %v7540_v35 = vpop.permute.xlu0 %1464  ;;  %v1968_v16 = vcombine.low %v1912_v58, %v1928_v5  ;;  %v1969_v57 = vcombine.high %v1912_v58, %v1928_v5 }
 0x389   : > { %8855 = vst [vmem:[#allocation32_spill] sm:$0xff] %v7535_v36  ;;  %8856 = vst [vmem:[#allocation2_spill] sm:$0xff] %v7538_v60  ;;  %v1342_v32 = vpop.permute.xlu1 %1341  ;;  %v1960_v50 = vrot.slane %v1952_v10, %v8844_v63  ;;  %v1967_v40 = vrot.slane %v1953_v30, %v8844_v63  ;;  %v7571_v10 = vrot.slane %v3621_v22, %v8844_v63 }
 0x38a   : > { %v1936_v18 = vcombine.low %v6921_v7, %v1342_v32  ;;  %v1937_v34 = vcombine.high %v6921_v7, %v1342_v32  ;;  %v1833_v7 = vcombine.high %v7430_v1, %v7440_v17  ;;  %v2388_v32 = vrot.slane %v2380_v45, %v8844_v63 }
 0x38b   : > { %v7574_v58 = vrot.slane %v2516_v21, %v8844_v63  ;;  %v7580_v55 = vrot.slane %v1968_v16, %v8846_v39  ;;  %v7583_v1 = vrot.slane %v1969_v57, %v8846_v39  ;;  %v7586_v17 = vrot.slane %v1984_v8, %v8846_v39 }
 0x38c   : > { %v1944_v6 = vrot.slane %v1936_v18, %v8844_v63  ;;  %v1951_v19 = vrot.slane %v1937_v34, %v8844_v63  ;;  %v7562_v48 = vpop.permute.xlu0 %1343  ;;  %v7577_v18 = vrot.slane %v2517_v27, %v8844_v63  ;;  %v2412_v22 = vcombine.low %v7447_v28, %v7003_v12 }
 0x38d   : > { %v1272_v31 = vpop.permute.xlu1 %1271  ;;  %8859 = vst [vmem:[#allocation52_spill] sm:$0xff] %v7580_v55  ;;  %8860 = vst [vmem:[#allocation53_spill] sm:$0xff] %v7586_v17  ;;  %v7601_v34 = vrot.slane %v1985_v37, %v8846_v39  ;;  %v7604_v27 = vrot.slane %v1833_v7, %v8846_v39  ;;  %v2444_v16 = vcombine.low %v2388_v32, %v7466_v3 }
 0x38e   : > { %v2000_v5 = vcombine.low %v1944_v6, %v1960_v50  ;;  %v2016_v30 = vcombine.low %v1951_v19, %v1967_v40  ;;  %v2460_v57 = vcombine.low %v7568_v24, %v7469_v53  ;;  %v1865_v37 = vcombine.high %v7460_v52, %v7450_v54 }
 0x38f   : > { %v1881_v7 = vcombine.high %v7463_v9, %v7453_v29  ;;  %v2001_v36 = vcombine.high %v1944_v6, %v1960_v50  ;;  %v2017_v60 = vcombine.high %v1951_v19, %v1967_v40  ;;  %v7618_v20 = vrot.slane %v2412_v22, %v8844_v63 }
 0x390   : > { %v7593_v45 = vrot.slane %v2000_v5, %v8846_v39  ;;  %v7596_v25 = vrot.slane %v2016_v30, %v8846_v39  ;;  %v7598_v21 = vpop.permute.xlu0 %1249  ;;  %v1849_v54 = vcombine.high %v7433_v47, %v7443_v11  ;;  %v2445_v29 = vcombine.high %v2388_v32, %v7466_v3 }
 0x391   : > { %v1288_v12 = vpop.permute.xlu1 %1287  ;;  %v7635_v52 = vrot.slane %v2444_v16, %v8846_v39  ;;  %v7638_v9 = vrot.slane %v2460_v57, %v8846_v39  ;;  %v7651_v11 = vrot.slane %v1865_v37, %v8846_v39  ;;  %v7654_v3 = vrot.slane %v1881_v7, %v8846_v39  ;;  %v8867_v37 = vld [vmem:[#allocation29_spill] sm:$0xff] }
 0x392   : > { %8861 = vst [vmem:[#allocation9_spill] sm:$0xff] %v7593_v45  ;;  %8862 = vst [vmem:[#allocation17_spill] sm:$0xff] %v7596_v25  ;;  %v2428_v5 = vcombine.low %v1272_v31, %v1288_v12  ;;  %v2429_v30 = vcombine.high %v1272_v31, %v1288_v12  ;;  %v2037_v19 = vcombine.high %v7586_v17, %v7596_v25 }
 0x393   : > { %8863 = vst [vmem:[#allocation16_spill] sm:$0xff] %v7635_v52  ;;  %8864 = vst [vmem:[#allocation3_spill] sm:$0xff] %v7638_v9  ;;  %v2033_v47 = vcombine.high %v7580_v55, %v7593_v45  ;;  %v7657_v32 = vrot.slane %v2001_v36, %v8846_v39  ;;  %v7660_v22 = vrot.slane %v2017_v60, %v8846_v39 }
 0x394   : > { %v7624_v28 = vrot.slane %v2428_v5, %v8844_v63  ;;  %v7627_v8 = vrot.slane %v2429_v30, %v8844_v63  ;;  %v7629_v31 = vpop.permute.xlu0 %1265  ;;  %v1901_v57 = vcombine.high %v7487_v49, %v7493_v0  ;;  %v1897_v12 = vcombine.high %v7484_v33, %v7490_v43 }
 0x395   : > { %v7640_v50 = vpop.permute.xlu1 %1456  ;;  %v7675_v36 = vrot.slane %v1849_v54, %v8846_v39  ;;  %v7678_v60 = vrot.slane %v2445_v29, %v8846_v39  ;;  %v2461_v30 = vcombine.high %v7568_v24, %v7469_v53  ;;  %v2992_v7 = vcombine.low %v8867_v37, %v7598_v21 }
 0x396   : > { %v2476_v40 = vcombine.low %v7618_v20, %v7624_v28  ;;  %v2492_v6 = vcombine.low %v7621_v13, %v7627_v8  ;;  %v5377_v33 = vpack.i.bf16 %v2037_v19, %v1901_v57  ;;  %v5382_v45 = vpack.i.bf16 %v2033_v47, %v1897_v12 }
 0x397   : > { %v3128_v54 = vcombine.low %v7477_v46, %v7511_v38  ;;  %v2993_v29 = vcombine.high %v8867_v37, %v7598_v21  ;;  %v2038_v53 = vcombine.low %v7601_v34, %v7660_v22  ;;  %v2034_v24 = vcombine.low %v7583_v1, %v7657_v32 }
 0x398   : > { %v7663_v59 = vrot.slane %v2476_v40, %v8846_v39  ;;  %v7666_v16 = vrot.slane %v2492_v6, %v8846_v39  ;;  %v7672_v5 = vpop.permute.xlu0 %1251  ;;  %v3129_v6 = vcombine.high %v7477_v46, %v7511_v38  ;;  %5378 = vrot.lane.b32.xlu0 %v5377_v33, %s5520_s17  ;;  %5383 = vrot.lane.b32.xlu1 %v5382_v45, %s5520_s17 }
 0x399   : > { %v1320_v40 = vpop.permute.xlu1 %1319  ;;  %v1902_v19 = vcombine.low %v7675_v36, %v7654_v3  ;;  %v1898_v47 = vcombine.low %v7604_v27, %v7651_v11  ;;  %v2040_v21 = vcombine.low %v6960_v26, %v7540_v35  ;;  %v2041_v57 = vcombine.high %v6960_v26, %v7540_v35 }
 0x39a   : > { %8865 = vst [vmem:[#allocation21_spill] sm:$0xff] %v7663_v59  ;;  %8866 = vst [vmem:[#allocation25_spill] sm:$0xff] %v7666_v16  ;;  %v2548_v12 = vcombine.low %v7079_v23, %v7562_v48  ;;  %v2057_v38 = vcombine.high %v7640_v50, %v7028_v51  ;;  %v2549_v45 = vcombine.high %v7079_v23, %v7562_v48 }
 0x39b   : > { %v7717_v37 = vrot.slane %v2992_v7, %v8844_v63  ;;  %v2532_v43 = vcombine.low %v6893_v56, %v1320_v40  ;;  %v2533_v55 = vcombine.high %v6893_v56, %v1320_v40  ;;  %v7722_v26 = vrot.slane %v2993_v29, %v8844_v63 }
 0x39c   : > { %v7712_v33 = vpop.permute.xlu0 %1267  ;;  %v2056_v35 = vcombine.low %v7640_v50, %v7028_v51  ;;  %v5387_v25 = vpack.i.bf16 %v2038_v53, %v1902_v19  ;;  %v5392_v17 = vpack.i.bf16 %v2034_v24, %v1898_v47  ;;  %v7727_v0 = vrot.slane %v2461_v30, %v8846_v39 }
 0x39d   : > { %v1336_v46 = vpop.permute.xlu1 %1335  ;;  %v7730_v23 = vrot.slane %v3128_v54, %v8844_v63  ;;  %v7733_v48 = vrot.slane %v3129_v6, %v8844_v63  ;;  %v1903_v56 = vcombine.high %v7675_v36, %v7654_v3  ;;  %v7738_v7 = vrot.slane %v2040_v21, %v8844_v63 }
 0x39e   : > { %v2071_v40 = vrot.slane %v2057_v38, %v8844_v63  ;;  %5388 = vrot.lane.b32.xlu0 %v5387_v25, %s5521_s20  ;;  %5393 = vrot.lane.b32.xlu1 %v5392_v17, %s5521_s20  ;;  %v1899_v51 = vcombine.high %v7604_v27, %v7651_v11  ;;  %v2055_v30 = vrot.slane %v2041_v57, %v8844_v63 }
 0x39f   : > { %v7747_v6 = vrot.slane %v2548_v12, %v8844_v63  ;;  %v7750_v3 = vrot.slane %v2532_v43, %v8844_v63  ;;  %v7753_v36 = vrot.slane %v2533_v55, %v8844_v63  ;;  %v7756_v54 = vrot.slane %v2549_v45, %v8844_v63 }
 0x3a0   : > { %v3056_v17 = vcombine.low %v7717_v37, %v7514_v2  ;;  %v3072_v25 = vcombine.low %v7722_v26, %v7517_v61  ;;  %v2064_v27 = vrot.slane %v2056_v35, %v8844_v63  ;;  %v7763_v11 = vpop.permute.xlu0 %1299  ;;  %v2477_v43 = vcombine.high %v7618_v20, %v7624_v28 }
 0x3a1   : > { %v1274_v50 = vpop.permute.xlu1 %1273  ;;  %v3024_v55 = vcombine.low %v7629_v31, %v7088_v41  ;;  %v2564_v29 = vcombine.low %v1336_v46, %v7036_v62  ;;  %v2565_v53 = vcombine.high %v1336_v46, %v7036_v62  ;;  %v2088_v19 = vcombine.low %v2055_v30, %v2071_v40 }
 0x3a2   : > { %v2039_v47 = vcombine.high %v7601_v34, %v7660_v22  ;;  %v2035_v21 = vcombine.high %v7583_v1, %v7657_v32  ;;  %v2580_v20 = vcombine.low %v7574_v58, %v7750_v3  ;;  %v2596_v28 = vcombine.low %v7577_v18, %v7753_v36 }
 0x3a3   : > { %v2572_v12 = vrot.slane %v2564_v29, %v8844_v63  ;;  %v7783_v62 = vrot.slane %v2565_v53, %v8844_v63  ;;  %v2073_v38 = vcombine.high %v7738_v7, %v2064_v27  ;;  %v2089_v46 = vcombine.high %v2055_v30, %v2071_v40 }
 0x3a4   : > { %v5397_v45 = vpack.i.bf16 %v2039_v47, %v1903_v56  ;;  %v5402_v34 = vpack.i.bf16 %v2035_v21, %v1899_v51  ;;  %v3025_v1 = vcombine.high %v7629_v31, %v7088_v41  ;;  %v7789_v32 = vrot.slane %v3024_v55, %v8844_v63  ;;  %v7800_v56 = vpop.permute.xlu0 %1315 }
 0x3a5   : > { %v1290_v57 = vpop.permute.xlu1 %1289  ;;  %v2612_v22 = vcombine.low %v7747_v6, %v2572_v12  ;;  %v2628_v35 = vcombine.low %v7756_v54, %v7783_v62  ;;  %v2072_v29 = vcombine.low %v7738_v7, %v2064_v27  ;;  %v7796_v53 = vrot.slane %v2088_v19, %v8846_v39 }
 0x3a6   : > { %8868 = vst [vmem:[#allocation18_spill] sm:$0xff] %v7789_v32  ;;  %5398 = vrot.lane.b32.xlu0 %v5397_v45, %s5522_s21  ;;  %5403 = vrot.lane.b32.xlu1 %v5402_v34, %s5522_s21  ;;  %v3040_v41 = vcombine.low %v1274_v50, %v1290_v57  ;;  %v7803_v40 = vrot.slane %v2580_v20, %v8846_v39  ;;  %v8878_v45 = vmov 0.0  }
 0x3a7   : > { %8869 = vst [vmem:[#allocation56_spill] sm:$0xff] %v7796_v53  ;;  %v7806_v51 = vrot.slane %v2596_v28, %v8846_v39  ;;  %v7809_v30 = vrot.slane %v2612_v22, %v8846_v39  ;;  %v7812_v7 = vrot.slane %v2628_v35, %v8846_v39  ;;  %v2103_v27 = vrot.slane %v2089_v46, %v8846_v39  ;;  %v8874_v46 = vld [vmem:[#allocation37_spill] sm:$0xff]  ;;  %v8876_v35 = vld [vmem:[#allocation39_spill] sm:$0xff] }
 0x3a8   : > { %8870 = vst [vmem:[#allocation5_spill] sm:$0xff] %v7803_v40  ;;  %v2087_v55 = vrot.slane %v2073_v38, %v8846_v39  ;;  %v3041_v19 = vcombine.high %v1274_v50, %v1290_v57  ;;  %v7817_v47 = vrot.slane %v3040_v41, %v8844_v63  ;;  %v7820_v21 = vrot.slane %v3056_v17, %v8846_v39 }
 0x3a9   : > { %v1322_v31 = vpop.permute.xlu1 %1321  ;;  %8871 = vst [vmem:[#allocation23_spill] sm:$0xff] %v7806_v51  ;;  %8872 = vst [vmem:[#allocation7_spill] sm:$0xff] %v7809_v30  ;;  %v7823_v20 = vrot.slane %v3025_v1, %v8844_v63  ;;  %v3604_v34 = vcombine.low %v8874_v46, %v7672_v5  ;;  %v7839_v38 = vrot.slane %v3072_v25, %v8846_v39  ;;  %v1346_v25 = vpop.permute.xlu0 %1345 }
 0x3aa   : > { %8873 = vst [vmem:[#allocation55_spill] sm:$0xff] %v7812_v7  ;;  %4037 = vrot.lane.b32.xlu1 %v2103_v27, %s5521_s20  ;;  %3977 = vrot.lane.b32.xlu0 %v2087_v55, %s5521_s20  ;;  %v7834_v50 = vrot.slane %v3041_v19, %v8844_v63  ;;  %v3088_v17 = vcombine.low %v7789_v32, %v7817_v47 }
 0x3ab   : > { %v7842_v1 = vrot.slane %v2072_v29, %v8846_v39  ;;  %v2613_v22 = vcombine.high %v7747_v6, %v2572_v12  ;;  %v3144_v41 = vcombine.low %v8876_v35, %v1322_v31  ;;  %v2107_v24 = vcombine.high %v2103_v27, %v8878_v45 }
 0x3ac   : > { %v7847_v28 = vrot.slane %v3088_v17, %v8846_v39  ;;  %v3104_v19 = vcombine.low %v7823_v20, %v7834_v50  ;;  %v2106_v49 = vcombine.high %v7796_v53, %v8878_v45  ;;  %v7855_v32 = vrot.slane %v2477_v43, %v8846_v39 }
 0x3ad   : > { %v1338_v57 = vpop.permute.xlu1 %1337  ;;  %8875 = vst [vmem:[#allocation31_spill] sm:$0xff] %v7842_v1  ;;  %v3605_v6 = vcombine.high %v8874_v46, %v7672_v5  ;;  %v2581_v12 = vcombine.high %v7574_v58, %v7750_v3  ;;  %v3145_v29 = vcombine.high %v8876_v35, %v1322_v31  ;;  %v7863_v17 = vrot.slane %v3604_v34, %v8844_v63 }
 0x3ae   : > { %8877 = vst [vmem:[#allocation28_spill] sm:$0xff] %v7847_v28  ;;  %v7866_v27 = vrot.slane %v3104_v19, %v8846_v39  ;;  %4057 = vrot.lane.b32.xlu1 %v2107_v24, %s5522_s21  ;;  %4017 = vrot.lane.b32.xlu0 %v2106_v49, %s5520_s17  ;;  %v7875_v5 = vrot.slane %v2613_v22, %v8846_v39 }
 0x3af   : > { %8879 = vst [vmem:[#allocation27_spill] sm:$0xff] %v7863_v17  ;;  %v3160_v58 = vcombine.low %v7165_v42, %v1346_v25  ;;  %v3161_v3 = vcombine.high %v7165_v42, %v1346_v25  ;;  %v7880_v31 = vrot.slane %v3144_v41, %v8844_v63  ;;  %v2104_v24 = vcombine.high %v7842_v1, %v8878_v45 }
 0x3b0   : > { %v2509_v49 = vcombine.high %v7635_v52, %v7663_v59  ;;  %v2645_v34 = vcombine.high %v7803_v40, %v7809_v30  ;;  %v8880_v22 = vcombine.high %v7621_v13, %v7627_v8  ;;  %v7897_v35 = vrot.slane %v3605_v6, %v8844_v63  ;;  %v7910_v8 = vpop.permute.xlu0 %1466 }
 0x3b1   : > { %v7872_v43 = vpop.permute.xlu1 %1458  ;;  %v7900_v41 = vrot.slane %v2581_v12, %v8846_v39  ;;  %v7903_v19 = vrot.slane %v3145_v29, %v8844_v63  ;;  %v3668_v25 = vcombine.low %v7863_v17, %v7550_v44  ;;  %v2629_v53 = vcombine.high %v7756_v54, %v7783_v62 }
 0x3b2   : > { %v7894_v42 = vrot.slane %v8880_v22, %v8846_v39  ;;  %8881 = vst [vmem:[#allocation22_spill] sm:$0xff] %v7897_v35  ;;  %3957 = vrot.lane.b32.xlu0 %v2104_v24, %s5520_s17  ;;  %v5412_v13 = vpack.i.bf16 %v2645_v34, %v2509_v49  ;;  %v3176_v6 = vcombine.low %v1338_v57, %v7141_v14 }
 0x3b3   : > { %v7916_v12 = vrot.slane %v3160_v58, %v8844_v63  ;;  %v7919_v29 = vrot.slane %v3161_v3, %v8844_v63  ;;  %v3177_v46 = vcombine.high %v1338_v57, %v7141_v14  ;;  %v2646_v54 = vcombine.low %v7900_v41, %v7875_v5  ;;  %v8882_v14 = vld [vmem:[#allocation30_spill] sm:$0xff] }
 0x3b4   : > { %v3192_v62 = vcombine.low %v7730_v23, %v7880_v31  ;;  %5413 = vrot.lane.b32.xlu1 %v5412_v13, %s5520_s17  ;;  %v7928_v24 = vrot.slane %v3176_v6, %v8844_v63  ;;  %v2105_v49 = vcombine.high %v2087_v55, %v8878_v45  ;;  %v2510_v58 = vcombine.low %v7678_v60, %v7855_v32 }
 0x3b5   : > { %v7913_v22 = vpop.permute.xlu1 %1275  ;;  %v3208_v3 = vcombine.low %v7733_v48, %v7903_v19  ;;  %v2652_v57 = vcombine.low %v8882_v14, %v7910_v8  ;;  %v7938_v34 = vrot.slane %v3177_v46, %v8844_v63  ;;  %v2668_v13 = vcombine.low %v7872_v43, %v7155_v4 }
 0x3b6   : > { %v3684_v6 = vcombine.low %v7897_v35, %v7571_v10  ;;  %v2597_v55 = vcombine.high %v7577_v18, %v7753_v36  ;;  %v3224_v59 = vcombine.low %v7916_v12, %v7928_v24  ;;  %3997 = vrot.lane.b32.xlu0 %v2105_v49, %s5522_s21  ;;  %v5422_v52 = vpack.i.bf16 %v2646_v54, %v2510_v58  ;;  %v8884_v35 = vld [vmem:[#allocation10_spill] sm:$0xff] }
 0x3b7   : > { %v3636_v30 = vcombine.low %v7712_v33, %v7177_v15  ;;  %v3637_v46 = vcombine.high %v7712_v33, %v7177_v15  ;;  %v3240_v40 = vcombine.low %v7919_v29, %v7938_v34  ;;  %v7956_v1 = vrot.slane %v2668_v13, %v8844_v63 }
 0x3b8   : > { %v2643_v18 = vrot.slane %v2629_v53, %v8846_v39  ;;  %v3740_v36 = vcombine.low %v7763_v11, %v7800_v56  ;;  %v7962_v54 = vrot.slane %v3192_v62, %v8846_v39  ;;  %v7965_v49 = vrot.slane %v3224_v59, %v8846_v39  ;;  %5423 = vrot.lane.b32.xlu1 %v5422_v52, %s5521_s20 }
 0x3b9   : > { %v1292_v17 = vpop.permute.xlu1 %1291  ;;  %v3741_v15 = vcombine.high %v7763_v11, %v7800_v56  ;;  %v7971_v33 = vrot.slane %v3208_v3, %v8846_v39  ;;  %v2660_v58 = vrot.slane %v2652_v57, %v8844_v63  ;;  %v7975_v53 = vrot.slane %v3240_v40, %v8846_v39 }
 0x3ba   : > { %v2611_v13 = vrot.slane %v2597_v55, %v8846_v39  ;;  %v2513_v59 = vcombine.high %v7638_v9, %v7666_v16  ;;  %v2649_v52 = vcombine.high %v7806_v51, %v7812_v7  ;;  %v7992_v57 = vrot.slane %v3668_v25, %v8846_v39 }
 0x3bb   : > { %v2685_v3 = vcombine.high %v2660_v58, %v7956_v1  ;;  %v7995_v55 = vrot.slane %v3684_v6, %v8846_v39  ;;  %v7998_v7 = vrot.slane %v3636_v30, %v8844_v63  ;;  %v8001_v11 = vrot.slane %v3637_v46, %v8844_v63 }
 0x3bc   : > { %v5407_v62 = vpack.i.bf16 %v2649_v52, %v2513_v59  ;;  %v2650_v16 = vcombine.low %v2611_v13, %v2643_v18  ;;  %v8004_v56 = vrot.slane %v3740_v36, %v8844_v63  ;;  %v8007_v40 = vrot.slane %v3741_v15, %v8844_v63  ;;  %v8883_v59 = vld [vmem:[#allocation18_spill] sm:$0xff]  ;;  %v1348_v52 = vpop.permute.xlu0 %1347 }
 0x3bd   : > { %v1324_v51 = vpop.permute.xlu1 %1323  ;;  %v2653_v25 = vcombine.high %v8882_v14, %v7910_v8  ;;  %v2514_v6 = vcombine.low %v7727_v0, %v7894_v42  ;;  %v3652_v30 = vcombine.low %v7913_v22, %v1292_v17  ;;  %v3653_v46 = vcombine.high %v7913_v22, %v1292_v17 }
 0x3be   : > { %5408 = vrot.lane.b32.xlu0 %v5407_v62, %s5520_s17  ;;  %v2669_v15 = vcombine.high %v7872_v43, %v7155_v4  ;;  %v2651_v9 = vcombine.high %v2611_v13, %v2643_v18  ;;  %v8021_v44 = vrot.slane %v2685_v3, %v8846_v39  ;;  %v3756_v17 = vcombine.low %v8884_v35, %v1324_v51  ;;  %v8885_v18 = vld [vmem:[#allocation41_spill] sm:$0xff] }
 0x3bf   : > { %v5417_v8 = vpack.i.bf16 %v2650_v16, %v2514_v6  ;;  %v8024_v14 = vrot.slane %v3652_v30, %v8844_v63  ;;  %v8027_v62 = vrot.slane %v3653_v46, %v8844_v63  ;;  %v3105_v22 = vcombine.high %v7823_v20, %v7834_v50 }
 0x3c0   : > { %v2684_v36 = vcombine.low %v2660_v58, %v7956_v1  ;;  %v2515_v4 = vcombine.high %v7727_v0, %v7894_v42  ;;  %4097 = vrot.lane.b32.xlu1 %v8021_v44, %s5521_s20  ;;  %v3757_v16 = vcombine.high %v8884_v35, %v1324_v51  ;;  %v2667_v43 = vrot.slane %v2653_v25, %v8844_v63 }
 0x3c1   : > { %v3772_v13 = vcombine.low %v8885_v18, %v1348_v52  ;;  %v3700_v3 = vcombine.low %v7998_v7, %v8024_v14  ;;  %v3716_v20 = vcombine.low %v8001_v11, %v8027_v62  ;;  %v2683_v50 = vrot.slane %v2669_v15, %v8844_v63  ;;  %v1340_v42 = vpop.permute.xlu1 %1339 }
 0x3c2   : > { %5418 = vrot.lane.b32.xlu0 %v5417_v8, %s5521_s20  ;;  %v5427_v0 = vpack.i.bf16 %v2651_v9, %v2515_v4  ;;  %v8047_v1 = vrot.slane %v3756_v17, %v8844_v63  ;;  %v3261_v51 = vcombine.high %v7971_v33, %v7975_v53  ;;  %v2647_v25 = vcombine.high %v7900_v41, %v7875_v5  ;;  %v8886_v17 = vld [vmem:[#allocation15_spill] sm:$0xff] }
 0x3c3   : > { %v8052_v35 = vrot.slane %v3700_v3, %v8846_v39  ;;  %v8055_v58 = vrot.slane %v3716_v20, %v8846_v39  ;;  %v3125_v6 = vcombine.high %v7839_v38, %v7866_v27  ;;  %v3773_v9 = vcombine.high %v8885_v18, %v1348_v52 }
 0x3c4   : > { %v8063_v30 = vrot.slane %v2684_v36, %v8846_v39  ;;  %v8066_v46 = vrot.slane %v3757_v16, %v8844_v63  ;;  %v2511_v15 = vcombine.high %v7678_v60, %v7855_v32  ;;  %v3788_v52 = vcombine.low %v1340_v42, %v8886_v17 }
 0x3c5   : > { %v5437_v41 = vpack.i.bf16 %v3261_v51, %v3125_v6  ;;  %v3241_v36 = vcombine.high %v7919_v29, %v7938_v34  ;;  %v8079_v4 = vrot.slane %v3772_v13, %v8844_v63  ;;  %v2700_v16 = vcombine.low %v2667_v43, %v2683_v50 }
 0x3c6   : > { %5428 = vrot.lane.b32.xlu0 %v5427_v0, %s5522_s21  ;;  %v3804_v60 = vcombine.low %v8004_v56, %v8047_v1  ;;  %v2701_v32 = vcombine.high %v2667_v43, %v2683_v50  ;;  %v5432_v18 = vpack.i.bf16 %v2647_v25, %v2511_v15  ;;  %v3789_v3 = vcombine.high %v1340_v42, %v8886_v17 }
 0x3c7   : > { %5438 = vrot.lane.b32.xlu1 %v5437_v41, %s5520_s17  ;;  %v8086_v20 = vrot.slane %v3788_v52, %v8844_v63  ;;  %v3209_v0 = vcombine.high %v7733_v48, %v7903_v19  ;;  %v3225_v29 = vcombine.high %v7916_v12, %v7928_v24  ;;  %v8093_v34 = vrot.slane %v3773_v9, %v8844_v63 }
 0x3c8   : > { %v3820_v43 = vcombine.low %v8007_v40, %v8066_v46  ;;  %v8099_v13 = vrot.slane %v3789_v3, %v8844_v63  ;;  %v2716_v48 = vcombine.high %v8063_v30, %v8878_v45  ;;  %v3257_v19 = vcombine.high %v7962_v54, %v7965_v49 }
 0x3c9   : > { %v3836_v50 = vcombine.low %v8079_v4, %v8086_v20  ;;  %v3193_v12 = vcombine.high %v7730_v23, %v7880_v31  ;;  %v3255_v24 = vrot.slane %v3241_v36, %v8846_v39  ;;  %v8111_v51 = vrot.slane %v2700_v16, %v8846_v39  ;;  %v1461_v36 = vpop.permute.xlu1 %1460 }
 0x3ca   : > { %5433 = vrot.lane.b32.xlu0 %v5432_v18, %s5522_s21  ;;  %v8114_v42 = vrot.slane %v3804_v60, %v8846_v39  ;;  %v3852_v6 = vcombine.low %v8093_v34, %v8099_v13  ;;  %v2715_v9 = vrot.slane %v2701_v32, %v8846_v39  ;;  %v3121_v23 = vcombine.high %v7820_v21, %v7847_v28 }
 0x3cb   : > { %v8117_v25 = vrot.slane %v3836_v50, %v8846_v39  ;;  %4077 = vrot.lane.b32.xlu1 %v2716_v48, %s5520_s17  ;;  %v8887_v31 = vcombine.high %v8883_v59, %v7817_v47  ;;  %v3119_v41 = vrot.slane %v3105_v22, %v8846_v39  ;;  %v3223_v17 = vrot.slane %v3209_v0, %v8846_v39  ;;  %v8890_v50 = vld [vmem:[#allocation44_spill] sm:$0xff] }
 0x3cc   : > { %v3239_v52 = vrot.slane %v3225_v29, %v8846_v39  ;;  %v8133_v16 = vrot.slane %v3820_v43, %v8846_v39  ;;  %v8136_v60 = vrot.slane %v3852_v6, %v8846_v39  ;;  %v5442_v47 = vpack.i.bf16 %v3257_v19, %v3121_v23  ;;  %v1469_v29 = vpop.permute.xlu0 %1468  ;;  %v8892_v43 = vld [vmem:[#allocation42_spill] sm:$0xff] }
 0x3cd   : > { %v3103_v15 = vrot.slane %v8887_v31, %v8846_v39  ;;  %v8888_v59 = vcombine.high %v7717_v37, %v7514_v2  ;;  %v8889_v18 = vcombine.high %v7722_v26, %v7517_v61  ;;  %v3207_v0 = vrot.slane %v3193_v12, %v8846_v39  ;;  %v8891_v37 = vld [vmem:[#allocation14_spill] sm:$0xff] }
 0x3ce   : > { %4157 = vrot.lane.b32.xlu0 %v2715_v9, %s5521_s20  ;;  %v3281_v48 = vcombine.high %v1461_v36, %v8890_v50  ;;  %v2718_v19 = vcombine.high %v8111_v51, %v8878_v45  ;;  %v3262_v2 = vcombine.low %v3223_v17, %v3255_v24  ;;  %v3265_v6 = vcombine.high %v8891_v37, %v1469_v29 }
 0x3cf   : > { %v3071_v22 = vrot.slane %v8888_v59, %v8846_v39  ;;  %v3087_v3 = vrot.slane %v8889_v18, %v8846_v39  ;;  %5443 = vrot.lane.b32.xlu1 %v5442_v47, %s5520_s17  ;;  %v3258_v23 = vcombine.low %v3207_v0, %v3239_v52  ;;  %v3280_v12 = vcombine.low %v1461_v36, %v8890_v50  ;;  %v1463_v59 = vpop.permute.xlu1 %1462 }
 0x3d0   : > { %v3295_v31 = vrot.slane %v3281_v48, %v8844_v63  ;;  %v3264_v32 = vcombine.low %v8891_v37, %v1469_v29  ;;  %v3279_v5 = vrot.slane %v3265_v6, %v8844_v63  ;;  %v1471_v47 = vpop.permute.xlu0 %1470  ;;  %v3892_v28 = vcombine.low %v1463_v59, %v8892_v43  ;;  %v8893_v6 = vld [vmem:[#allocation40_spill] sm:$0xff] }
 0x3d1   : > { %v3126_v61 = vcombine.low %v3087_v3, %v3119_v41  ;;  %v3122_v26 = vcombine.low %v3071_v22, %v3103_v15  ;;  %v3893_v36 = vcombine.high %v1463_v59, %v8892_v43  ;;  %v2719_v48 = vcombine.high %v2715_v9, %v8878_v45 }
 0x3d2   : > { %4137 = vrot.lane.b32.xlu0 %v2718_v19, %s5520_s17  ;;  %v8165_v19 = vrot.slane %v3280_v12, %v8844_v63  ;;  %v3313_v50 = vcombine.high %v3279_v5, %v3295_v31  ;;  %v2717_v29 = vcombine.high %v8021_v44, %v8878_v45  ;;  %v8173_v37 = vrot.slane %v3264_v32, %v8844_v63 }
 0x3d3   : > { %v5447_v18 = vpack.i.bf16 %v3262_v2, %v3126_v61  ;;  %v5452_v8 = vpack.i.bf16 %v3258_v23, %v3122_v26  ;;  %v3263_v2 = vcombine.high %v3223_v17, %v3255_v24  ;;  %v3877_v61 = vcombine.high %v8893_v6, %v1471_v47 }
 0x3d4   : > { %v3127_v26 = vcombine.high %v3087_v3, %v3119_v41  ;;  %v3297_v43 = vcombine.high %v8173_v37, %v8165_v19  ;;  %v8182_v9 = vrot.slane %v3892_v28, %v8844_v63  ;;  %v8185_v44 = vrot.slane %v3893_v36, %v8844_v63 }
 0x3d5   : > { %5453 = vrot.lane.b32.xlu1 %v5452_v8, %s5521_s20  ;;  %v3876_v8 = vcombine.low %v8893_v6, %v1471_v47  ;;  %v8188_v17 = vrot.slane %v3313_v50, %v8846_v39  ;;  %v3259_v32 = vcombine.high %v3207_v0, %v3239_v52  ;;  %v8192_v12 = vrot.slane %v3877_v61, %v8844_v63  ;;  %v8895_v50 = vld [vmem:[#allocation8_spill] sm:$0xff] }
 0x3d6   : > { %5448 = vrot.lane.b32.xlu0 %v5447_v18, %s5521_s20  ;;  %v5457_v24 = vpack.i.bf16 %v3263_v2, %v3127_v26  ;;  %v3123_v28 = vcombine.high %v3071_v22, %v3103_v15  ;;  %v3853_v41 = vcombine.high %v8093_v34, %v8099_v13  ;;  %v3311_v0 = vrot.slane %v3297_v43, %v8846_v39  ;;  %v8894_v34 = vld [vmem:[#allocation22_spill] sm:$0xff] }
 0x3d7   : > { %v3884_v23 = vrot.slane %v3876_v8, %v8844_v63  ;;  %v3925_v59 = vcombine.high %v8192_v12, %v8185_v44  ;;  %v3717_v63 = vcombine.high %v8001_v11, %v8027_v62  ;;  %v3821_v18 = vcombine.high %v8007_v40, %v8066_v46 }
 0x3d8   : > { %v5462_v52 = vpack.i.bf16 %v3259_v32, %v3123_v28  ;;  %v3685_v13 = vcombine.high %v8894_v34, %v7571_v10  ;;  %v3837_v15 = vcombine.high %v8079_v4, %v8086_v20  ;;  %v3867_v22 = vrot.slane %v3853_v41, %v8846_v39 }
 0x3d9   : > { %4117 = vrot.lane.b32.xlu1 %v2717_v29, %s5522_s21  ;;  %v3909_v3 = vcombine.high %v3884_v23, %v8182_v9  ;;  %v3312_v47 = vcombine.low %v3279_v5, %v3295_v31  ;;  %v3939_v36 = vrot.slane %v3925_v59, %v8846_v39  ;;  %v3873_v40 = vcombine.high %v8133_v16, %v8136_v60 }
 0x3da   : > { %4177 = vrot.lane.b32.xlu0 %v2719_v48, %s5522_s21  ;;  %v3869_v62 = vcombine.high %v8114_v42, %v8117_v25  ;;  %v3701_v46 = vcombine.high %v7998_v7, %v8024_v14  ;;  %v3731_v10 = vrot.slane %v3717_v63, %v8846_v39  ;;  %v3805_v4 = vcombine.high %v8004_v56, %v8047_v1  ;;  %v8896_v48 = vld [vmem:[#allocation27_spill] sm:$0xff] }
 0x3db   : > { %v3923_v11 = vrot.slane %v3909_v3, %v8846_v39  ;;  %v3835_v5 = vrot.slane %v3821_v18, %v8846_v39  ;;  %v3737_v20 = vcombine.high %v7995_v55, %v8055_v58  ;;  %v3733_v31 = vcombine.high %v7992_v57, %v8052_v35 }
 0x3dc   : > { %v3669_v7 = vcombine.high %v8896_v48, %v8895_v50  ;;  %v3699_v14 = vrot.slane %v3685_v13, %v8846_v39  ;;  %v3851_v29 = vrot.slane %v3837_v15, %v8846_v39  ;;  %v8237_v56 = vrot.slane %v3312_v47, %v8846_v39 }
 0x3dd   : > { %4277 = vrot.lane.b32.xlu1 %v8188_v17, %s5521_s20  ;;  %v5467_v1 = vpack.i.bf16 %v3873_v40, %v3737_v20  ;;  %v5472_v2 = vpack.i.bf16 %v3869_v62, %v3733_v31  ;;  %v3874_v6 = vcombine.low %v3835_v5, %v3867_v22  ;;  %v3715_v8 = vrot.slane %v3701_v46, %v8846_v39 }
 0x3de   : > { %5458 = vrot.lane.b32.xlu0 %v5457_v24, %s5522_s21  ;;  %v3819_v61 = vrot.slane %v3805_v4, %v8846_v39  ;;  %v3738_v26 = vcombine.low %v3699_v14, %v3731_v10  ;;  %v3683_v43 = vrot.slane %v3669_v7, %v8846_v39  ;;  %v3296_v24 = vcombine.low %v8173_v37, %v8165_v19 }
 0x3df   : > { %v3330_v28 = vcombine.high %v8237_v56, %v8878_v45  ;;  %v3875_v3 = vcombine.high %v3835_v5, %v3867_v22  ;;  %v3908_v18 = vcombine.low %v3884_v23, %v8182_v9  ;;  %v3329_v15 = vcombine.high %v3311_v0, %v8878_v45 }
 0x3e0   : > { %v5477_v32 = vpack.i.bf16 %v3874_v6, %v3738_v26  ;;  %v3870_v41 = vcombine.low %v3819_v61, %v3851_v29  ;;  %v3734_v59 = vcombine.low %v3683_v43, %v3715_v8  ;;  %v8251_v63 = vrot.slane %v3296_v24, %v8846_v39  ;;  %v8901_v26 = vld [vmem:[#allocation17_spill] sm:$0xff] }
 0x3e1   : > { %4217 = vrot.lane.b32.xlu1 %v3311_v0, %s5521_s20  ;;  %v8257_v19 = vrot.slane %v3908_v18, %v8846_v39  ;;  %v3871_v22 = vcombine.high %v3819_v61, %v3851_v29  ;;  %v3735_v9 = vcombine.high %v3683_v43, %v3715_v8  ;;  %v3924_v23 = vcombine.low %v8192_v12, %v8185_v44  ;;  %v8900_v61 = vld [vmem:[#allocation53_spill] sm:$0xff] }
 0x3e2   : > { %5463 = vrot.lane.b32.xlu0 %v5462_v52, %s5522_s21  ;;  %v3739_v52 = vcombine.high %v3699_v14, %v3731_v10  ;;  %v5482_v34 = vpack.i.bf16 %v3870_v41, %v3734_v59  ;;  %v3328_v37 = vcombine.high %v8251_v63, %v8878_v45  ;;  %v3331_v0 = vcombine.high %v8188_v17, %v8878_v45  ;;  %v8906_v59 = vld [vmem:[#allocation49_spill] sm:$0xff] }
 0x3e3   : > { %v5492_v47 = vpack.i.bf16 %v3871_v22, %v3735_v9  ;;  %v3940_v40 = vcombine.high %v8257_v19, %v8878_v45  ;;  %v8271_v62 = vrot.slane %v3924_v23, %v8846_v39  ;;  %v3941_v46 = vcombine.high %v3923_v11, %v8878_v45  ;;  %v8286_v39 = vld [vmem:[%s8470_s4] sm:$0xff] }
 0x3e4   : > { %v5487_v13 = vpack.i.bf16 %v3875_v3, %v3739_v52  ;;  %v5523_v10 = vmov 0   ;;  %v3943_v12 = vcombine.high %v3939_v36, %v8878_v45  ;;  %v8902_v43 = vcombine.low %v8900_v61, %v8901_v26  ;;  %v8907_v52 = vld [vmem:[#allocation24_spill] sm:$0xff]  ;;  %v8324_v61 = vld [vmem:[%s8469_s3] sm:$0xff] }
 0x3e5   : > { %4337 = vrot.lane.b32.xlu1 %v3923_v11, %s5521_s20  ;;  %5497 = vset.pattern.permute.xlu0 %v5523_v10  ;;  %v3942_v44 = vcombine.high %v8271_v62, %v8878_v45  ;;  %v8908_v18 = vcombine.low %v8906_v59, %v8907_v52 }
 0x3e6   : > { %4397 = vrot.lane.b32.xlu0 %v3939_v36, %s5521_s20 }
 0x3e9   : > { %5473 = vrot.lane.b32.xlu1 %v5472_v2, %s5520_s17  ;;  %v8898_v2 = vld [vmem:[#allocation35_spill] sm:$0xff] }
 0x3ea   : > { %5468 = vrot.lane.b32.xlu0 %v5467_v1, %s5520_s17  ;;  %v8897_v1 = vld [vmem:[#allocation34_spill] sm:$0xff] }
 0x3eb   : > { %v8899_v6 = vcombine.low %v8897_v1, %v8898_v2  ;;  %v8910_v1 = vld [vmem:[#allocation31_spill] sm:$0xff] }
 0x3ed   : > { %4257 = vrot.lane.b32.xlu1 %v3330_v28, %s5520_s17  ;;  %v8904_v28 = vld [vmem:[#allocation9_spill] sm:$0xff] }
 0x3ee   : > { %5478 = vrot.lane.b32.xlu0 %v5477_v32, %s5521_s20  ;;  %v8903_v32 = vld [vmem:[#allocation52_spill] sm:$0xff] }
 0x3ef   : > { %v8905_v41 = vcombine.low %v8903_v32, %v8904_v28  ;;  %v8912_v32 = vld [vmem:[#allocation45_spill] sm:$0xff] }
 0x3f1   : > { %5488 = vrot.lane.b32.xlu1 %v5487_v13, %s5522_s21 }
 0x3f2   : > { %5483 = vrot.lane.b32.xlu0 %v5482_v34, %s5521_s20 }
 0x3f5   : > { %4237 = vrot.lane.b32.xlu1 %v3329_v15, %s5522_s21 }
 0x3f6   : > { %4197 = vrot.lane.b32.xlu0 %v3328_v37, %s5520_s17 }
 0x3f9   : > { %4317 = vrot.lane.b32.xlu1 %v3940_v40, %s5520_s17 }
 0x3fa   : > { %5493 = vrot.lane.b32.xlu0 %v5492_v47, %s5522_s21 }
 0x3fd   : > { %4357 = vrot.lane.b32.xlu1 %v3941_v46, %s5522_s21 }
 0x3fe   : > { %4297 = vrot.lane.b32.xlu0 %v3331_v0, %s5522_s21 }
 0x402   : > { %4377 = vrot.lane.b32.xlu0 %v3942_v44, %s5520_s17 }
 0x406   : > { %4417 = vrot.lane.b32.xlu0 %v3943_v12, %s5522_s21 }
 0x40a   : > { %4551 = vperm.xlu0 %5497, %v8286_v39   ;;  %v5379_v17 = vpop.permute.xlu0 %5378  ;;  %v5384_v11 = vpop.permute.xlu1 %5383 }
 0x40b   : > { %v5381_v20 = vunpack.i.h.bf16 %v5379_v17  ;;  %v5380_v31 = vunpack.i.l.bf16 %v5379_v17  ;;  %v5386_v50 = vunpack.i.h.bf16 %v5384_v11  ;;  %v5385_v48 = vunpack.i.l.bf16 %v5384_v11 }
 0x40d   : > { %v4444_v8 = vsel %vm4424_vm6, %v8899_v6, %v5380_v31  ;;  %v4445_v24 = vsel %vm4424_vm6, %v8902_v43, %v5381_v20  ;;  %v4428_v3 = vsel %vm4424_vm6, %v8905_v41, %v5386_v50  ;;  %v4427_v34 = vsel %vm4424_vm6, %v8908_v18, %v5385_v48  ;;  %v8909_v50 = vld [vmem:[#allocation56_spill] sm:$0xff]  ;;  %v8914_v41 = vld [vmem:[#allocation46_spill] sm:$0xff] }
 0x410   : > { %v5389_v4 = vpop.permute.xlu0 %5388  ;;  %v5394_v5 = vpop.permute.xlu1 %5393 }
 0x411   : > { %v5391_v7 = vunpack.i.h.bf16 %v5389_v4  ;;  %v5390_v14 = vunpack.i.l.bf16 %v5389_v4  ;;  %v5396_v36 = vunpack.i.h.bf16 %v5394_v5  ;;  %v5395_v29 = vunpack.i.l.bf16 %v5394_v5 }
 0x413   : > { %v4449_v47 = vsel %vm4430_vm7, %v4444_v8, %v5390_v14  ;;  %v4450_v40 = vsel %vm4430_vm7, %v4445_v24, %v5391_v7  ;;  %v4433_v0 = vsel %vm4430_vm7, %v4427_v34, %v5395_v29  ;;  %v4434_v46 = vsel %vm4430_vm7, %v4428_v3, %v5396_v36  ;;  %v8911_v24 = vld [vmem:[#allocation43_spill] sm:$0xff] }
 0x414   : > { %v8913_v28 = vpack.c.bf16 %v8911_v24, %v8912_v32  ;;  %v8915_v3 = vld [vmem:[#allocation47_spill] sm:$0xff]  ;;  %v8926_v24 = vld [vmem:[#allocation16_spill] sm:$0xff]  ;;  %v8927_v32 = vld [vmem:[#allocation21_spill] sm:$0xff] }
 0x415   : > { %v8916_v59 = vpack.c.bf16 %v8914_v41, %v8915_v3 }
 0x418   : > { %v5399_v13 = vpop.permute.xlu0 %5398  ;;  %v5404_v37 = vpop.permute.xlu1 %5403 }
 0x419   : > { %v5401_v15 = vunpack.i.h.bf16 %v5399_v13  ;;  %v5400_v22 = vunpack.i.l.bf16 %v5399_v13  ;;  %v5406_v9 = vunpack.i.h.bf16 %v5404_v37  ;;  %v5405_v23 = vunpack.i.l.bf16 %v5404_v37 }
 0x41b   : > { %v4439_v10 = vsel %vm4436_vm8, %v4433_v0, %v5405_v23  ;;  %v4440_v44 = vsel %vm4436_vm8, %v4434_v46, %v5406_v9  ;;  %v4454_v12 = vsel %vm4436_vm8, %v4449_v47, %v5400_v22  ;;  %v4455_v17 = vsel %vm4436_vm8, %v4450_v40, %v5401_v15  ;;  %v8917_v0 = vld [vmem:[#allocation3_spill] sm:$0xff]  ;;  %v8918_v46 = vld [vmem:[#allocation25_spill] sm:$0xff] }
 0x41c   : > { %v5208_v11 = vpack.c.bf16 %v4440_v44, %v4439_v10  ;;  %v3978_v4 = vpop.permute.xlu0 %3977  ;;  %v4038_v5 = vpop.permute.xlu1 %4037  ;;  %v5206_v20 = vpack.c.bf16 %v4455_v17, %v4454_v12  ;;  %v8919_v10 = vcombine.low %v8917_v0, %v8918_v46  ;;  %v8920_v12 = vld [vmem:[#allocation23_spill] sm:$0xff] }
 0x41d   : > { %v8921_v17 = vld [vmem:[#allocation55_spill] sm:$0xff] }
 0x41e   : > { %5207 = vmatprep.subr.bf16.mxu1 %v5206_v20 }
 0x41f   : > { %5209 = vmatpush1.bf16.msra.mxu1 %v5208_v11  ;;  %v8922_v11 = vcombine.low %v8920_v12, %v8921_v17 }
 0x420   : > { %v4018_v31 = vpop.permute.xlu0 %4017  ;;  %v4058_v14 = vpop.permute.xlu1 %4057 }
 0x421   : > { %v4446_v48 = vsel %vm4424_vm6, %v8909_v50, %v4018_v31 }
 0x422   : > { %v4451_v7 = vsel %vm4430_vm7, %v4446_v48, %v4038_v5 }
 0x423   : > { %v4456_v36 = vsel %vm4436_vm8, %v4451_v7, %v4058_v14 }
 0x424   : > { %v3958_v29 = vpop.permute.xlu0 %3957  ;;  %5040 = vmatprep.subr.msk.mxu1 %vm4558_vm9, %v4456_v36 }
 0x425   : > { %v4429_v2 = vsel %vm4424_vm6, %v8910_v1, %v3958_v29 }
 0x426   : > { %v4435_v6 = vsel %vm4430_vm7, %v4429_v2, %v3978_v4  ;;  %v5414_v43 = vpop.permute.xlu1 %5413 }
 0x427   : > { %v5416_v23 = vunpack.i.h.bf16 %v5414_v43  ;;  %v5415_v47 = vunpack.i.l.bf16 %v5414_v43 }
 0x428   : > { %v3998_v8 = vpop.permute.xlu0 %3997 }
 0x429   : > { %v4441_v26 = vsel %vm4436_vm8, %v4435_v6, %v3998_v8  ;;  %v8923_v6 = vld [vmem:[#allocation5_spill] sm:$0xff]  ;;  %v8924_v8 = vld [vmem:[#allocation7_spill] sm:$0xff] }
 0x42a   : > { %5041 = vmatpush1.msk.msra.mxu1 %vm4558_vm9, %v4441_v26  ;;  %v5424_v52 = vpop.permute.xlu1 %5423  ;;  %v8925_v26 = vcombine.low %v8923_v6, %v8924_v8 }
 0x42b   : > { %5211 = vmatprep.subr.bf16.mxu1 %v8913_v28  ;;  %5042 = vmatmul.mubr.msk.f32.vlgmr.msra.gmra.mrb[20].mxu1 %vm4554_vm10, %v8324_v61  ;;  %v5426_v31 = vunpack.i.h.bf16 %v5424_v52  ;;  %v5425_v50 = vunpack.i.l.bf16 %v5424_v52  ;;  %v8928_v28 = vcombine.low %v8926_v24, %v8927_v32 }
 0x42c   : > { %5213 = vmatpush1.bf16.msra.mxu1 %v8916_v59  ;;  %4718 = vmatprep.mubr.f32.mxu1 %v8878_v45  ;;  %v4460_v43 = vsel %vm4424_vm6, %v8925_v26, %v5416_v23  ;;  %v8934_v26 = vld [vmem:[#allocation2_spill] sm:$0xff] }
 0x42d   : > { %v4459_v41 = vsel %vm4424_vm6, %v8928_v28, %v5415_v47 }
 0x42e   : > { %v4464_v52 = vsel %vm4430_vm7, %v4459_v41, %v5425_v50 }
 0x430   : > { %v5409_v18 = vpop.permute.xlu0 %5408 }
 0x431   : > { %v5411_v37 = vunpack.i.h.bf16 %v5409_v18  ;;  %v5410_v15 = vunpack.i.l.bf16 %v5409_v18  ;;  %v4465_v18 = vsel %vm4430_vm7, %v4460_v43, %v5426_v31  ;;  %v8935_v43 = vld [vmem:[#allocation32_spill] sm:$0xff] }
 0x432   : > { %v4098_v13 = vpop.permute.xlu1 %4097  ;;  %v8936_v24 = vpack.c.bf16 %v8934_v26, %v8935_v43 }
 0x433   : > { %v4474_v44 = vsel %vm4424_vm6, %v8919_v10, %v5410_v15  ;;  %v4475_v4 = vsel %vm4424_vm6, %v8922_v11, %v5411_v37 }
 0x434   : > { %v5419_v34 = vpop.permute.xlu0 %5418 }
 0x435   : > { %v5421_v22 = vunpack.i.h.bf16 %v5419_v34  ;;  %v5420_v9 = vunpack.i.l.bf16 %v5419_v34 }
 0x437   : > { %v4479_v48 = vsel %vm4430_vm7, %v4474_v44, %v5420_v9  ;;  %v4480_v7 = vsel %vm4430_vm7, %v4475_v4, %v5421_v22 }
 0x438   : > { %v5429_v40 = vpop.permute.xlu0 %5428 }
 0x439   : > { %v5431_v5 = vunpack.i.h.bf16 %v5429_v40  ;;  %v5430_v20 = vunpack.i.l.bf16 %v5429_v40  ;;  %v5439_v14 = vpop.permute.xlu1 %5438 }
 0x43a   : > { %v5441_v44 = vunpack.i.h.bf16 %v5439_v14  ;;  %v5440_v12 = vunpack.i.l.bf16 %v5439_v14 }
 0x43b   : > { %v4484_v36 = vsel %vm4436_vm8, %v4479_v48, %v5430_v20  ;;  %v4485_v29 = vsel %vm4436_vm8, %v4480_v7, %v5431_v5  ;;  %v8930_v7 = vcombine.low %v7839_v38, %v7866_v27 }
 0x43c   : > { %v5434_v1 = vpop.permute.xlu0 %5433  ;;  %v5214_v2 = vpack.c.bf16 %v4485_v29, %v4484_v36  ;;  %v8931_v29 = vld [vmem:[#allocation50_spill] sm:$0xff] }
 0x43d   : > { %v5436_v3 = vunpack.i.h.bf16 %v5434_v1  ;;  %v5435_v59 = vunpack.i.l.bf16 %v5434_v1  ;;  %v4078_v34 = vpop.permute.xlu1 %4077  ;;  %v8932_v1 = vld [vmem:[#allocation48_spill] sm:$0xff] }
 0x43e   : > { %5215 = vmatprep.subr.bf16.mxu1 %v5214_v2  ;;  %v4461_v47 = vsel %vm4424_vm6, %v8063_v30, %v4078_v34  ;;  %v8929_v30 = vcombine.low %v7971_v33, %v7975_v53  ;;  %v8933_v2 = vpack.c.bf16 %v8931_v29, %v8932_v1  ;;  %v8937_v34 = vcombine.low %v7962_v54, %v7965_v49 }
 0x43f   : > { %v4469_v37 = vsel %vm4436_vm8, %v4464_v52, %v5435_v59  ;;  %v4470_v15 = vsel %vm4436_vm8, %v4465_v18, %v5436_v3  ;;  %v4466_v4 = vsel %vm4430_vm7, %v4461_v47, %v4098_v13  ;;  %v4504_v13 = vsel %vm4424_vm6, %v8930_v7, %v5440_v12 }
 0x440   : > { %v5216_v22 = vpack.c.bf16 %v4470_v15, %v4469_v37  ;;  %v4158_v9 = vpop.permute.xlu0 %4157 }
 0x441   : > { %v5444_v23 = vpop.permute.xlu1 %5443 }
 0x442   : > { %5217 = vmatpush1.bf16.msra.mxu1 %v5216_v22  ;;  %v5446_v6 = vunpack.i.h.bf16 %v5444_v23  ;;  %v5445_v8 = vunpack.i.l.bf16 %v5444_v23 }
 0x444   : > { %v4138_v40 = vpop.permute.xlu0 %4137  ;;  %v4490_v37 = vsel %vm4424_vm6, %v8937_v34, %v5446_v6 }
 0x445   : > { %v4476_v10 = vsel %vm4424_vm6, %v8111_v51, %v4138_v40  ;;  %v4505_v51 = vsel %vm4424_vm6, %v8929_v30, %v5441_v44 }
 0x446   : > { %v4481_v17 = vsel %vm4430_vm7, %v4476_v10, %v4158_v9 }
 0x447   : > { %v5454_v46 = vpop.permute.xlu1 %5453 }
 0x448   : > { %v5449_v0 = vpop.permute.xlu0 %5448  ;;  %v5456_v32 = vunpack.i.h.bf16 %v5454_v46  ;;  %v5455_v28 = vunpack.i.l.bf16 %v5454_v46 }
 0x449   : > { %v5451_v50 = vunpack.i.h.bf16 %v5449_v0  ;;  %v5450_v48 = vunpack.i.l.bf16 %v5449_v0 }
 0x44a   : > { %v4495_v0 = vsel %vm4430_vm7, %v4490_v37, %v5456_v32 }
 0x44b   : > { %v4118_v5 = vpop.permute.xlu1 %4117  ;;  %v4509_v38 = vsel %vm4430_vm7, %v4504_v13, %v5450_v48  ;;  %v4510_v27 = vsel %vm4430_vm7, %v4505_v51, %v5451_v50  ;;  %v8940_v48 = vcombine.low %v8133_v16, %v8136_v60  ;;  %v8941_v51 = vcombine.low %v7995_v55, %v8055_v58 }
 0x44c   : > { %v4178_v11 = vpop.permute.xlu0 %4177  ;;  %v4471_v31 = vsel %vm4436_vm8, %v4466_v4, %v4118_v5  ;;  %v8942_v58 = vcombine.low %v8114_v42, %v8117_v25 }
 0x44d   : > { %v4486_v20 = vsel %vm4436_vm8, %v4481_v17, %v4178_v11 }
 0x44e   : > { %5043 = vmatprep.subr.msk.mxu1 %vm4558_vm9, %v4486_v20 }
 0x44f   : > { %5044 = vmatpush1.msk.msra.mxu1 %vm4558_vm9, %v4471_v31  ;;  %v8379_v36 = vpop.permute.xlu1 %4277 }
 0x450   : > { %v5459_v14 = vpop.permute.xlu0 %5458  ;;  %5227 = vmatprep.subr.bf16.mxu1 %v8933_v2  ;;  %5045 = vmatmul.mubr.msk.f32.vlgmr.msra.gmra.mrb[22].mxu1 %vm4554_vm10, %v8324_v61 }
 0x451   : > { %v5461_v33 = vunpack.i.h.bf16 %v5459_v14  ;;  %v5460_v53 = vunpack.i.l.bf16 %v5459_v14  ;;  %5229 = vmatpush1.bf16.msra.mxu1 %v8936_v24  ;;  %4860 = vmatprep.mubr.f32.mxu1 %v8878_v45  ;;  %v8938_v45 = vld [vmem:[#allocation28_spill] sm:$0xff] }
 0x452   : > { %v8939_v15 = vcombine.low %v7820_v21, %v8938_v45 }
 0x453   : > { %v4514_v41 = vsel %vm4436_vm8, %v4509_v38, %v5460_v53  ;;  %v4515_v3 = vsel %vm4436_vm8, %v4510_v27, %v5461_v33  ;;  %v4218_v52 = vpop.permute.xlu1 %4217  ;;  %v8943_v27 = vcombine.low %v7992_v57, %v8052_v35 }
 0x454   : > { %v5464_v59 = vpop.permute.xlu0 %5463  ;;  %v5222_v18 = vpack.c.bf16 %v4515_v3, %v4514_v41  ;;  %v4489_v22 = vsel %vm4424_vm6, %v8939_v15, %v5445_v8 }
 0x455   : > { %v5466_v9 = vunpack.i.h.bf16 %v5464_v59  ;;  %v5465_v23 = vunpack.i.l.bf16 %v5464_v59  ;;  %v4494_v40 = vsel %vm4430_vm7, %v4489_v22, %v5455_v28 }
 0x456   : > { %5223 = vmatprep.subr.bf16.mxu0 %v5222_v18 }
 0x457   : > { %v4499_v46 = vsel %vm4436_vm8, %v4494_v40, %v5465_v23  ;;  %v4500_v47 = vsel %vm4436_vm8, %v4495_v0, %v5466_v9  ;;  %v4338_v49 = vpop.permute.xlu1 %4337 }
 0x458   : > { %v5224_v10 = vpack.c.bf16 %v4500_v47, %v4499_v46  ;;  %v4398_v54 = vpop.permute.xlu0 %4397 }
 0x45a   : > { %5225 = vmatpush1.bf16.msra.mxu0 %v5224_v10 }
 0x45b   : > { %v5474_v12 = vpop.permute.xlu1 %5473 }
 0x45c   : > { %v5469_v44 = vpop.permute.xlu0 %5468  ;;  %v5476_v8 = vunpack.i.h.bf16 %v5474_v12  ;;  %v5475_v60 = vunpack.i.l.bf16 %v5474_v12 }
 0x45d   : > { %v5471_v11 = vunpack.i.h.bf16 %v5469_v44  ;;  %v5470_v4 = vunpack.i.l.bf16 %v5469_v44 }
 0x45e   : > { %v4520_v43 = vsel %vm4424_vm6, %v8942_v58, %v5476_v8  ;;  %v4519_v32 = vsel %vm4424_vm6, %v8943_v27, %v5475_v60 }
 0x45f   : > { %v4258_v17 = vpop.permute.xlu1 %4257  ;;  %v4535_v30 = vsel %vm4424_vm6, %v8940_v48, %v5471_v11  ;;  %v4534_v7 = vsel %vm4424_vm6, %v8941_v51, %v5470_v4 }
 0x460   : > { %v5479_v21 = vpop.permute.xlu0 %5478  ;;  %v4506_v28 = vsel %vm4424_vm6, %v8237_v56, %v4258_v17 }
 0x461   : > { %v5481_v5 = vunpack.i.h.bf16 %v5479_v21  ;;  %v5480_v20 = vunpack.i.l.bf16 %v5479_v21  ;;  %v4511_v57 = vsel %vm4430_vm7, %v4506_v28, %v8379_v36 }
 0x463   : > { %v5489_v50 = vpop.permute.xlu1 %5488  ;;  %v4539_v29 = vsel %vm4430_vm7, %v4534_v7, %v5480_v20  ;;  %v4540_v1 = vsel %vm4430_vm7, %v4535_v30, %v5481_v5 }
 0x464   : > { %v5484_v31 = vpop.permute.xlu0 %5483  ;;  %v5491_v13 = vunpack.i.h.bf16 %v5489_v50  ;;  %v5490_v14 = vunpack.i.l.bf16 %v5489_v50 }
 0x465   : > { %v5486_v53 = vunpack.i.h.bf16 %v5484_v31  ;;  %v5485_v26 = vunpack.i.l.bf16 %v5484_v31 }
 0x466   : > { %v4544_v2 = vsel %vm4436_vm8, %v4539_v29, %v5490_v14  ;;  %v4545_v6 = vsel %vm4436_vm8, %v4540_v1, %v5491_v13 }
 0x467   : > { %v5230_v16 = vpack.c.bf16 %v4545_v6, %v4544_v2  ;;  %v4238_v55 = vpop.permute.xlu1 %4237  ;;  %v4524_v59 = vsel %vm4430_vm7, %v4519_v32, %v5485_v26  ;;  %v4525_v42 = vsel %vm4430_vm7, %v4520_v43, %v5486_v53  ;;  %v5524_v32 = vmov 1  }
 0x468   : > { %v4198_v33 = vpop.permute.xlu0 %4197  ;;  %5498 = vset.pattern.permute.xlu0 %v5524_v32 }
 0x469   : > { %5231 = vmatprep.subr.bf16.mxu1 %v5230_v16  ;;  %v4491_v24 = vsel %vm4424_vm6, %v8251_v63, %v4198_v33 }
 0x46a   : > { %v4496_v25 = vsel %vm4430_vm7, %v4491_v24, %v4218_v52 }
 0x46b   : > { %v4318_v35 = vpop.permute.xlu1 %4317  ;;  %v4501_v45 = vsel %vm4436_vm8, %v4496_v25, %v4238_v55 }
 0x46c   : > { %v5494_v38 = vpop.permute.xlu0 %5493  ;;  %v4521_v36 = vsel %vm4424_vm6, %v8257_v19, %v4318_v35 }
 0x46d   : > { %v5496_v41 = vunpack.i.h.bf16 %v5494_v38  ;;  %v5495_v3 = vunpack.i.l.bf16 %v5494_v38  ;;  %v4526_v40 = vsel %vm4430_vm7, %v4521_v36, %v4338_v49 }
 0x46f   : > { %v4529_v18 = vsel %vm4436_vm8, %v4524_v59, %v5495_v3  ;;  %v4530_v63 = vsel %vm4436_vm8, %v4525_v42, %v5496_v41  ;;  %v4358_v22 = vpop.permute.xlu1 %4357 }
 0x470   : > { %v5232_v34 = vpack.c.bf16 %v4530_v63, %v4529_v18  ;;  %v4298_v37 = vpop.permute.xlu0 %4297  ;;  %v4531_v46 = vsel %vm4436_vm8, %v4526_v40, %v4358_v22  ;;  %v5525_v63 = vmov 2  }
 0x471   : > { %v4516_v56 = vsel %vm4436_vm8, %v4511_v57, %v4298_v37  ;;  %5499 = vset.pattern.permute.xlu1 %v5525_v63 }
 0x472   : > { %5046 = vmatprep.subr.msk.mxu0 %vm4558_vm9, %v4516_v56  ;;  %5233 = vmatpush1.bf16.msra.mxu1 %v5232_v34 }
 0x473   : > { %5047 = vmatpush1.msk.msra.mxu0 %vm4558_vm9, %v4501_v45 }
 0x474   : > { %v4378_v52 = vpop.permute.xlu0 %4377  ;;  %5048 = vmatmul.mubr.msk.f32.vlgmr.msra.gmra.mrb[28].mxu0 %vm4554_vm10, %v8324_v61 }
 0x475   : > { %v4536_v15 = vsel %vm4424_vm6, %v8271_v62, %v4378_v52 }
 0x476   : > { %v4541_v9 = vsel %vm4430_vm7, %v4536_v15, %v4398_v54 }
 0x478   : > { %v4418_v23 = vpop.permute.xlu0 %4417 }
 0x479   : > { %v4546_v0 = vsel %vm4436_vm8, %v4541_v9, %v4418_v23 }
 0x47a   : > { %5049 = vmatprep.subr.msk.mxu1 %vm4558_vm9, %v4546_v0 }
 0x47b   : > { %5050 = vmatpush1.msk.msra.mxu1 %vm4558_vm9, %v4531_v46 }
 0x47c   : > { %5051 = vmatmul.mubr.msk.f32.vlgmr.msra.gmra.mrb[24].mxu1 %vm4554_vm10, %v8324_v61 }
 0x489   : > { %v4552_v44 = vpop.permute.xlu0 %4551 }
 0x4fe   : > { %v4649_v62 = vpop.f32.mrb[20].mxu1 }
 0x4ff   : > { %v4651_v47 = vpop.f32.mrb[21].mxu1  ;;  %v4650_v54 = vadd.f32 %v4649_v62, %v4552_v44 }
 0x500   : > { %v4652_v12 = vadd.f32 %v4651_v47, %v4552_v44 }
 0x501   : > { %v4877_v21 = vmul.f32 %v4650_v54, %v4650_v54 }
 0x502   : > { %v4878_v49 = vmul.f32 %v4652_v12, %v4652_v12  ;;  %v4867_v11 = vadd.f32 %v4652_v12, %v4650_v54 }
 0x504   : > { %v4885_v4 = vadd.f32 %v4878_v49, %v4877_v21 }
 0x523   : > { %v4720_v19 = vpop.f32.mrb[22].mxu1 }
 0x524   : > { %v4722_v10 = vpop.f32.mrb[23].mxu1  ;;  %v4721_v17 = vadd.f32 %v4720_v19, %v4552_v44 }
 0x525   : > { %v4723_v20 = vadd.f32 %v4722_v10, %v4552_v44 }
 0x526   : > { %v4879_v5 = vmul.f32 %v4721_v17, %v4721_v17  ;;  %v4868_v31 = vadd.f32 %v4867_v11, %v4721_v17 }
 0x527   : > { %v4880_v30 = vmul.f32 %v4723_v20, %v4723_v20 }
 0x528   : > { %v4886_v48 = vadd.f32 %v4885_v4, %v4879_v5  ;;  %v4869_v7 = vadd.f32 %v4868_v31, %v4723_v20 }
 0x52a   : > { %v4887_v29 = vadd.f32 %v4886_v48, %v4880_v30 }
 0x547   : > { %v4791_v50 = vpop.f32.mrb[28].mxu0 }
 0x548   : > { %v4792_v51 = vadd.f32 %v4791_v50, %v4552_v44  ;;  %v4793_v61 = vpop.f32.mrb[29].mxu0 }
 0x549   : > { %v4794_v14 = vadd.f32 %v4793_v61, %v4552_v44 }
 0x54a   : > { %v4881_v13 = vmul.f32 %v4792_v51, %v4792_v51  ;;  %v4870_v1 = vadd.f32 %v4869_v7, %v4792_v51 }
 0x54b   : > { %v4882_v6 = vmul.f32 %v4794_v14, %v4794_v14 }
 0x54c   : > { %v4888_v2 = vadd.f32 %v4887_v29, %v4881_v13  ;;  %v4871_v33 = vadd.f32 %v4870_v1, %v4794_v14 }
 0x54e   : > { %v4889_v26 = vadd.f32 %v4888_v2, %v4882_v6 }
 0x54f   : > { %v4862_v8 = vpop.f32.mrb[24].mxu1 }
 0x550   : > { %v4863_v16 = vadd.f32 %v4862_v8, %v4552_v44  ;;  %v4864_v60 = vpop.f32.mrb[25].mxu1 }
 0x551   : > { %v4865_v53 = vadd.f32 %v4864_v60, %v4552_v44 }
 0x552   : > { %v4872_v55 = vadd.f32 %v4871_v33, %v4863_v16  ;;  %v4883_v58 = vmul.f32 %v4863_v16, %v4863_v16 }
 0x553   : > { %v4884_v43 = vmul.f32 %v4865_v53, %v4865_v53 }
 0x554   : > { %v4873_v24 = vadd.f32 %v4872_v55, %v4865_v53  ;;  %v4890_v38 = vadd.f32 %v4889_v26, %v4883_v58 }
 0x556   : > { %4874 = vadd.xlane.f32.xlu1 %v4873_v24  ;;  %v4891_v27 = vadd.f32 %v4890_v38, %v4884_v43 }
 0x558   : > { %4892 = vadd.xlane.f32.xlu0 %v4891_v27 }
 0x5e3   : > { %v4875_v28 = vpop.xlane.xlu1 %4874 }
 0x5e4   : > { %v4876_v41 = vmul.f32 0.0009765625, %v4875_v28 }
 0x5e5   : > { %v4893_v3 = vpop.xlane.xlu0 %4892 }
 0x5e6   : > { %v4895_v59 = vmul.f32 %v4876_v41, %v4876_v41  ;;  %v4894_v42 = vmul.f32 0.0009765625, %v4893_v3 }
 0x5e8   : > { %v4896_v25 = vsub.f32 %v4894_v42, %v4895_v59 }
 0x5ea   : > { %v4897_v18 = vadd.f32 1e-05, %v4896_v25 }
 0x5ec   : > { %5501 = vrsqrt.f32 %v4897_v18 }
 0x5f6   : > { %v5502_v34 = vpop.eup %5501 }
 0x5f7   : > { %v4899_v37 = vmul.f32 %v5502_v34, %v8286_v39 }
 0x5f9   : > { %4908 = vperm.xlu0 %5498, %v4899_v37   ;;  %v4900_v57 = vmul.f32 %v4899_v37, %v4876_v41 }
 0x5fb   : > { %4902 = vrot.lane.b32.xlu1 %v4900_v57, %s5516_s15 }
 0x5fd   : > { %5500 = vset.pattern.permute.xlu0 %v5525_v63 }
 0x66d   : > { %v4903_v35 = vpop.permute.xlu1 %4902 }
 0x66e   : > { %v4905_v56 = vsub.f32 %v8286_v39, %v4903_v35 }
 0x670   : > { %4921 = vperm.xlu1 %5499, %v4905_v56  }
 0x678   : > { %v4909_v45 = vpop.permute.xlu0 %4908 }
 0x679   : > { %v4911_v52 = vmul.f32 %v4909_v45, %v4650_v54  ;;  %v4912_v15 = vmul.f32 %v4909_v45, %v4652_v12  ;;  %v4913_v36 = vmul.f32 %v4909_v45, %v4721_v17  ;;  %v4914_v22 = vmul.f32 %v4909_v45, %v4723_v20 }
 0x67a   : > { %v4915_v9 = vmul.f32 %v4909_v45, %v4792_v51  ;;  %v4916_v23 = vmul.f32 %v4909_v45, %v4794_v14  ;;  %v4917_v40 = vmul.f32 %v4909_v45, %v4863_v16  ;;  %v4918_v0 = vmul.f32 %v4909_v45, %v4865_v53 }
 0x6ef   : > { %v4922_v46 = vpop.permute.xlu1 %4921 }
 0x6f0   : > { %v4924_v62 = vadd.f32 %v4922_v46, %v4911_v52  ;;  %v4925_v47 = vadd.f32 %v4922_v46, %v4912_v15  ;;  %v4926_v19 = vadd.f32 %v4922_v46, %v4913_v36  ;;  %v4927_v10 = vadd.f32 %v4922_v46, %v4914_v22 }
 0x6f1   : > { %v4928_v39 = vadd.f32 %v4922_v46, %v4915_v9  ;;  %v4929_v44 = vadd.f32 %v4922_v46, %v4916_v23  ;;  %v4930_v54 = vadd.f32 %v4922_v46, %v4917_v40  ;;  %v4931_v12 = vadd.f32 %v4922_v46, %v4918_v0 }
 0x6f2   : > { %v4932_v21 = vmax.f32 %v4924_v62, 0.0  ;;  %v4933_v49 = vmax.f32 %v4925_v47, 0.0  ;;  %v4934_v17 = vmax.f32 %v4926_v19, 0.0  ;;  %v4935_v11 = vmax.f32 %v4927_v10, 0.0 }
 0x6f3   : > { %v4936_v4 = vmax.f32 %v4928_v39, 0.0  ;;  %v4937_v5 = vmax.f32 %v4929_v44, 0.0  ;;  %v4938_v20 = vmax.f32 %v4930_v54, 0.0  ;;  %v4939_v31 = vmax.f32 %v4931_v12, 0.0 }
 0x6f4   : > { %4940 = vst [vmem:[%s224_s29] sm:$0xff] %v4932_v21  ;;  %4941 = vst [vmem:[%s224_s29 + $0x8] sm:$0xff] %v4933_v49 }
 0x6f5   : > { %4942 = vst [vmem:[%s224_s29 + $0x10] sm:$0xff] %v4934_v17  ;;  %4943 = vst [vmem:[%s224_s29 + $0x18] sm:$0xff] %v4935_v11 }
 0x6f6   : > { %4944 = vst [vmem:[%s224_s29 + $0x20] sm:$0xff] %v4936_v4  ;;  %4945 = vst [vmem:[%s224_s29 + $0x28] sm:$0xff] %v4937_v5 }
 0x6f7   : > { %4946 = vst [vmem:[%s224_s29 + $0x30] sm:$0xff] %v4938_v20  ;;  %4947 = vst [vmem:[%s224_s29 + $0x38] sm:$0xff] %v4939_v31 }
 0x6f8 PF: > { %s15_s18 = sadd.s32 1, %s5509_s18  }
 0x6f9   : > { %p12_p4 = scmp.ge.s32.totalorder %s15_s18, 4  }
 0x6fb   :  { %14 = sbr.rel (!%p12_p4) target bundleno = 1 (0x1), region = 70 }

</bundles_post_ra>
